<compile_context>
chip_gen: v7x
topology: tpu7x:2x2x1
jax: 0.10.0
libtpu: 0.0.40
codegen_flags: <defaults>
</compile_context>

<pallas_src>
import functools

import numpy as np
import jax
import jax.numpy as jnp
from jax.experimental import pallas as pl
from jax.experimental.pallas import tpu as pltpu


def conv_shape(inp, kernel_size, stride, padding=0):
    return (inp + 2 * padding - kernel_size) // stride + 1


def _pick_block(m, candidates=(512, 256, 128, 64, 32, 16, 8)):
    for c in candidates:
        if m % c == 0:
            return c
    return m


# ---------------------------------------------------------------------------
# Kernel 1: conv1 as a row-tiled matmul + bias + ReLU (weights resident).
# ---------------------------------------------------------------------------
def _conv_matmul_kernel(p_ref, w_ref, b_ref, o_ref):
    o_ref[...] = jnp.maximum(
        jnp.dot(p_ref[...], w_ref[...], preferred_element_type=jnp.float32)
        + b_ref[...],
        0.0)


def _conv_matmul(pc, w, b):
    M, K = pc.shape
    N = w.shape[1]
    bm = _pick_block(M)
    return pl.pallas_call(
        _conv_matmul_kernel,
        out_shape=jax.ShapeDtypeStruct((M, N), jnp.float32),
        grid=(M // bm,),
        in_specs=[pl.BlockSpec((bm, K), lambda i: (i, 0)),
                  pl.BlockSpec((K, N), lambda i: (0, 0)),
                  pl.BlockSpec((1, N), lambda i: (0, 0))],
        out_specs=pl.BlockSpec((bm, N), lambda i: (i, 0)),
        compiler_params=pltpu.CompilerParams(
            dimension_semantics=("parallel",)),
    )(pc, w, b)


# ---------------------------------------------------------------------------
# Kernel 2: fused conv2 + conv3 + fc1 + fc2 + residual branches + heads +
# softmax.  Gridded over batch tiles; intermediates stay in VMEM.
# ---------------------------------------------------------------------------
def _fused_tail_kernel(pc2_ref, w2_ref, b2_ref, w3_ref, b3_ref,
                       wfc1_ref, bfc1_ref, wfc2_ref, bfc2_ref,
                       wex_ref, bex_ref, wh_ref, bh_ref, out_ref,
                       *, oh2, ow2, oh3, ow3, n_actions):
    f32 = jnp.float32
    tb = out_ref.shape[0]

    # ---- conv2: one (tb, K2) x (K2, 64) matmul per spatial position --------
    w2 = w2_ref[...]
    b2 = b2_ref[...]
    rows2 = []
    for p in range(oh2 * ow2):
        a = pc2_ref[p]                                        # (tb, K2)
        rows2.append(jnp.maximum(
            jnp.dot(a, w2, preferred_element_type=f32) + b2, 0.0))

    # ---- conv3 (stride 1): accumulate 3x3 weight row-blocks ----------------
    w3 = w3_ref[...]                                          # (9*64, 64)
    b3 = b3_ref[...]
    oc3 = w3.shape[-1]
    h3 = []
    for oh in range(oh3):
        for ow in range(ow3):
            acc = b3
            for kh in range(3):
                for kw in range(3):
                    pidx = (oh + kh) * ow2 + (ow + kw)
                    blk = (kh * 3 + kw) * oc3
                    acc = acc + jnp.dot(rows2[pidx], w3[blk:blk + oc3, :],
                                        preferred_element_type=f32)
            h3.append(jnp.maximum(acc, 0.0))                  # (tb, 64)

    # ---- fc1 over the NHWC flatten (weight rows pre-permuted to (h,w,c)) ---
    wfc1 = wfc1_ref[...]
    acc1 = bfc1_ref[...]
    for q in range(oh3 * ow3):
        acc1 = acc1 + jnp.dot(h3[q], wfc1[q * oc3:(q + 1) * oc3, :],
                              preferred_element_type=f32)
    hfc1 = jnp.maximum(acc1, 0.0)                             # (tb, 256)

    hfc2 = jnp.maximum(
        jnp.dot(hfc1, wfc2_ref[...], preferred_element_type=f32)
        + bfc2_ref[...], 0.0)                                 # (tb, 448)
    n_fc2 = hfc2.shape[-1]

    # ---- fused residual branches: [extra_value_fc | extra_policy_fc] -------
    r = jnp.maximum(
        jnp.dot(hfc2, wex_ref[...], preferred_element_type=f32)
        + bex_ref[...], 0.0)                                  # (tb, 896)
    x_v = hfc2 + r[:, :n_fc2]
    x_pi = hfc2 + r[:, n_fc2:]

    # ---- fused heads: single (2*tb, 448) x (448, 128) lane-dense matmul ----
    lhs = jnp.concatenate([x_v, x_pi], axis=0)
    head = (jnp.dot(lhs, wh_ref[...], preferred_element_type=f32)
            + bh_ref[...])                                    # (2*tb, 128)
    vals = head[:tb, :]        # cols [A], [A+1] hold int_value, ext_value
    logits = head[tb:, :]      # cols [0:A] hold policy logits

    col = jax.lax.broadcasted_iota(jnp.int32, logits.shape, 1)
    lmask = jnp.where(col < n_actions, logits, jnp.float32(-1e30))
    m = jnp.max(lmask, axis=-1, keepdims=True)
    e = jnp.exp(lmask - m)
    probs = e * pl.reciprocal(jnp.sum(e, axis=-1, keepdims=True), approx=False)

    out_ref[...] = jnp.where(col < n_actions, probs,
                             jnp.where(col < n_actions + 2, vals, 0.0))


def _fused_tail(pc2, kp, *, oh2, ow2, oh3, ow3, n_actions):
    P2, B, K2 = pc2.shape
    bb = 8 if B % 8 == 0 else B
    head_w = kp["w_heads"].shape[1]
    kern = functools.partial(_fused_tail_kernel, oh2=oh2, ow2=ow2,
                             oh3=oh3, ow3=ow3, n_actions=n_actions)
    weights = [kp["w_c2"], kp["b_c2"], kp["w_c3"], kp["b_c3"],
               kp["w_fc1"], kp["b_fc1"], kp["w_fc2"], kp["b_fc2"],
               kp["w_extra"], kp["b_extra"], kp["w_heads"], kp["b_heads"]]
    in_specs = [pl.BlockSpec((P2, bb, K2), lambda i: (0, i, 0))]
    in_specs += [pl.BlockSpec(w.shape, lambda i: (0, 0)) for w in weights]
    return pl.pallas_call(
        kern,
        out_shape=jax.ShapeDtypeStruct((B, head_w), jnp.float32),
        grid=(B // bb,),
        in_specs=in_specs,
        out_specs=pl.BlockSpec((bb, head_w), lambda i: (i, 0)),
        compiler_params=pltpu.CompilerParams(
            dimension_semantics=("parallel",)),
    )(pc2, *weights)


# ---------------------------------------------------------------------------
# XLA glue: NHWC im2col (rows in (kh, kw, c) feature order).
# ---------------------------------------------------------------------------
def _im2col_nhwc(x, k, s):
    B, H, W, C = x.shape
    OH, OW = conv_shape(H, k, s), conv_shape(W, k, s)
    pieces = []
    for kh in range(k):
        for kw in range(k):
            pieces.append(x[:, kh:kh + s * OH:s, kw:kw + s * OW:s, :])
    pat = jnp.stack(pieces, axis=3)                 # (B, OH, OW, k*k, C)
    return pat.reshape(B, OH, OW, k * k * C), OH, OW


def policy_forward(x, kp, *, n_actions):
    B = x.shape[0]
    x_nhwc = jnp.transpose(x, (0, 2, 3, 1)).astype(jnp.float32)

    # conv1 (1/255 folded into its weights)
    pat1, oh1, ow1 = _im2col_nhwc(x_nhwc, 8, 4)
    pc1 = pat1.reshape(B * oh1 * ow1, -1)
    h1 = _conv_matmul(pc1, kp["w_c1"], kp["b_c1"])            # (B*oh1*ow1, 32)
    h1 = h1.reshape(B, oh1, ow1, 32)                          # NHWC, no transpose

    # conv2 patches, laid out position-major (P2, B, K2) for batch tiling
    pat2, oh2, ow2 = _im2col_nhwc(h1, 4, 2)
    pc2 = jnp.transpose(pat2, (1, 2, 0, 3)).reshape(oh2 * ow2, B, pat2.shape[-1])
    oh3, ow3 = conv_shape(oh2, 3, 1), conv_shape(ow2, 3, 1)

    out = _fused_tail(pc2, kp, oh2=oh2, ow2=ow2, oh3=oh3, ow3=ow3,
                      n_actions=n_actions)                    # (B, 128)
    probs = out[:, :n_actions]
    int_value = out[:, n_actions:n_actions + 1]
    ext_value = out[:, n_actions + 1:n_actions + 2]
    # TODO(synk): torch.distributions.Categorical(probs) has no Pallas
    # equivalent; probs are returned for the caller to sample from.
    return probs, int_value, ext_value


# ---------------------------------------------------------------------------
# Parameters: PyTorch-layout params (OIHW convs, (out,in) linears) +
# kernel-layout conversion, plus a pure-JAX reference forward.
# ---------------------------------------------------------------------------
def make_params(key, state_shape, n_actions):
    c, h, w = state_shape
    oh1, ow1 = conv_shape(h, 8, 4), conv_shape(w, 8, 4)
    oh2, ow2 = conv_shape(oh1, 4, 2), conv_shape(ow1, 4, 2)
    oh3, ow3 = conv_shape(oh2, 3, 1), conv_shape(ow2, 3, 1)
    flatten = oh3 * ow3 * 64

    def ortho(k, shape, gain):
        return jax.nn.initializers.orthogonal(scale=gain)(k, shape, jnp.float32)

    ks = jax.random.split(key, 20)
    g2, g01, g001 = float(np.sqrt(2.0)), float(np.sqrt(0.1)), float(np.sqrt(0.01))
    # The module zero-inits biases; small random biases are used here so the
    # bias path of the kernels is actually exercised by the reference check.
    b = lambda k_, n: 0.1 * jax.random.normal(k_, (n,), jnp.float32)
    return {
        "conv1_w": ortho(ks[0], (32, c, 8, 8), g2),    "conv1_b": b(ks[10], 32),
        "conv2_w": ortho(ks[1], (64, 32, 4, 4), g2),   "conv2_b": b(ks[11], 64),
        "conv3_w": ortho(ks[2], (64, 64, 3, 3), g2),   "conv3_b": b(ks[12], 64),
        "fc1_w": ortho(ks[3], (256, flatten), g2),     "fc1_b": b(ks[13], 256),
        "fc2_w": ortho(ks[4], (448, 256), g2),         "fc2_b": b(ks[14], 448),
        "evfc_w": ortho(ks[5], (448, 448), g01),       "evfc_b": b(ks[15], 448),
        "epfc_w": ortho(ks[6], (448, 448), g01),       "epfc_b": b(ks[16], 448),
        "pol_w": ortho(ks[7], (n_actions, 448), g001), "pol_b": b(ks[17], n_actions),
        "iv_w": ortho(ks[8], (1, 448), g001),          "iv_b": b(ks[18], 1),
        "ev_w": ortho(ks[9], (1, 448), g001),          "ev_b": b(ks[19], 1),
    }


def prepare_params(p, state_shape, n_actions, head_width=128):
    c, h, w = state_shape
    oh1, ow1 = conv_shape(h, 8, 4), conv_shape(w, 8, 4)
    oh2, ow2 = conv_shape(oh1, 4, 2), conv_shape(ow1, 4, 2)
    oh3, ow3 = conv_shape(oh2, 3, 1), conv_shape(ow2, 3, 1)
    head_width = max(head_width, -(-(n_actions + 2) // 128) * 128)

    def conv_mat(wt):                    # OIHW -> (kh*kw*ic, oc), NHWC patch order
        oc = wt.shape[0]
        return jnp.transpose(wt, (2, 3, 1, 0)).reshape(-1, oc)

    # fc1: PyTorch flatten is (c, h, w); kernel flatten is (h, w, c).
    fc1 = p["fc1_w"].T.reshape(64, oh3, ow3, 256)
    fc1 = jnp.transpose(fc1, (1, 2, 0, 3)).reshape(oh3 * ow3 * 64, 256)

    w_heads = jnp.zeros((448, head_width), jnp.float32)
    w_heads = w_heads.at[:, :n_actions].set(p["pol_w"].T)
    w_heads = w_heads.at[:, n_actions].set(p["iv_w"][0])
    w_heads = w_heads.at[:, n_actions + 1].set(p["ev_w"][0])
    b_heads = jnp.zeros((head_width,), jnp.float32)
    b_heads = b_heads.at[:n_actions].set(p["pol_b"])
    b_heads = b_heads.at[n_actions].set(p["iv_b"][0])
    b_heads = b_heads.at[n_actions + 1].set(p["ev_b"][0])

    row = lambda v: v[None, :]
    return {
        "w_c1": conv_mat(p["conv1_w"]) * (1.0 / 255.0),   # /255 folded in
        "b_c1": row(p["conv1_b"]),
        "w_c2": conv_mat(p["conv2_w"]), "b_c2": row(p["conv2_b"]),
        "w_c3": conv_mat(p["conv3_w"]), "b_c3": row(p["conv3_b"]),
        "w_fc1": fc1, "b_fc1": row(p["fc1_b"]),
        "w_fc2": p["fc2_w"].T, "b_fc2": row(p["fc2_b"]),
        "w_extra": jnp.concatenate([p["evfc_w"].T, p["epfc_w"].T], axis=1),
        "b_extra": row(jnp.concatenate([p["evfc_b"], p["epfc_b"]])),
        "w_heads": w_heads, "b_heads": row(b_heads),
    }


def ref_forward(x, p):
    h = x / 255.0

    def conv(t, wt, bt, s):
        y = jax.lax.conv_general_dilated(
            t, wt, (s, s), "VALID",
            dimension_numbers=("NCHW", "OIHW", "NCHW"))
        return jax.nn.relu(y + bt.reshape(1, -1, 1, 1))

    h = conv(h, p["conv1_w"], p["conv1_b"], 4)
    h = conv(h, p["conv2_w"], p["conv2_b"], 2)
    h = conv(h, p["conv3_w"], p["conv3_b"], 1)
    flat = h.reshape(h.shape[0], -1)
    h1 = jax.nn.relu(flat @ p["fc1_w"].T + p["fc1_b"])
    h2 = jax.nn.relu(h1 @ p["fc2_w"].T + p["fc2_b"])
    xv = h2 + jax.nn.relu(h2 @ p["evfc_w"].T + p["evfc_b"])
    xpi = h2 + jax.nn.relu(h2 @ p["epfc_w"].T + p["epfc_b"])
    iv = xv @ p["iv_w"].T + p["iv_b"]
    ev = xv @ p["ev_w"].T + p["ev_b"]
    logits = xpi @ p["pol_w"].T + p["pol_b"]
    return jax.nn.softmax(logits, axis=-1), iv, ev


if __name__ == "__main__":
    state_shape = (4, 36, 36)   # conv stack: 36 -> 8 -> 3 -> 1, flatten = 64
    n_actions = 6
    batch = 16

    key = jax.random.PRNGKey(0)
    kp_key, kx_key = jax.random.split(key)
    torch_params = make_params(kp_key, state_shape, n_actions)
    kernel_params = prepare_params(torch_params, state_shape, n_actions)
    x = jax.random.uniform(kx_key, (batch,) + state_shape, jnp.float32,
                           0.0, 255.0)

    fwd = jax.jit(functools.partial(policy_forward, n_actions=n_actions))
    probs, int_value, ext_value = jax.block_until_ready(fwd(x, kernel_params))

    probs_r, iv_r, ev_r = ref_forward(x, torch_params)
    np.testing.assert_allclose(np.asarray(probs), np.asarray(probs_r),
                               rtol=1e-4, atol=1e-5)
    np.testing.assert_allclose(np.asarray(int_value), np.asarray(iv_r),
                               rtol=1e-4, atol=1e-5)
    np.testing.assert_allclose(np.asarray(ext_value), np.asarray(ev_r),
                               rtol=1e-4, atol=1e-5)
    np.testing.assert_allclose(np.asarray(probs).sum(axis=1), 1.0,
                               rtol=1e-5, atol=1e-5)
    print("KERNEL_OK")
</pallas_src>

<mosaic_0001>
module attributes {stable_mosaic.version = 11 : i64} {
  func.func @_conv_matmul_kernel(%arg0: i32, %arg1: memref<512x256xf32, #tpu.memory_space<vmem>>, %arg2: memref<256x32xf32, #tpu.memory_space<vmem>>, %arg3: memref<1x32xf32, #tpu.memory_space<vmem>>, %arg4: memref<512x32xf32, #tpu.memory_space<vmem>>) attributes {dimension_semantics = [#tpu.dimension_semantics<parallel>], iteration_bounds = array<i64: 2>, scalar_prefetch = 0 : i64, scratch_operands = 0 : i64, tpu.core_type = #tpu.core_type<tc>, window_params = [{transform_indices = @transform_0, window_bounds = array<i64: 512, 256>}, {pipeline_mode = #tpu.pipeline_mode<synchronous>, transform_indices = @transform_1, window_bounds = array<i64: 256, 32>}, {pipeline_mode = #tpu.pipeline_mode<synchronous>, transform_indices = @transform_2, window_bounds = array<i64: 1, 32>}, {transform_indices = @transform_3, window_bounds = array<i64: 512, 32>}]} {
    %c0 = arith.constant 0 : index
    %c0_0 = arith.constant 0 : index
    %0 = vector.load %arg1[%c0, %c0_0] : memref<512x256xf32, #tpu.memory_space<vmem>>, vector<512x256xf32>
    %c0_1 = arith.constant 0 : index
    %c0_2 = arith.constant 0 : index
    %1 = vector.load %arg2[%c0_1, %c0_2] : memref<256x32xf32, #tpu.memory_space<vmem>>, vector<256x32xf32>
    %cst = arith.constant dense<0.000000e+00> : vector<512x32xf32>
    %2 = tpu.matmul %0, %1, %cst {dimension_numbers = #tpu.dot_dimension_numbers<[1], [0], [0], [1], [0, 0, 1, 1], [], []>} : vector<512x256xf32>, vector<256x32xf32>, vector<512x32xf32> -> vector<512x32xf32>
    %c0_3 = arith.constant 0 : index
    %c0_4 = arith.constant 0 : index
    %3 = vector.load %arg3[%c0_3, %c0_4] : memref<1x32xf32, #tpu.memory_space<vmem>>, vector<1x32xf32>
    %4 = vector.broadcast %3 : vector<1x32xf32> to vector<512x32xf32>
    %5 = arith.addf %2, %4 : vector<512x32xf32>
    %cst_5 = arith.constant 0.000000e+00 : f32
    %6 = vector.broadcast %cst_5 : f32 to vector<512x32xf32>
    %7 = arith.maximumf %5, %6 : vector<512x32xf32>
    %c0_6 = arith.constant 0 : index
    %c0_7 = arith.constant 0 : index
    %8 = vector.load %arg4[%c0_6, %c0_7] : memref<512x32xf32, #tpu.memory_space<vmem>>, vector<512x32xf32>
    tpu.vector_store %arg4[%c0_6, %c0_7], %7 {strides = array<i32>} : memref<512x32xf32, #tpu.memory_space<vmem>>, vector<512x32xf32>,
    return
  }
  func.func @transform_0(%arg0: i32) -> (i32, i32) {
    %c0_i32 = arith.constant 0 : i32
    %c0_i32_0 = arith.constant 0 : i32
    return %arg0, %c0_i32 : i32, i32
  }
  func.func @transform_1(%arg0: i32) -> (i32, i32) {
    %c0_i32 = arith.constant 0 : i32
    %c0_i32_0 = arith.constant 0 : i32
    %c0_i32_1 = arith.constant 0 : i32
    return %c0_i32, %c0_i32_0 : i32, i32
  }
  func.func @transform_2(%arg0: i32) -> (i32, i32) {
    %c0_i32 = arith.constant 0 : i32
    %c0_i32_0 = arith.constant 0 : i32
    %c0_i32_1 = arith.constant 0 : i32
    return %c0_i32, %c0_i32_0 : i32, i32
  }
  func.func @transform_3(%arg0: i32) -> (i32, i32) {
    %c0_i32 = arith.constant 0 : i32
    %c0_i32_0 = arith.constant 0 : i32
    return %arg0, %c0_i32 : i32, i32
  }
}

module attributes {stable_mosaic.version = 11 : i64} {
  func.func @_fused_tail_kernel(%arg0: i32, %arg1: memref<9x8x512xf32, #tpu.memory_space<vmem>>, %arg2: memref<512x64xf32, #tpu.memory_space<vmem>>, %arg3: memref<1x64xf32, #tpu.memory_space<vmem>>, %arg4: memref<576x64xf32, #tpu.memory_space<vmem>>, %arg5: memref<1x64xf32, #tpu.memory_space<vmem>>, %arg6: memref<64x256xf32, #tpu.memory_space<vmem>>, %arg7: memref<1x256xf32, #tpu.memory_space<vmem>>, %arg8: memref<256x448xf32, #tpu.memory_space<vmem>>, %arg9: memref<1x448xf32, #tpu.memory_space<vmem>>, %arg10: memref<448x896xf32, #tpu.memory_space<vmem>>, %arg11: memref<1x896xf32, #tpu.memory_space<vmem>>, %arg12: memref<448x128xf32, #tpu.memory_space<vmem>>, %arg13: memref<1x128xf32, #tpu.memory_space<vmem>>, %arg14: memref<8x128xf32, #tpu.memory_space<vmem>>) attributes {dimension_semantics = [#tpu.dimension_semantics<parallel>], iteration_bounds = array<i64: 2>, scalar_prefetch = 0 : i64, scratch_operands = 0 : i64, tpu.core_type = #tpu.core_type<tc>, window_params = [{transform_indices = @transform_0, window_bounds = array<i64: 9, 8, 512>}, {pipeline_mode = #tpu.pipeline_mode<synchronous>, transform_indices = @transform_1, window_bounds = array<i64: 512, 64>}, {pipeline_mode = #tpu.pipeline_mode<synchronous>, transform_indices = @transform_2, window_bounds = array<i64: 1, 64>}, {pipeline_mode = #tpu.pipeline_mode<synchronous>, transform_indices = @transform_3, window_bounds = array<i64: 576, 64>}, {pipeline_mode = #tpu.pipeline_mode<synchronous>, transform_indices = @transform_4, window_bounds = array<i64: 1, 64>}, {pipeline_mode = #tpu.pipeline_mode<synchronous>, transform_indices = @transform_5, window_bounds = array<i64: 64, 256>}, {pipeline_mode = #tpu.pipeline_mode<synchronous>, transform_indices = @transform_6, window_bounds = array<i64: 1, 256>}, {pipeline_mode = #tpu.pipeline_mode<synchronous>, transform_indices = @transform_7, window_bounds = array<i64: 256, 448>}, {pipeline_mode = #tpu.pipeline_mode<synchronous>, transform_indices = @transform_8, window_bounds = array<i64: 1, 448>}, {pipeline_mode = #tpu.pipeline_mode<synchronous>, transform_indices = @transform_9, window_bounds = array<i64: 448, 896>}, {pipeline_mode = #tpu.pipeline_mode<synchronous>, transform_indices = @transform_10, window_bounds = array<i64: 1, 896>}, {pipeline_mode = #tpu.pipeline_mode<synchronous>, transform_indices = @transform_11, window_bounds = array<i64: 448, 128>}, {pipeline_mode = #tpu.pipeline_mode<synchronous>, transform_indices = @transform_12, window_bounds = array<i64: 1, 128>}, {transform_indices = @transform_13, window_bounds = array<i64: 8, 128>}]} {
    %c0 = arith.constant 0 : index
    %c0_0 = arith.constant 0 : index
    %0 = vector.load %arg2[%c0, %c0_0] : memref<512x64xf32, #tpu.memory_space<vmem>>, vector<512x64xf32>
    %c0_1 = arith.constant 0 : index
    %c0_2 = arith.constant 0 : index
    %1 = vector.load %arg3[%c0_1, %c0_2] : memref<1x64xf32, #tpu.memory_space<vmem>>, vector<1x64xf32>
    %c0_3 = arith.constant 0 : index
    %c0_4 = arith.constant 0 : index
    %c0_5 = arith.constant 0 : index
    %2 = vector.load %arg1[%c0_3, %c0_4, %c0_5] : memref<9x8x512xf32, #tpu.memory_space<vmem>>, vector<1x8x512xf32>
    %3 = vector.shape_cast %2 : vector<1x8x512xf32> to vector<8x512xf32>
    %cst = arith.constant dense<0.000000e+00> : vector<8x64xf32>
    %4 = tpu.matmul %3, %0, %cst {dimension_numbers = #tpu.dot_dimension_numbers<[1], [0], [0], [1], [0, 0, 1, 1], [], []>} : vector<8x512xf32>, vector<512x64xf32>, vector<8x64xf32> -> vector<8x64xf32>
    %5 = vector.broadcast %1 : vector<1x64xf32> to vector<8x64xf32>
    %6 = arith.addf %4, %5 : vector<8x64xf32>
    %cst_6 = arith.constant 0.000000e+00 : f32
    %7 = vector.broadcast %cst_6 : f32 to vector<8x64xf32>
    %8 = arith.maximumf %6, %7 : vector<8x64xf32>
    %c1 = arith.constant 1 : index
    %c0_7 = arith.constant 0 : index
    %c0_8 = arith.constant 0 : index
    %9 = vector.load %arg1[%c1, %c0_7, %c0_8] : memref<9x8x512xf32, #tpu.memory_space<vmem>>, vector<1x8x512xf32>
    %10 = vector.shape_cast %9 : vector<1x8x512xf32> to vector<8x512xf32>
    %cst_9 = arith.constant dense<0.000000e+00> : vector<8x64xf32>
    %11 = tpu.matmul %10, %0, %cst_9 {dimension_numbers = #tpu.dot_dimension_numbers<[1], [0], [0], [1], [0, 0, 1, 1], [], []>} : vector<8x512xf32>, vector<512x64xf32>, vector<8x64xf32> -> vector<8x64xf32>
    %12 = vector.broadcast %1 : vector<1x64xf32> to vector<8x64xf32>
    %13 = arith.addf %11, %12 : vector<8x64xf32>
    %cst_10 = arith.constant 0.000000e+00 : f32
    %14 = vector.broadcast %cst_10 : f32 to vector<8x64xf32>
    %15 = arith.maximumf %13, %14 : vector<8x64xf32>
    %c2 = arith.constant 2 : index
    %c0_11 = arith.constant 0 : index
    %c0_12 = arith.constant 0 : index
    %16 = vector.load %arg1[%c2, %c0_11, %c0_12] : memref<9x8x512xf32, #tpu.memory_space<vmem>>, vector<1x8x512xf32>
    %17 = vector.shape_cast %16 : vector<1x8x512xf32> to vector<8x512xf32>
    %cst_13 = arith.constant dense<0.000000e+00> : vector<8x64xf32>
    %18 = tpu.matmul %17, %0, %cst_13 {dimension_numbers = #tpu.dot_dimension_numbers<[1], [0], [0], [1], [0, 0, 1, 1], [], []>} : vector<8x512xf32>, vector<512x64xf32>, vector<8x64xf32> -> vector<8x64xf32>
    %19 = vector.broadcast %1 : vector<1x64xf32> to vector<8x64xf32>
    %20 = arith.addf %18, %19 : vector<8x64xf32>
    %cst_14 = arith.constant 0.000000e+00 : f32
    %21 = vector.broadcast %cst_14 : f32 to vector<8x64xf32>
    %22 = arith.maximumf %20, %21 : vector<8x64xf32>
    %c3 = arith.constant 3 : index
    %c0_15 = arith.constant 0 : index
    %c0_16 = arith.constant 0 : index
    %23 = vector.load %arg1[%c3, %c0_15, %c0_16] : memref<9x8x512xf32, #tpu.memory_space<vmem>>, vector<1x8x512xf32>
    %24 = vector.shape_cast %23 : vector<1x8x512xf32> to vector<8x512xf32>
    %cst_17 = arith.constant dense<0.000000e+00> : vector<8x64xf32>
    %25 = tpu.matmul %24, %0, %cst_17 {dimension_numbers = #tpu.dot_dimension_numbers<[1], [0], [0], [1], [0, 0, 1, 1], [], []>} : vector<8x512xf32>, vector<512x64xf32>, vector<8x64xf32> -> vector<8x64xf32>
    %26 = vector.broadcast %1 : vector<1x64xf32> to vector<8x64xf32>
    %27 = arith.addf %25, %26 : vector<8x64xf32>
    %cst_18 = arith.constant 0.000000e+00 : f32
    %28 = vector.broadcast %cst_18 : f32 to vector<8x64xf32>
    %29 = arith.maximumf %27, %28 : vector<8x64xf32>
    %c4 = arith.constant 4 : index
    %c0_19 = arith.constant 0 : index
    %c0_20 = arith.constant 0 : index
    %30 = vector.load %arg1[%c4, %c0_19, %c0_20] : memref<9x8x512xf32, #tpu.memory_space<vmem>>, vector<1x8x512xf32>
    %31 = vector.shape_cast %30 : vector<1x8x512xf32> to vector<8x512xf32>
    %cst_21 = arith.constant dense<0.000000e+00> : vector<8x64xf32>
    %32 = tpu.matmul %31, %0, %cst_21 {dimension_numbers = #tpu.dot_dimension_numbers<[1], [0], [0], [1], [0, 0, 1, 1], [], []>} : vector<8x512xf32>, vector<512x64xf32>, vector<8x64xf32> -> vector<8x64xf32>
    %33 = vector.broadcast %1 : vector<1x64xf32> to vector<8x64xf32>
    %34 = arith.addf %32, %33 : vector<8x64xf32>
    %cst_22 = arith.constant 0.000000e+00 : f32
    %35 = vector.broadcast %cst_22 : f32 to vector<8x64xf32>
    %36 = arith.maximumf %34, %35 : vector<8x64xf32>
    %c5 = arith.constant 5 : index
    %c0_23 = arith.constant 0 : index
    %c0_24 = arith.constant 0 : index
    %37 = vector.load %arg1[%c5, %c0_23, %c0_24] : memref<9x8x512xf32, #tpu.memory_space<vmem>>, vector<1x8x512xf32>
    %38 = vector.shape_cast %37 : vector<1x8x512xf32> to vector<8x512xf32>
    %cst_25 = arith.constant dense<0.000000e+00> : vector<8x64xf32>
    %39 = tpu.matmul %38, %0, %cst_25 {dimension_numbers = #tpu.dot_dimension_numbers<[1], [0], [0], [1], [0, 0, 1, 1], [], []>} : vector<8x512xf32>, vector<512x64xf32>, vector<8x64xf32> -> vector<8x64xf32>
    %40 = vector.broadcast %1 : vector<1x64xf32> to vector<8x64xf32>
    %41 = arith.addf %39, %40 : vector<8x64xf32>
    %cst_26 = arith.constant 0.000000e+00 : f32
    %42 = vector.broadcast %cst_26 : f32 to vector<8x64xf32>
    %43 = arith.maximumf %41, %42 : vector<8x64xf32>
    %c6 = arith.constant 6 : index
    %c0_27 = arith.constant 0 : index
    %c0_28 = arith.constant 0 : index
    %44 = vector.load %arg1[%c6, %c0_27, %c0_28] : memref<9x8x512xf32, #tpu.memory_space<vmem>>, vector<1x8x512xf32>
    %45 = vector.shape_cast %44 : vector<1x8x512xf32> to vector<8x512xf32>
    %cst_29 = arith.constant dense<0.000000e+00> : vector<8x64xf32>
    %46 = tpu.matmul %45, %0, %cst_29 {dimension_numbers = #tpu.dot_dimension_numbers<[1], [0], [0], [1], [0, 0, 1, 1], [], []>} : vector<8x512xf32>, vector<512x64xf32>, vector<8x64xf32> -> vector<8x64xf32>
    %47 = vector.broadcast %1 : vector<1x64xf32> to vector<8x64xf32>
    %48 = arith.addf %46, %47 : vector<8x64xf32>
    %cst_30 = arith.constant 0.000000e+00 : f32
    %49 = vector.broadcast %cst_30 : f32 to vector<8x64xf32>
    %50 = arith.maximumf %48, %49 : vector<8x64xf32>
    %c7 = arith.constant 7 : index
    %c0_31 = arith.constant 0 : index
    %c0_32 = arith.constant 0 : index
    %51 = vector.load %arg1[%c7, %c0_31, %c0_32] : memref<9x8x512xf32, #tpu.memory_space<vmem>>, vector<1x8x512xf32>
    %52 = vector.shape_cast %51 : vector<1x8x512xf32> to vector<8x512xf32>
    %cst_33 = arith.constant dense<0.000000e+00> : vector<8x64xf32>
    %53 = tpu.matmul %52, %0, %cst_33 {dimension_numbers = #tpu.dot_dimension_numbers<[1], [0], [0], [1], [0, 0, 1, 1], [], []>} : vector<8x512xf32>, vector<512x64xf32>, vector<8x64xf32> -> vector<8x64xf32>
    %54 = vector.broadcast %1 : vector<1x64xf32> to vector<8x64xf32>
    %55 = arith.addf %53, %54 : vector<8x64xf32>
    %cst_34 = arith.constant 0.000000e+00 : f32
    %56 = vector.broadcast %cst_34 : f32 to vector<8x64xf32>
    %57 = arith.maximumf %55, %56 : vector<8x64xf32>
    %c8 = arith.constant 8 : index
    %c0_35 = arith.constant 0 : index
    %c0_36 = arith.constant 0 : index
    %58 = vector.load %arg1[%c8, %c0_35, %c0_36] : memref<9x8x512xf32, #tpu.memory_space<vmem>>, vector<1x8x512xf32>
    %59 = vector.shape_cast %58 : vector<1x8x512xf32> to vector<8x512xf32>
    %cst_37 = arith.constant dense<0.000000e+00> : vector<8x64xf32>
    %60 = tpu.matmul %59, %0, %cst_37 {dimension_numbers = #tpu.dot_dimension_numbers<[1], [0], [0], [1], [0, 0, 1, 1], [], []>} : vector<8x512xf32>, vector<512x64xf32>, vector<8x64xf32> -> vector<8x64xf32>
    %61 = vector.broadcast %1 : vector<1x64xf32> to vector<8x64xf32>
    %62 = arith.addf %60, %61 : vector<8x64xf32>
    %cst_38 = arith.constant 0.000000e+00 : f32
    %63 = vector.broadcast %cst_38 : f32 to vector<8x64xf32>
    %64 = arith.maximumf %62, %63 : vector<8x64xf32>
    %c0_39 = arith.constant 0 : index
    %c0_40 = arith.constant 0 : index
    %65 = vector.load %arg4[%c0_39, %c0_40] : memref<576x64xf32, #tpu.memory_space<vmem>>, vector<576x64xf32>
    %c0_41 = arith.constant 0 : index
    %c0_42 = arith.constant 0 : index
    %66 = vector.load %arg5[%c0_41, %c0_42] : memref<1x64xf32, #tpu.memory_space<vmem>>, vector<1x64xf32>
    %67 = vector.extract_strided_slice %65 {offsets = [0, 0], sizes = [64, 64], strides = [1, 1]} : vector<576x64xf32> to vector<64x64xf32>
    %cst_43 = arith.constant dense<0.000000e+00> : vector<8x64xf32>
    %68 = tpu.matmul %8, %67, %cst_43 {dimension_numbers = #tpu.dot_dimension_numbers<[1], [0], [0], [1], [0, 0, 1, 1], [], []>} : vector<8x64xf32>, vector<64x64xf32>, vector<8x64xf32> -> vector<8x64xf32>
    %69 = vector.broadcast %66 : vector<1x64xf32> to vector<8x64xf32>
    %70 = arith.addf %69, %68 : vector<8x64xf32>
    %71 = vector.extract_strided_slice %65 {offsets = [64, 0], sizes = [64, 64], strides = [1, 1]} : vector<576x64xf32> to vector<64x64xf32>
    %cst_44 = arith.constant dense<0.000000e+00> : vector<8x64xf32>
    %72 = tpu.matmul %15, %71, %cst_44 {dimension_numbers = #tpu.dot_dimension_numbers<[1], [0], [0], [1], [0, 0, 1, 1], [], []>} : vector<8x64xf32>, vector<64x64xf32>, vector<8x64xf32> -> vector<8x64xf32>
    %73 = arith.addf %70, %72 : vector<8x64xf32>
    %74 = vector.extract_strided_slice %65 {offsets = [128, 0], sizes = [64, 64], strides = [1, 1]} : vector<576x64xf32> to vector<64x64xf32>
    %cst_45 = arith.constant dense<0.000000e+00> : vector<8x64xf32>
    %75 = tpu.matmul %22, %74, %cst_45 {dimension_numbers = #tpu.dot_dimension_numbers<[1], [0], [0], [1], [0, 0, 1, 1], [], []>} : vector<8x64xf32>, vector<64x64xf32>, vector<8x64xf32> -> vector<8x64xf32>
    %76 = arith.addf %73, %75 : vector<8x64xf32>
    %77 = vector.extract_strided_slice %65 {offsets = [192, 0], sizes = [64, 64], strides = [1, 1]} : vector<576x64xf32> to vector<64x64xf32>
    %cst_46 = arith.constant dense<0.000000e+00> : vector<8x64xf32>
    %78 = tpu.matmul %29, %77, %cst_46 {dimension_numbers = #tpu.dot_dimension_numbers<[1], [0], [0], [1], [0, 0, 1, 1], [], []>} : vector<8x64xf32>, vector<64x64xf32>, vector<8x64xf32> -> vector<8x64xf32>
    %79 = arith.addf %76, %78 : vector<8x64xf32>
    %80 = vector.extract_strided_slice %65 {offsets = [256, 0], sizes = [64, 64], strides = [1, 1]} : vector<576x64xf32> to vector<64x64xf32>
    %cst_47 = arith.constant dense<0.000000e+00> : vector<8x64xf32>
    %81 = tpu.matmul %36, %80, %cst_47 {dimension_numbers = #tpu.dot_dimension_numbers<[1], [0], [0], [1], [0, 0, 1, 1], [], []>} : vector<8x64xf32>, vector<64x64xf32>, vector<8x64xf32> -> vector<8x64xf32>
    %82 = arith.addf %79, %81 : vector<8x64xf32>
    %83 = vector.extract_strided_slice %65 {offsets = [320, 0], sizes = [64, 64], strides = [1, 1]} : vector<576x64xf32> to vector<64x64xf32>
    %cst_48 = arith.constant dense<0.000000e+00> : vector<8x64xf32>
    %84 = tpu.matmul %43, %83, %cst_48 {dimension_numbers = #tpu.dot_dimension_numbers<[1], [0], [0], [1], [0, 0, 1, 1], [], []>} : vector<8x64xf32>, vector<64x64xf32>, vector<8x64xf32> -> vector<8x64xf32>
    %85 = arith.addf %82, %84 : vector<8x64xf32>
    %86 = vector.extract_strided_slice %65 {offsets = [384, 0], sizes = [64, 64], strides = [1, 1]} : vector<576x64xf32> to vector<64x64xf32>
    %cst_49 = arith.constant dense<0.000000e+00> : vector<8x64xf32>
    %87 = tpu.matmul %50, %86, %cst_49 {dimension_numbers = #tpu.dot_dimension_numbers<[1], [0], [0], [1], [0, 0, 1, 1], [], []>} : vector<8x64xf32>, vector<64x64xf32>, vector<8x64xf32> -> vector<8x64xf32>
    %88 = arith.addf %85, %87 : vector<8x64xf32>
    %89 = vector.extract_strided_slice %65 {offsets = [448, 0], sizes = [64, 64], strides = [1, 1]} : vector<576x64xf32> to vector<64x64xf32>
    %cst_50 = arith.constant dense<0.000000e+00> : vector<8x64xf32>
    %90 = tpu.matmul %57, %89, %cst_50 {dimension_numbers = #tpu.dot_dimension_numbers<[1], [0], [0], [1], [0, 0, 1, 1], [], []>} : vector<8x64xf32>, vector<64x64xf32>, vector<8x64xf32> -> vector<8x64xf32>
    %91 = arith.addf %88, %90 : vector<8x64xf32>
    %92 = vector.extract_strided_slice %65 {offsets = [512, 0], sizes = [64, 64], strides = [1, 1]} : vector<576x64xf32> to vector<64x64xf32>
    %cst_51 = arith.constant dense<0.000000e+00> : vector<8x64xf32>
    %93 = tpu.matmul %64, %92, %cst_51 {dimension_numbers = #tpu.dot_dimension_numbers<[1], [0], [0], [1], [0, 0, 1, 1], [], []>} : vector<8x64xf32>, vector<64x64xf32>, vector<8x64xf32> -> vector<8x64xf32>
    %94 = arith.addf %91, %93 : vector<8x64xf32>
    %cst_52 = arith.constant 0.000000e+00 : f32
    %95 = vector.broadcast %cst_52 : f32 to vector<8x64xf32>
    %96 = arith.maximumf %94, %95 : vector<8x64xf32>
    %c0_53 = arith.constant 0 : index
    %c0_54 = arith.constant 0 : index
    %97 = vector.load %arg6[%c0_53, %c0_54] : memref<64x256xf32, #tpu.memory_space<vmem>>, vector<64x256xf32>
    %c0_55 = arith.constant 0 : index
    %c0_56 = arith.constant 0 : index
    %98 = vector.load %arg7[%c0_55, %c0_56] : memref<1x256xf32, #tpu.memory_space<vmem>>, vector<1x256xf32>
    %cst_57 = arith.constant dense<0.000000e+00> : vector<8x256xf32>
    %99 = tpu.matmul %96, %97, %cst_57 {dimension_numbers = #tpu.dot_dimension_numbers<[1], [0], [0], [1], [0, 0, 1, 1], [], []>} : vector<8x64xf32>, vector<64x256xf32>, vector<8x256xf32> -> vector<8x256xf32>
    %100 = vector.broadcast %98 : vector<1x256xf32> to vector<8x256xf32>
    %101 = arith.addf %100, %99 : vector<8x256xf32>
    %cst_58 = arith.constant 0.000000e+00 : f32
    %102 = vector.broadcast %cst_58 : f32 to vector<8x256xf32>
    %103 = arith.maximumf %101, %102 : vector<8x256xf32>
    %c0_59 = arith.constant 0 : index
    %c0_60 = arith.constant 0 : index
    %104 = vector.load %arg8[%c0_59, %c0_60] : memref<256x448xf32, #tpu.memory_space<vmem>>, vector<256x448xf32>
    %cst_61 = arith.constant dense<0.000000e+00> : vector<8x448xf32>
    %105 = tpu.matmul %103, %104, %cst_61 {dimension_numbers = #tpu.dot_dimension_numbers<[1], [0], [0], [1], [0, 0, 1, 1], [], []>} : vector<8x256xf32>, vector<256x448xf32>, vector<8x448xf32> -> vector<8x448xf32>
    %c0_62 = arith.constant 0 : index
    %c0_63 = arith.constant 0 : index
    %106 = vector.load %arg9[%c0_62, %c0_63] : memref<1x448xf32, #tpu.memory_space<vmem>>, vector<1x448xf32>
    %107 = vector.broadcast %106 : vector<1x448xf32> to vector<8x448xf32>
    %108 = arith.addf %105, %107 : vector<8x448xf32>
    %cst_64 = arith.constant 0.000000e+00 : f32
    %109 = vector.broadcast %cst_64 : f32 to vector<8x448xf32>
    %110 = arith.maximumf %108, %109 : vector<8x448xf32>
    %c0_65 = arith.constant 0 : index
    %c0_66 = arith.constant 0 : index
    %111 = vector.load %arg10[%c0_65, %c0_66] : memref<448x896xf32, #tpu.memory_space<vmem>>, vector<448x896xf32>
    %cst_67 = arith.constant dense<0.000000e+00> : vector<8x896xf32>
    %112 = tpu.matmul %110, %111, %cst_67 {dimension_numbers = #tpu.dot_dimension_numbers<[1], [0], [0], [1], [0, 0, 1, 1], [], []>} : vector<8x448xf32>, vector<448x896xf32>, vector<8x896xf32> -> vector<8x896xf32>
    %c0_68 = arith.constant 0 : index
    %c0_69 = arith.constant 0 : index
    %113 = vector.load %arg11[%c0_68, %c0_69] : memref<1x896xf32, #tpu.memory_space<vmem>>, vector<1x896xf32>
    %114 = vector.broadcast %113 : vector<1x896xf32> to vector<8x896xf32>
    %115 = arith.addf %112, %114 : vector<8x896xf32>
    %cst_70 = arith.constant 0.000000e+00 : f32
    %116 = vector.broadcast %cst_70 : f32 to vector<8x896xf32>
    %117 = arith.maximumf %115, %116 : vector<8x896xf32>
    %118 = vector.extract_strided_slice %117 {offsets = [0, 0], sizes = [8, 448], strides = [1, 1]} : vector<8x896xf32> to vector<8x448xf32>
    %119 = arith.addf %110, %118 : vector<8x448xf32>
    %120 = vector.extract_strided_slice %117 {offsets = [0, 448], sizes = [8, 448], strides = [1, 1]} : vector<8x896xf32> to vector<8x448xf32>
    %121 = arith.addf %110, %120 : vector<8x448xf32>
    %122 = tpu.concatenate %119, %121 in 0 : vector<8x448xf32>, vector<8x448xf32> -> vector<16x448xf32>
    %c0_71 = arith.constant 0 : index
    %c0_72 = arith.constant 0 : index
    %123 = vector.load %arg12[%c0_71, %c0_72] : memref<448x128xf32, #tpu.memory_space<vmem>>, vector<448x128xf32>
    %cst_73 = arith.constant dense<0.000000e+00> : vector<16x128xf32>
    %124 = tpu.matmul %122, %123, %cst_73 {dimension_numbers = #tpu.dot_dimension_numbers<[1], [0], [0], [1], [0, 0, 1, 1], [], []>} : vector<16x448xf32>, vector<448x128xf32>, vector<16x128xf32> -> vector<16x128xf32>
    %c0_74 = arith.constant 0 : index
    %c0_75 = arith.constant 0 : index
    %125 = vector.load %arg13[%c0_74, %c0_75] : memref<1x128xf32, #tpu.memory_space<vmem>>, vector<1x128xf32>
    %126 = vector.broadcast %125 : vector<1x128xf32> to vector<16x128xf32>
    %127 = arith.addf %124, %126 : vector<16x128xf32>
    %128 = vector.extract_strided_slice %127 {offsets = [0, 0], sizes = [8, 128], strides = [1, 1]} : vector<16x128xf32> to vector<8x128xf32>
    %129 = vector.extract_strided_slice %127 {offsets = [8, 0], sizes = [8, 128], strides = [1, 1]} : vector<16x128xf32> to vector<8x128xf32>
    %130 = tpu.iota {dimensions = array<i32: 1>} : vector<8x128xi32>
    %c6_i32 = arith.constant 6 : i32
    %131 = vector.broadcast %c6_i32 : i32 to vector<8x128xi32>
    %132 = arith.cmpi slt, %130, %131 : vector<8x128xi32>
    %cst_76 = arith.constant -1.000000e+30 : f32
    %133 = vector.broadcast %cst_76 : f32 to vector<8x128xf32>
    %134 = arith.select %132, %129, %133 : vector<8x128xi1>, vector<8x128xf32>
    %cst_77 = arith.constant dense<0xFF800000> : vector<8xf32>
    %135 = vector.multi_reduction <maximumf>, %134, %cst_77 [1] : vector<8x128xf32> to vector<8xf32>
    %136 = vector.shape_cast %135 : vector<8xf32> to vector<8x1xf32>
    %137 = vector.broadcast %136 : vector<8x1xf32> to vector<8x128xf32>
    %138 = arith.subf %134, %137 : vector<8x128xf32>
    %139 = math.exp %138 : vector<8x128xf32>
    %cst_78 = arith.constant dense<0.000000e+00> : vector<8xf32>
    %140 = vector.multi_reduction <add>, %139, %cst_78 [1] : vector<8x128xf32> to vector<8xf32>
    %141 = vector.shape_cast %140 : vector<8xf32> to vector<8x1xf32>
    %142 = tpu.reciprocal %141 : vector<8x1xf32> -> vector<8x1xf32>
    %143 = vector.broadcast %142 : vector<8x1xf32> to vector<8x128xf32>
    %144 = arith.mulf %139, %143 : vector<8x128xf32>
    %c6_i32_79 = arith.constant 6 : i32
    %145 = vector.broadcast %c6_i32_79 : i32 to vector<8x128xi32>
    %146 = arith.cmpi slt, %130, %145 : vector<8x128xi32>
    %c8_i32 = arith.constant 8 : i32
    %147 = vector.broadcast %c8_i32 : i32 to vector<8x128xi32>
    %148 = arith.cmpi slt, %130, %147 : vector<8x128xi32>
    %cst_80 = arith.constant 0.000000e+00 : f32
    %149 = vector.broadcast %cst_80 : f32 to vector<8x128xf32>
    %150 = arith.select %148, %128, %149 : vector<8x128xi1>, vector<8x128xf32>
    %151 = arith.select %146, %144, %150 : vector<8x128xi1>, vector<8x128xf32>
    %c0_81 = arith.constant 0 : index
    %c0_82 = arith.constant 0 : index
    %152 = vector.load %arg14[%c0_81, %c0_82] : memref<8x128xf32, #tpu.memory_space<vmem>>, vector<8x128xf32>
    tpu.vector_store %arg14[%c0_81, %c0_82], %151 {strides = array<i32>} : memref<8x128xf32, #tpu.memory_space<vmem>>, vector<8x128xf32>,
    return
  }
  func.func @transform_0(%arg0: i32) -> (i32, i32, i32) {
    %c0_i32 = arith.constant 0 : i32
    %c0_i32_0 = arith.constant 0 : i32
    %c0_i32_1 = arith.constant 0 : i32
    return %c0_i32, %arg0, %c0_i32_0 : i32, i32, i32
  }
  func.func @transform_1(%arg0: i32) -> (i32, i32) {
    %c0_i32 = arith.constant 0 : i32
    %c0_i32_0 = arith.constant 0 : i32
    %c0_i32_1 = arith.constant 0 : i32
    return %c0_i32, %c0_i32_0 : i32, i32
  }
  func.func @transform_2(%arg0: i32) -> (i32, i32) {
    %c0_i32 = arith.constant 0 : i32
    %c0_i32_0 = arith.constant 0 : i32
    %c0_i32_1 = arith.constant 0 : i32
    return %c0_i32, %c0_i32_0 : i32, i32
  }
  func.func @transform_3(%arg0: i32) -> (i32, i32) {
    %c0_i32 = arith.constant 0 : i32
    %c0_i32_0 = arith.constant 0 : i32
    %c0_i32_1 = arith.constant 0 : i32
    return %c0_i32, %c0_i32_0 : i32, i32
  }
  func.func @transform_4(%arg0: i32) -> (i32, i32) {
    %c0_i32 = arith.constant 0 : i32
    %c0_i32_0 = arith.constant 0 : i32
    %c0_i32_1 = arith.constant 0 : i32
    return %c0_i32, %c0_i32_0 : i32, i32
  }
  func.func @transform_5(%arg0: i32) -> (i32, i32) {
    %c0_i32 = arith.constant 0 : i32
    %c0_i32_0 = arith.constant 0 : i32
    %c0_i32_1 = arith.constant 0 : i32
    return %c0_i32, %c0_i32_0 : i32, i32
  }
  func.func @transform_6(%arg0: i32) -> (i32, i32) {
    %c0_i32 = arith.constant 0 : i32
    %c0_i32_0 = arith.constant 0 : i32
    %c0_i32_1 = arith.constant 0 : i32
    return %c0_i32, %c0_i32_0 : i32, i32
  }
  func.func @transform_7(%arg0: i32) -> (i32, i32) {
    %c0_i32 = arith.constant 0 : i32
    %c0_i32_0 = arith.constant 0 : i32
    %c0_i32_1 = arith.constant 0 : i32
    return %c0_i32, %c0_i32_0 : i32, i32
  }
  func.func @transform_8(%arg0: i32) -> (i32, i32) {
    %c0_i32 = arith.constant 0 : i32
    %c0_i32_0 = arith.constant 0 : i32
    %c0_i32_1 = arith.constant 0 : i32
    return %c0_i32, %c0_i32_0 : i32, i32
  }
  func.func @transform_9(%arg0: i32) -> (i32, i32) {
    %c0_i32 = arith.constant 0 : i32
    %c0_i32_0 = arith.constant 0 : i32
    %c0_i32_1 = arith.constant 0 : i32
    return %c0_i32, %c0_i32_0 : i32, i32
  }
  func.func @transform_10(%arg0: i32) -> (i32, i32) {
    %c0_i32 = arith.constant 0 : i32
    %c0_i32_0 = arith.constant 0 : i32
    %c0_i32_1 = arith.constant 0 : i32
    return %c0_i32, %c0_i32_0 : i32, i32
  }
  func.func @transform_11(%arg0: i32) -> (i32, i32) {
    %c0_i32 = arith.constant 0 : i32
    %c0_i32_0 = arith.constant 0 : i32
    %c0_i32_1 = arith.constant 0 : i32
    return %c0_i32, %c0_i32_0 : i32, i32
  }
  func.func @transform_12(%arg0: i32) -> (i32, i32) {
    %c0_i32 = arith.constant 0 : i32
    %c0_i32_0 = arith.constant 0 : i32
    %c0_i32_1 = arith.constant 0 : i32
    return %c0_i32, %c0_i32_0 : i32, i32
  }
  func.func @transform_13(%arg0: i32) -> (i32, i32) {
    %c0_i32 = arith.constant 0 : i32
    %c0_i32_0 = arith.constant 0 : i32
    return %arg0, %c0_i32 : i32, i32
  }
}

</mosaic_0001>

<bundles_post_ra>
// kernel: policy_forward.2
= control target key start
LH: loop header
LB: loop body
LE: loop exit
PB: predicated region body
PF: predicated region fallthrough
CT: control target
= control target key end

     0   :  { %s1046_s12 = smov 0   ;;  %s1524_s0 = inlined_call_operand.vmem [shape: f32[1024,256], index: 0, kind: input, shape index: {}]   ;;  %s1525_s1 = inlined_call_operand.vmem [shape: f32[256,32], index: 1, kind: input, shape index: {}]   ;;  %s1526_s2 = inlined_call_operand.vmem [shape: f32[1,32], index: 2, kind: input, shape index: {}]   ;;  %s1527_s3 = inlined_call_operand.vmem [shape: f32[1024,32], index: 3, kind: output, shape index: {}]  }
   0x1 LB: > { %s914_s13 = sadd.s32 4294967295, %s1023_s12   ;;  %p918_p0 = scmp.ge.s32.totalorder %s1023_s12, 1  ;;  %s1023_s12 = sphi %s1046_s12, %s13_s12  }
   0x2   : > { %p139_p1 = scmp.lt.s32.totalorder %s1023_s12, 3 }
   0x4   : > { %p140_p2 = pnand %p918_p0, %p139_p1 }
   0x5   : > { %v305_v0 = vld [vmem:[%s1525_s1] sm:$0xff] (!%p140_p2)  ;;  %v306_v1 = vld [vmem:[%s1525_s1 + $0x8] sm:$0xff] (!%p140_p2)  ;;  %v307_v2 = vld [vmem:[%s1525_s1 + $0x10] sm:$0xff] (!%p140_p2)  ;;  %s919_s20 = sshll.u32 (!%p140_p2), %s914_s13, 6  ;;  %v1025_v3 = vmov (!%p140_p2), 0.0|0.0   ;;  %vm793_vm0 = vcmask (!%p140_p2), 261120  }
   0x6   : > { %143 = sbr.rel (%p140_p2) target bundleno = 412 (0x19c), region = 32  ;;  %928 = vmatprep.subr.bf16.mxu0 (!%p140_p2), %v1025_v3  ;;  %976 = vmatprep.subr.bf16.mxu1 (!%p140_p2), %v1025_v3  ;;  %v929_v4 = vpack.c.bf16 (!%p140_p2), %v306_v1, %v305_v0  ;;  %v308_v5 = vld [vmem:[%s1525_s1 + $0x18] sm:$0xff] (!%p140_p2)  ;;  %p165_p3 = scmp.lt.s32.totalorder (!%p140_p2), %s919_s20, 127  ;;  %v309_v7 = vld [vmem:[%s1525_s1 + $0x20] sm:$0xff] (!%p140_p2)  ;;  %v310_v8 = vld [vmem:[%s1525_s1 + $0x28] sm:$0xff] (!%p140_p2) }
   0x7   : > { %v932_v6 = vpack.c.bf16 (!%p140_p2), %v308_v5, %v307_v2  ;;  %v935_v9 = vpack.c.bf16 (!%p140_p2), %v310_v8, %v309_v7  ;;  %v311_v10 = vld [vmem:[%s1525_s1 + $0x30] sm:$0xff] (!%p140_p2)  ;;  %v312_v11 = vld [vmem:[%s1525_s1 + $0x38] sm:$0xff] (!%p140_p2)  ;;  %v313_v15 = vld [vmem:[%s1525_s1 + $0x40] sm:$0xff] (!%p140_p2) }
   0x8   : > { %930 = vmatpush1.bf16.msra.mxu0 (!%p140_p2), %v929_v4  ;;  %992 = vmatpush1.bf16.msra.mxu1 (!%p140_p2), %v929_v4  ;;  %v938_v13 = vpack.c.bf16 (!%p140_p2), %v312_v11, %v311_v10  ;;  %v314_v16 = vld [vmem:[%s1525_s1 + $0x48] sm:$0xff] (!%p140_p2)  ;;  %v315_v18 = vld [vmem:[%s1525_s1 + $0x50] sm:$0xff] (!%p140_p2)  ;;  %v316_v19 = vld [vmem:[%s1525_s1 + $0x58] sm:$0xff] (!%p140_p2) }
   0x9   : > { %931 = vmatprep.subr.bf16.mxu0 (!%p140_p2), %v1025_v3  ;;  %977 = vmatprep.subr.bf16.mxu1 (!%p140_p2), %v1025_v3  ;;  %v941_v17 = vpack.c.bf16 (!%p140_p2), %v314_v16, %v313_v15  ;;  %v944_v20 = vpack.c.bf16 (!%p140_p2), %v316_v19, %v315_v18  ;;  %v317_v21 = vld [vmem:[%s1525_s1 + $0x60] sm:$0xff] (!%p140_p2)  ;;  %v318_v22 = vld [vmem:[%s1525_s1 + $0x68] sm:$0xff] (!%p140_p2)  ;;  %v319_v24 = vld [vmem:[%s1525_s1 + $0x70] sm:$0xff] (!%p140_p2) }
   0xa   : > { %v947_v23 = vpack.c.bf16 (!%p140_p2), %v318_v22, %v317_v21  ;;  %v320_v25 = vld [vmem:[%s1525_s1 + $0x78] sm:$0xff] (!%p140_p2)  ;;  %v321_v27 = vld [vmem:[%s1525_s1 + $0x80] sm:$0xff] (!%p140_p2)  ;;  %v322_v28 = vld [vmem:[%s1525_s1 + $0x88] sm:$0xff] (!%p140_p2) }
   0xb   : > { %v950_v26 = vpack.c.bf16 (!%p140_p2), %v320_v25, %v319_v24  ;;  %v953_v29 = vpack.c.bf16 (!%p140_p2), %v322_v28, %v321_v27  ;;  %v323_v30 = vld [vmem:[%s1525_s1 + $0x90] sm:$0xff] (!%p140_p2)  ;;  %v324_v31 = vld [vmem:[%s1525_s1 + $0x98] sm:$0xff] (!%p140_p2)  ;;  %v325_v33 = vld [vmem:[%s1525_s1 + $0xa0] sm:$0xff] (!%p140_p2) }
   0xc   : > { %933 = vmatpush1.bf16.msra.mxu0 (!%p140_p2), %v932_v6  ;;  %993 = vmatpush1.bf16.msra.mxu1 (!%p140_p2), %v932_v6  ;;  %v956_v32 = vpack.c.bf16 (!%p140_p2), %v324_v31, %v323_v30  ;;  %v326_v34 = vld [vmem:[%s1525_s1 + $0xa8] sm:$0xff] (!%p140_p2)  ;;  %v327_v36 = vld [vmem:[%s1525_s1 + $0xb0] sm:$0xff] (!%p140_p2)  ;;  %v328_v37 = vld [vmem:[%s1525_s1 + $0xb8] sm:$0xff] (!%p140_p2) }
   0xd   : > { %s1529_s20 = smov (!%p165_p3, %s919_s20), 127  ;;  %934 = vmatprep.subr.bf16.mxu0 %v1025_v3  ;;  %978 = vmatprep.subr.bf16.mxu1 %v1025_v3  ;;  %v959_v35 = vpack.c.bf16 %v326_v34, %v325_v33  ;;  %v962_v38 = vpack.c.bf16 %v328_v37, %v327_v36  ;;  %v329_v39 = vld [vmem:[%s1525_s1 + $0xc0] sm:$0xff]  ;;  %v330_v40 = vld [vmem:[%s1525_s1 + $0xc8] sm:$0xff]  ;;  %v331_v42 = vld [vmem:[%s1525_s1 + $0xd0] sm:$0xff] }
   0xe   : > { %s927_s27 = sshll.u32 %s1529_s20, 4  ;;  %v965_v41 = vpack.c.bf16 %v330_v40, %v329_v39  ;;  %v332_v43 = vld [vmem:[%s1525_s1 + $0xd8] sm:$0xff]  ;;  %v333_v45 = vld [vmem:[%s1525_s1 + $0xe0] sm:$0xff]  ;;  %v334_v46 = vld [vmem:[%s1525_s1 + $0xe8] sm:$0xff]  ;;  %s923_s10 = sshll.u32 %s1529_s20, 3 }
   0xf   : > { %s1082_s30 = scalar_lea.vmem %s1524_s0, %s927_s27  ;;  %v968_v44 = vpack.c.bf16 %v332_v43, %v331_v42  ;;  %v971_v47 = vpack.c.bf16 %v334_v46, %v333_v45  ;;  %v335_v48 = vld [vmem:[%s1525_s1 + $0xf0] sm:$0xff]  ;;  %v336_v49 = vld [vmem:[%s1525_s1 + $0xf8] sm:$0xff] }
  0x10   : > { %v178_v12 = vld [vmem:[%s1082_s30 + $0x8] sm:$0xff]  ;;  %936 = vmatpush1.bf16.msra.mxu0 %v935_v9  ;;  %994 = vmatpush1.bf16.msra.mxu1 %v935_v9  ;;  %v974_v50 = vpack.c.bf16 %v336_v49, %v335_v48  ;;  %v177_v51 = vld [vmem:[%s1082_s30] sm:$0xff]  ;;  %v180_v53 = vld [vmem:[%s1082_s30 + $0x18] sm:$0xff] }
  0x11   : > { %v242_v14 = vld [vmem:[%s1082_s30 + $0x208] sm:$0xff]  ;;  %937 = vmatprep.subr.bf16.mxu0 %v1025_v3  ;;  %979 = vmatprep.subr.bf16.mxu1 %v1025_v3  ;;  %v241_v52 = vld [vmem:[%s1082_s30 + $0x200] sm:$0xff]  ;;  %v244_v54 = vld [vmem:[%s1082_s30 + $0x218] sm:$0xff] }
  0x12   : > { %408 = vmatprep.mubr.f32.mxu0 %v178_v12  ;;  %568 = vmatprep.mubr.f32.mxu1 %v242_v14  ;;  %v179_v55 = vld [vmem:[%s1082_s30 + $0x10] sm:$0xff]  ;;  %v182_v57 = vld [vmem:[%s1082_s30 + $0x28] sm:$0xff]  ;;  %v181_v59 = vld [vmem:[%s1082_s30 + $0x20] sm:$0xff] }
  0x13   : > { %v243_v56 = vld [vmem:[%s1082_s30 + $0x210] sm:$0xff]  ;;  %v246_v58 = vld [vmem:[%s1082_s30 + $0x228] sm:$0xff]  ;;  %v245_v60 = vld [vmem:[%s1082_s30 + $0x220] sm:$0xff] }
  0x14   : > { %939 = vmatpush1.bf16.msra.mxu0 %v938_v13  ;;  %995 = vmatpush1.bf16.msra.mxu1 %v938_v13  ;;  %v184_v61 = vld [vmem:[%s1082_s30 + $0x38] sm:$0xff]  ;;  %v183_v63 = vld [vmem:[%s1082_s30 + $0x30] sm:$0xff]  ;;  %v186_v1 = vld [vmem:[%s1082_s30 + $0x48] sm:$0xff] }
  0x15   : > { %940 = vmatprep.subr.bf16.mxu0 %v1025_v3  ;;  %980 = vmatprep.subr.bf16.mxu1 %v1025_v3  ;;  %v248_v62 = vld [vmem:[%s1082_s30 + $0x238] sm:$0xff]  ;;  %v247_v0 = vld [vmem:[%s1082_s30 + $0x230] sm:$0xff]  ;;  %v250_v2 = vld [vmem:[%s1082_s30 + $0x248] sm:$0xff] }
  0x16   : > { %v249_v4 = vld [vmem:[%s1082_s30 + $0x240] sm:$0xff]  ;;  %v188_v5 = vld [vmem:[%s1082_s30 + $0x58] sm:$0xff]  ;;  %v187_v7 = vld [vmem:[%s1082_s30 + $0x50] sm:$0xff] }
  0x17   : > { %v252_v6 = vld [vmem:[%s1082_s30 + $0x258] sm:$0xff]  ;;  %v251_v8 = vld [vmem:[%s1082_s30 + $0x250] sm:$0xff]  ;;  %v190_v9 = vld [vmem:[%s1082_s30 + $0x68] sm:$0xff] }
  0x18   : > { %942 = vmatpush1.bf16.msra.mxu0 %v941_v17  ;;  %996 = vmatpush1.bf16.msra.mxu1 %v941_v17  ;;  %v254_v10 = vld [vmem:[%s1082_s30 + $0x268] sm:$0xff]  ;;  %v189_v11 = vld [vmem:[%s1082_s30 + $0x60] sm:$0xff]  ;;  %v192_v13 = vld [vmem:[%s1082_s30 + $0x78] sm:$0xff] }
  0x19   : > { %943 = vmatprep.subr.bf16.mxu0 %v1025_v3  ;;  %981 = vmatprep.subr.bf16.mxu1 %v1025_v3  ;;  %v253_v12 = vld [vmem:[%s1082_s30 + $0x260] sm:$0xff]  ;;  %v256_v14 = vld [vmem:[%s1082_s30 + $0x278] sm:$0xff]  ;;  %v191_v15 = vld [vmem:[%s1082_s30 + $0x70] sm:$0xff] }
  0x1a   : > { %v255_v16 = vld [vmem:[%s1082_s30 + $0x270] sm:$0xff]  ;;  %v194_v17 = vld [vmem:[%s1082_s30 + $0x88] sm:$0xff]  ;;  %v193_v19 = vld [vmem:[%s1082_s30 + $0x80] sm:$0xff] }
  0x1b   : > { %v258_v18 = vld [vmem:[%s1082_s30 + $0x288] sm:$0xff]  ;;  %v196_v21 = vld [vmem:[%s1082_s30 + $0x98] sm:$0xff]  ;;  %v259_v24 = vld [vmem:[%s1082_s30 + $0x290] sm:$0xff] }
  0x1c   : > { %945 = vmatpush1.bf16.msra.mxu0 %v944_v20  ;;  %997 = vmatpush1.bf16.msra.mxu1 %v944_v20  ;;  %v257_v20 = vld [vmem:[%s1082_s30 + $0x280] sm:$0xff]  ;;  %v260_v22 = vld [vmem:[%s1082_s30 + $0x298] sm:$0xff]  ;;  %v198_v25 = vld [vmem:[%s1082_s30 + $0xa8] sm:$0xff] }
  0x1d   : > { %946 = vmatprep.subr.bf16.mxu0 %v1025_v3  ;;  %982 = vmatprep.subr.bf16.mxu1 %v1025_v3  ;;  %v197_v27 = vld [vmem:[%s1082_s30 + $0xa0] sm:$0xff]  ;;  %v264_v30 = vld [vmem:[%s1082_s30 + $0x2b8] sm:$0xff]  ;;  %v199_v31 = vld [vmem:[%s1082_s30 + $0xb0] sm:$0xff] }
  0x1e   : > { %v261_v28 = vld [vmem:[%s1082_s30 + $0x2a0] sm:$0xff]  ;;  %v202_v33 = vld [vmem:[%s1082_s30 + $0xc8] sm:$0xff]  ;;  %v204_v37 = vld [vmem:[%s1082_s30 + $0xd8] sm:$0xff] }
  0x1f   : > { %v266_v34 = vld [vmem:[%s1082_s30 + $0x2c8] sm:$0xff]  ;;  %v265_v36 = vld [vmem:[%s1082_s30 + $0x2c0] sm:$0xff]  ;;  %v203_v39 = vld [vmem:[%s1082_s30 + $0xd0] sm:$0xff] }
  0x20   : > { %948 = vmatpush1.bf16.msra.mxu0 %v947_v23  ;;  %998 = vmatpush1.bf16.msra.mxu1 %v947_v23  ;;  %v195_v23 = vld [vmem:[%s1082_s30 + $0x90] sm:$0xff]  ;;  %v270_v42 = vld [vmem:[%s1082_s30 + $0x2e8] sm:$0xff]  ;;  %v205_v43 = vld [vmem:[%s1082_s30 + $0xe0] sm:$0xff] }
  0x21   : > { %949 = vmatprep.subr.bf16.mxu0 %v1025_v3  ;;  %983 = vmatprep.subr.bf16.mxu1 %v1025_v3  ;;  %v267_v40 = vld [vmem:[%s1082_s30 + $0x2d0] sm:$0xff]  ;;  %v208_v45 = vld [vmem:[%s1082_s30 + $0xf8] sm:$0xff]  ;;  %v210_v49 = vld [vmem:[%s1082_s30 + $0x108] sm:$0xff] }
  0x22   : > { %v272_v46 = vld [vmem:[%s1082_s30 + $0x2f8] sm:$0xff]  ;;  %v271_v48 = vld [vmem:[%s1082_s30 + $0x2f0] sm:$0xff] }
  0x24   : > { %951 = vmatpush1.bf16.msra.mxu0 %v950_v26  ;;  %999 = vmatpush1.bf16.msra.mxu1 %v950_v26  ;;  %v262_v26 = vld [vmem:[%s1082_s30 + $0x2a8] sm:$0xff] }
  0x25   : > { %952 = vmatprep.subr.bf16.mxu0 %v1025_v3  ;;  %984 = vmatprep.subr.bf16.mxu1 %v1025_v3 }
  0x28   : > { %954 = vmatpush1.bf16.msra.mxu0 %v953_v29  ;;  %1000 = vmatpush1.bf16.msra.mxu1 %v953_v29  ;;  %v200_v29 = vld [vmem:[%s1082_s30 + $0xb8] sm:$0xff] }
  0x29   : > { %955 = vmatprep.subr.bf16.mxu0 %v1025_v3  ;;  %985 = vmatprep.subr.bf16.mxu1 %v1025_v3 }
  0x2c   : > { %957 = vmatpush1.bf16.msra.mxu0 %v956_v32  ;;  %1001 = vmatpush1.bf16.msra.mxu1 %v956_v32  ;;  %v263_v32 = vld [vmem:[%s1082_s30 + $0x2b0] sm:$0xff] }
  0x2d   : > { %958 = vmatprep.subr.bf16.mxu0 %v1025_v3  ;;  %986 = vmatprep.subr.bf16.mxu1 %v1025_v3 }
  0x30   : > { %960 = vmatpush1.bf16.msra.mxu0 %v959_v35  ;;  %1002 = vmatpush1.bf16.msra.mxu1 %v959_v35  ;;  %v201_v35 = vld [vmem:[%s1082_s30 + $0xc0] sm:$0xff] }
  0x31   : > { %961 = vmatprep.subr.bf16.mxu0 %v1025_v3  ;;  %987 = vmatprep.subr.bf16.mxu1 %v1025_v3 }
  0x34   : > { %963 = vmatpush1.bf16.msra.mxu0 %v962_v38  ;;  %1003 = vmatpush1.bf16.msra.mxu1 %v962_v38  ;;  %v268_v38 = vld [vmem:[%s1082_s30 + $0x2d8] sm:$0xff] }
  0x35   : > { %964 = vmatprep.subr.bf16.mxu0 %v1025_v3  ;;  %988 = vmatprep.subr.bf16.mxu1 %v1025_v3 }
  0x38   : > { %966 = vmatpush1.bf16.msra.mxu0 %v965_v41  ;;  %1004 = vmatpush1.bf16.msra.mxu1 %v965_v41  ;;  %v206_v41 = vld [vmem:[%s1082_s30 + $0xe8] sm:$0xff] }
  0x39   : > { %967 = vmatprep.subr.bf16.mxu0 %v1025_v3  ;;  %989 = vmatprep.subr.bf16.mxu1 %v1025_v3 }
  0x3c   : > { %969 = vmatpush1.bf16.msra.mxu0 %v968_v44  ;;  %1005 = vmatpush1.bf16.msra.mxu1 %v968_v44  ;;  %v269_v44 = vld [vmem:[%s1082_s30 + $0x2e0] sm:$0xff] }
  0x3d   : > { %970 = vmatprep.subr.bf16.mxu0 %v1025_v3  ;;  %990 = vmatprep.subr.bf16.mxu1 %v1025_v3 }
  0x40   : > { %972 = vmatpush1.bf16.msra.mxu0 %v971_v47  ;;  %1006 = vmatpush1.bf16.msra.mxu1 %v971_v47  ;;  %v207_v47 = vld [vmem:[%s1082_s30 + $0xf0] sm:$0xff] }
  0x41   : > { %973 = vmatprep.subr.bf16.mxu0 %v1025_v3  ;;  %991 = vmatprep.subr.bf16.mxu1 %v1025_v3  ;;  %v185_v3 = vld [vmem:[%s1082_s30 + $0x40] sm:$0xff] }
  0x44   : > { %975 = vmatpush1.bf16.msra.mxu0 %v974_v50  ;;  %1007 = vmatpush1.bf16.msra.mxu1 %v974_v50  ;;  %v274_v50 = vld [vmem:[%s1082_s30 + $0x308] sm:$0xff] }
  0x47   : > { %409 = vmatmul.mubr.f32.vlgmr.msra.gmra.mrb[0].mxu0 %v177_v51  ;;  %569 = vmatmul.mubr.f32.vlgmr.msra.gmra.mrb[0].mxu1 %v241_v52  ;;  %v209_v51 = vld [vmem:[%s1082_s30 + $0x100] sm:$0xff] }
  0x48   : > { %413 = vmatprep.mubr.f32.mxu0 %v180_v53  ;;  %573 = vmatprep.mubr.f32.mxu1 %v244_v54  ;;  %v273_v52 = vld [vmem:[%s1082_s30 + $0x300] sm:$0xff]  ;;  %v212_v53 = vld [vmem:[%s1082_s30 + $0x118] sm:$0xff] }
  0x49   : > { %v276_v54 = vld [vmem:[%s1082_s30 + $0x318] sm:$0xff] }
  0x4b   : > { %414 = vmatmul.mubr.f32.gmra.mrb[2].mxu0 %v179_v55  ;;  %574 = vmatmul.mubr.f32.gmra.mrb[2].mxu1 %v243_v56  ;;  %v211_v55 = vld [vmem:[%s1082_s30 + $0x110] sm:$0xff] }
  0x4c   : > { %418 = vmatprep.mubr.f32.mxu0 %v182_v57  ;;  %578 = vmatprep.mubr.f32.mxu1 %v246_v58  ;;  %v275_v56 = vld [vmem:[%s1082_s30 + $0x310] sm:$0xff]  ;;  %v214_v57 = vld [vmem:[%s1082_s30 + $0x128] sm:$0xff] }
  0x4d   : > { %v278_v58 = vld [vmem:[%s1082_s30 + $0x328] sm:$0xff] }
  0x4f   : > { %419 = vmatmul.mubr.f32.gmra.mrb[4].mxu0 %v181_v59  ;;  %579 = vmatmul.mubr.f32.gmra.mrb[4].mxu1 %v245_v60  ;;  %v213_v59 = vld [vmem:[%s1082_s30 + $0x120] sm:$0xff] }
  0x50   : > { %423 = vmatprep.mubr.f32.mxu0 %v184_v61  ;;  %583 = vmatprep.mubr.f32.mxu1 %v248_v62  ;;  %v277_v60 = vld [vmem:[%s1082_s30 + $0x320] sm:$0xff]  ;;  %v216_v61 = vld [vmem:[%s1082_s30 + $0x138] sm:$0xff] }
  0x51   : > { %v280_v62 = vld [vmem:[%s1082_s30 + $0x338] sm:$0xff] }
  0x53   : > { %424 = vmatmul.mubr.f32.gmra.mrb[6].mxu0 %v183_v63  ;;  %584 = vmatmul.mubr.f32.gmra.mrb[6].mxu1 %v247_v0  ;;  %v215_v63 = vld [vmem:[%s1082_s30 + $0x130] sm:$0xff] }
  0x54   : > { %428 = vmatprep.mubr.f32.mxu0 %v186_v1  ;;  %588 = vmatprep.mubr.f32.mxu1 %v250_v2  ;;  %v279_v0 = vld [vmem:[%s1082_s30 + $0x330] sm:$0xff]  ;;  %v218_v1 = vld [vmem:[%s1082_s30 + $0x148] sm:$0xff] }
  0x55   : > { %v282_v2 = vld [vmem:[%s1082_s30 + $0x348] sm:$0xff] }
  0x57   : > { %429 = vmatmul.mubr.f32.gmra.mrb[8].mxu0 %v185_v3  ;;  %589 = vmatmul.mubr.f32.gmra.mrb[8].mxu1 %v249_v4  ;;  %v217_v3 = vld [vmem:[%s1082_s30 + $0x140] sm:$0xff] }
  0x58   : > { %433 = vmatprep.mubr.f32.mxu0 %v188_v5  ;;  %593 = vmatprep.mubr.f32.mxu1 %v252_v6  ;;  %v281_v4 = vld [vmem:[%s1082_s30 + $0x340] sm:$0xff]  ;;  %v220_v5 = vld [vmem:[%s1082_s30 + $0x158] sm:$0xff] }
  0x59   : > { %v284_v6 = vld [vmem:[%s1082_s30 + $0x358] sm:$0xff] }
  0x5b   : > { %434 = vmatmul.mubr.f32.gmra.mrb[10].mxu0 %v187_v7  ;;  %594 = vmatmul.mubr.f32.gmra.mrb[10].mxu1 %v251_v8  ;;  %v219_v7 = vld [vmem:[%s1082_s30 + $0x150] sm:$0xff] }
  0x5c   : > { %438 = vmatprep.mubr.f32.mxu0 %v190_v9  ;;  %598 = vmatprep.mubr.f32.mxu1 %v254_v10  ;;  %v283_v8 = vld [vmem:[%s1082_s30 + $0x350] sm:$0xff]  ;;  %v222_v9 = vld [vmem:[%s1082_s30 + $0x168] sm:$0xff] }
  0x5d   : > { %v286_v10 = vld [vmem:[%s1082_s30 + $0x368] sm:$0xff] }
  0x5f   : > { %439 = vmatmul.mubr.f32.gmra.mrb[12].mxu0 %v189_v11  ;;  %599 = vmatmul.mubr.f32.gmra.mrb[12].mxu1 %v253_v12  ;;  %v221_v11 = vld [vmem:[%s1082_s30 + $0x160] sm:$0xff] }
  0x60   : > { %443 = vmatprep.mubr.f32.mxu0 %v192_v13  ;;  %603 = vmatprep.mubr.f32.mxu1 %v256_v14  ;;  %v285_v12 = vld [vmem:[%s1082_s30 + $0x360] sm:$0xff]  ;;  %v224_v13 = vld [vmem:[%s1082_s30 + $0x178] sm:$0xff] }
  0x61   : > { %v288_v14 = vld [vmem:[%s1082_s30 + $0x378] sm:$0xff] }
  0x63   : > { %444 = vmatmul.mubr.f32.gmra.mrb[14].mxu0 %v191_v15  ;;  %604 = vmatmul.mubr.f32.gmra.mrb[14].mxu1 %v255_v16  ;;  %v223_v15 = vld [vmem:[%s1082_s30 + $0x170] sm:$0xff] }
  0x64   : > { %448 = vmatprep.mubr.f32.mxu0 %v194_v17  ;;  %608 = vmatprep.mubr.f32.mxu1 %v258_v18  ;;  %v287_v16 = vld [vmem:[%s1082_s30 + $0x370] sm:$0xff]  ;;  %v226_v17 = vld [vmem:[%s1082_s30 + $0x188] sm:$0xff] }
  0x65   : > { %v290_v18 = vld [vmem:[%s1082_s30 + $0x388] sm:$0xff] }
  0x67   : > { %449 = vmatmul.mubr.f32.gmra.mrb[16].mxu0 %v193_v19  ;;  %609 = vmatmul.mubr.f32.gmra.mrb[16].mxu1 %v257_v20  ;;  %v225_v19 = vld [vmem:[%s1082_s30 + $0x180] sm:$0xff] }
  0x68   : > { %453 = vmatprep.mubr.f32.mxu0 %v196_v21  ;;  %613 = vmatprep.mubr.f32.mxu1 %v260_v22  ;;  %v289_v20 = vld [vmem:[%s1082_s30 + $0x380] sm:$0xff]  ;;  %v228_v21 = vld [vmem:[%s1082_s30 + $0x198] sm:$0xff] }
  0x69   : > { %v292_v22 = vld [vmem:[%s1082_s30 + $0x398] sm:$0xff] }
  0x6b   : > { %454 = vmatmul.mubr.f32.gmra.mrb[18].mxu0 %v195_v23  ;;  %614 = vmatmul.mubr.f32.gmra.mrb[18].mxu1 %v259_v24  ;;  %v227_v23 = vld [vmem:[%s1082_s30 + $0x190] sm:$0xff] }
  0x6c   : > { %458 = vmatprep.mubr.f32.mxu0 %v198_v25  ;;  %618 = vmatprep.mubr.f32.mxu1 %v262_v26  ;;  %v291_v24 = vld [vmem:[%s1082_s30 + $0x390] sm:$0xff]  ;;  %v230_v25 = vld [vmem:[%s1082_s30 + $0x1a8] sm:$0xff] }
  0x6d   : > { %v294_v26 = vld [vmem:[%s1082_s30 + $0x3a8] sm:$0xff] }
  0x6f   : > { %459 = vmatmul.mubr.f32.gmra.mrb[20].mxu0 %v197_v27  ;;  %619 = vmatmul.mubr.f32.gmra.mrb[20].mxu1 %v261_v28  ;;  %v229_v27 = vld [vmem:[%s1082_s30 + $0x1a0] sm:$0xff] }
  0x70   : > { %463 = vmatprep.mubr.f32.mxu0 %v200_v29  ;;  %623 = vmatprep.mubr.f32.mxu1 %v264_v30  ;;  %v293_v28 = vld [vmem:[%s1082_s30 + $0x3a0] sm:$0xff]  ;;  %v232_v29 = vld [vmem:[%s1082_s30 + $0x1b8] sm:$0xff] }
  0x71   : > { %v296_v30 = vld [vmem:[%s1082_s30 + $0x3b8] sm:$0xff] }
  0x73   : > { %464 = vmatmul.mubr.f32.gmra.mrb[22].mxu0 %v199_v31  ;;  %624 = vmatmul.mubr.f32.gmra.mrb[22].mxu1 %v263_v32  ;;  %v231_v31 = vld [vmem:[%s1082_s30 + $0x1b0] sm:$0xff] }
  0x74   : > { %468 = vmatprep.mubr.f32.mxu0 %v202_v33  ;;  %628 = vmatprep.mubr.f32.mxu1 %v266_v34  ;;  %v295_v32 = vld [vmem:[%s1082_s30 + $0x3b0] sm:$0xff]  ;;  %v234_v33 = vld [vmem:[%s1082_s30 + $0x1c8] sm:$0xff] }
  0x75   : > { %v298_v34 = vld [vmem:[%s1082_s30 + $0x3c8] sm:$0xff] }
  0x77   : > { %469 = vmatmul.mubr.f32.gmra.mrb[24].mxu0 %v201_v35  ;;  %629 = vmatmul.mubr.f32.gmra.mrb[24].mxu1 %v265_v36  ;;  %v233_v35 = vld [vmem:[%s1082_s30 + $0x1c0] sm:$0xff] }
  0x78   : > { %473 = vmatprep.mubr.f32.mxu0 %v204_v37  ;;  %633 = vmatprep.mubr.f32.mxu1 %v268_v38  ;;  %v297_v36 = vld [vmem:[%s1082_s30 + $0x3c0] sm:$0xff]  ;;  %v236_v37 = vld [vmem:[%s1082_s30 + $0x1d8] sm:$0xff] }
  0x79   : > { %v300_v38 = vld [vmem:[%s1082_s30 + $0x3d8] sm:$0xff] }
  0x7b   : > { %474 = vmatmul.mubr.f32.gmra.mrb[26].mxu0 %v203_v39  ;;  %634 = vmatmul.mubr.f32.gmra.mrb[26].mxu1 %v267_v40  ;;  %v235_v39 = vld [vmem:[%s1082_s30 + $0x1d0] sm:$0xff] }
  0x7c   : > { %478 = vmatprep.mubr.f32.mxu0 %v206_v41  ;;  %638 = vmatprep.mubr.f32.mxu1 %v270_v42  ;;  %v299_v40 = vld [vmem:[%s1082_s30 + $0x3d0] sm:$0xff]  ;;  %v238_v41 = vld [vmem:[%s1082_s30 + $0x1e8] sm:$0xff] }
  0x7d   : > { %v302_v42 = vld [vmem:[%s1082_s30 + $0x3e8] sm:$0xff] }
  0x7f   : > { %479 = vmatmul.mubr.f32.gmra.mrb[28].mxu0 %v205_v43  ;;  %639 = vmatmul.mubr.f32.gmra.mrb[28].mxu1 %v269_v44  ;;  %v237_v43 = vld [vmem:[%s1082_s30 + $0x1e0] sm:$0xff] }
  0x80   : > { %483 = vmatprep.mubr.f32.mxu0 %v208_v45  ;;  %643 = vmatprep.mubr.f32.mxu1 %v272_v46  ;;  %v301_v44 = vld [vmem:[%s1082_s30 + $0x3e0] sm:$0xff]  ;;  %v240_v45 = vld [vmem:[%s1082_s30 + $0x1f8] sm:$0xff] }
  0x81   : > { %v304_v46 = vld [vmem:[%s1082_s30 + $0x3f8] sm:$0xff] }
  0x83   : > { %484 = vmatmul.mubr.f32.gmra.mrb[30].mxu0 %v207_v47  ;;  %644 = vmatmul.mubr.f32.gmra.mrb[30].mxu1 %v271_v48  ;;  %v239_v47 = vld [vmem:[%s1082_s30 + $0x1f0] sm:$0xff] }
  0x84   : > { %488 = vmatprep.mubr.f32.mxu0 %v210_v49  ;;  %648 = vmatprep.mubr.f32.mxu1 %v274_v50  ;;  %v303_v48 = vld [vmem:[%s1082_s30 + $0x3f0] sm:$0xff]  ;;  %v1321_v49 = vld [vmem:[%s1526_s2] ss:$0 sm:$0xff]  ;;  %s1329_s30 = scalar_lea.vmem %s1527_s3, %s923_s10 }
  0x87   : > { %489 = vmatmul.mubr.f32.gmra.mrb[32].mxu0 %v209_v51  ;;  %649 = vmatmul.mubr.f32.gmra.mrb[32].mxu1 %v273_v52 }
  0x88   : > { %493 = vmatprep.mubr.f32.mxu0 %v212_v53  ;;  %653 = vmatprep.mubr.f32.mxu1 %v276_v54 }
  0x8b   : > { %494 = vmatmul.mubr.f32.gmra.mrb[34].mxu0 %v211_v55  ;;  %654 = vmatmul.mubr.f32.gmra.mrb[34].mxu1 %v275_v56 }
  0x8c   : > { %498 = vmatprep.mubr.f32.mxu0 %v214_v57  ;;  %658 = vmatprep.mubr.f32.mxu1 %v278_v58 }
  0x8f   : > { %499 = vmatmul.mubr.f32.gmra.mrb[36].mxu0 %v213_v59  ;;  %659 = vmatmul.mubr.f32.gmra.mrb[36].mxu1 %v277_v60 }
  0x90   : > { %503 = vmatprep.mubr.f32.mxu0 %v216_v61  ;;  %663 = vmatprep.mubr.f32.mxu1 %v280_v62 }
  0x93   : > { %504 = vmatmul.mubr.f32.gmra.mrb[38].mxu0 %v215_v63  ;;  %664 = vmatmul.mubr.f32.gmra.mrb[38].mxu1 %v279_v0 }
  0x94   : > { %508 = vmatprep.mubr.f32.mxu0 %v218_v1  ;;  %668 = vmatprep.mubr.f32.mxu1 %v282_v2 }
  0x97   : > { %509 = vmatmul.mubr.f32.gmra.mrb[40].mxu0 %v217_v3  ;;  %669 = vmatmul.mubr.f32.gmra.mrb[40].mxu1 %v281_v4 }
  0x98   : > { %513 = vmatprep.mubr.f32.mxu0 %v220_v5  ;;  %673 = vmatprep.mubr.f32.mxu1 %v284_v6 }
  0x9b   : > { %514 = vmatmul.mubr.f32.gmra.mrb[42].mxu0 %v219_v7  ;;  %674 = vmatmul.mubr.f32.gmra.mrb[42].mxu1 %v283_v8 }
  0x9c   : > { %518 = vmatprep.mubr.f32.mxu0 %v222_v9  ;;  %678 = vmatprep.mubr.f32.mxu1 %v286_v10 }
  0x9f   : > { %519 = vmatmul.mubr.f32.gmra.mrb[44].mxu0 %v221_v11  ;;  %679 = vmatmul.mubr.f32.gmra.mrb[44].mxu1 %v285_v12 }
  0xa0   : > { %523 = vmatprep.mubr.f32.mxu0 %v224_v13  ;;  %683 = vmatprep.mubr.f32.mxu1 %v288_v14 }
  0xa3   : > { %524 = vmatmul.mubr.f32.gmra.mrb[46].mxu0 %v223_v15  ;;  %684 = vmatmul.mubr.f32.gmra.mrb[46].mxu1 %v287_v16 }
  0xa4   : > { %528 = vmatprep.mubr.f32.mxu0 %v226_v17  ;;  %688 = vmatprep.mubr.f32.mxu1 %v290_v18 }
  0xa7   : > { %529 = vmatmul.mubr.f32.gmra.mrb[48].mxu0 %v225_v19  ;;  %689 = vmatmul.mubr.f32.gmra.mrb[48].mxu1 %v289_v20 }
  0xa8   : > { %533 = vmatprep.mubr.f32.mxu0 %v228_v21  ;;  %693 = vmatprep.mubr.f32.mxu1 %v292_v22 }
  0xab   : > { %534 = vmatmul.mubr.f32.gmra.mrb[50].mxu0 %v227_v23  ;;  %694 = vmatmul.mubr.f32.gmra.mrb[50].mxu1 %v291_v24 }
  0xac   : > { %538 = vmatprep.mubr.f32.mxu0 %v230_v25  ;;  %698 = vmatprep.mubr.f32.mxu1 %v294_v26 }
  0xaf   : > { %539 = vmatmul.mubr.f32.gmra.mrb[52].mxu0 %v229_v27  ;;  %699 = vmatmul.mubr.f32.gmra.mrb[52].mxu1 %v293_v28 }
  0xb0   : > { %543 = vmatprep.mubr.f32.mxu0 %v232_v29  ;;  %703 = vmatprep.mubr.f32.mxu1 %v296_v30 }
  0xb3   : > { %544 = vmatmul.mubr.f32.gmra.mrb[54].mxu0 %v231_v31  ;;  %704 = vmatmul.mubr.f32.gmra.mrb[54].mxu1 %v295_v32 }
  0xb4   : > { %548 = vmatprep.mubr.f32.mxu0 %v234_v33  ;;  %708 = vmatprep.mubr.f32.mxu1 %v298_v34 }
  0xb7   : > { %549 = vmatmul.mubr.f32.gmra.mrb[56].mxu0 %v233_v35  ;;  %709 = vmatmul.mubr.f32.gmra.mrb[56].mxu1 %v297_v36 }
  0xb8   : > { %553 = vmatprep.mubr.f32.mxu0 %v236_v37  ;;  %713 = vmatprep.mubr.f32.mxu1 %v300_v38 }
  0xbb   : > { %554 = vmatmul.mubr.f32.gmra.mrb[58].mxu0 %v235_v39  ;;  %714 = vmatmul.mubr.f32.gmra.mrb[58].mxu1 %v299_v40 }
  0xbc   : > { %558 = vmatprep.mubr.f32.mxu0 %v238_v41  ;;  %718 = vmatprep.mubr.f32.mxu1 %v302_v42 }
  0xbf   : > { %559 = vmatmul.mubr.f32.gmra.mrb[60].mxu0 %v237_v43  ;;  %719 = vmatmul.mubr.f32.gmra.mrb[60].mxu1 %v301_v44 }
  0xc0   : > { %563 = vmatprep.mubr.f32.mxu0 %v240_v45  ;;  %723 = vmatprep.mubr.f32.mxu1 %v304_v46 }
  0xc3   : > { %564 = vmatmul.mubr.f32.gmra.mrb[62].mxu0 %v239_v47  ;;  %724 = vmatmul.mubr.f32.gmra.mrb[62].mxu1 %v303_v48 }
 0x11a   : > { %v410_v50 = vpop.f32.mrb[0].mxu0  ;;  %v570_v51 = vpop.f32.mrb[0].mxu1 }
 0x11b   : > { %v411_v52 = vadd.f32 %v1321_v49, %v410_v50  ;;  %v571_v53 = vadd.f32 %v1321_v49, %v570_v51  ;;  %v412_v54 = vpop.f32.mrb[1].mxu0  ;;  %v572_v55 = vpop.f32.mrb[1].mxu1 }
 0x11d   : > { %v729_v56 = vmax.f32 %v411_v52, 0.0  ;;  %v761_v57 = vmax.f32 %v571_v53, 0.0 }
 0x11e   : > { %v415_v58 = vpop.f32.mrb[2].mxu0  ;;  %v575_v59 = vpop.f32.mrb[2].mxu1 }
 0x11f   : > { %794 = vst.msk [vmem:[%s1329_s30] sm:$0xff] %vm793_vm0, %v729_v56  ;;  %826 = vst.msk [vmem:[%s1329_s30 + $0x100] sm:$0xff] %vm793_vm0, %v761_v57  ;;  %v416_v60 = vadd.f32 %v1321_v49, %v415_v58  ;;  %v576_v61 = vadd.f32 %v1321_v49, %v575_v59  ;;  %v417_v62 = vpop.f32.mrb[3].mxu0  ;;  %v577_v63 = vpop.f32.mrb[3].mxu1 }
 0x121   : > { %v730_v0 = vmax.f32 %v416_v60, 0.0  ;;  %v762_v1 = vmax.f32 %v576_v61, 0.0 }
 0x122   : > { %v420_v2 = vpop.f32.mrb[4].mxu0  ;;  %v580_v3 = vpop.f32.mrb[4].mxu1 }
 0x123   : > { %795 = vst.msk [vmem:[%s1329_s30 + $0x8] sm:$0xff] %vm793_vm0, %v730_v0  ;;  %827 = vst.msk [vmem:[%s1329_s30 + $0x108] sm:$0xff] %vm793_vm0, %v762_v1  ;;  %v421_v4 = vadd.f32 %v1321_v49, %v420_v2  ;;  %v581_v5 = vadd.f32 %v1321_v49, %v580_v3  ;;  %v422_v6 = vpop.f32.mrb[5].mxu0  ;;  %v582_v7 = vpop.f32.mrb[5].mxu1 }
 0x125   : > { %v731_v8 = vmax.f32 %v421_v4, 0.0  ;;  %v763_v9 = vmax.f32 %v581_v5, 0.0 }
 0x126   : > { %v425_v10 = vpop.f32.mrb[6].mxu0  ;;  %v585_v11 = vpop.f32.mrb[6].mxu1 }
 0x127   : > { %796 = vst.msk [vmem:[%s1329_s30 + $0x10] sm:$0xff] %vm793_vm0, %v731_v8  ;;  %828 = vst.msk [vmem:[%s1329_s30 + $0x110] sm:$0xff] %vm793_vm0, %v763_v9  ;;  %v426_v12 = vadd.f32 %v1321_v49, %v425_v10  ;;  %v586_v13 = vadd.f32 %v1321_v49, %v585_v11  ;;  %v427_v14 = vpop.f32.mrb[7].mxu0  ;;  %v587_v15 = vpop.f32.mrb[7].mxu1 }
 0x129   : > { %v732_v16 = vmax.f32 %v426_v12, 0.0  ;;  %v764_v17 = vmax.f32 %v586_v13, 0.0 }
 0x12a   : > { %v430_v18 = vpop.f32.mrb[8].mxu0  ;;  %v590_v19 = vpop.f32.mrb[8].mxu1 }
 0x12b   : > { %797 = vst.msk [vmem:[%s1329_s30 + $0x18] sm:$0xff] %vm793_vm0, %v732_v16  ;;  %829 = vst.msk [vmem:[%s1329_s30 + $0x118] sm:$0xff] %vm793_vm0, %v764_v17  ;;  %v431_v20 = vadd.f32 %v1321_v49, %v430_v18  ;;  %v591_v21 = vadd.f32 %v1321_v49, %v590_v19  ;;  %v432_v22 = vpop.f32.mrb[9].mxu0  ;;  %v592_v23 = vpop.f32.mrb[9].mxu1 }
 0x12d   : > { %v733_v24 = vmax.f32 %v431_v20, 0.0  ;;  %v765_v25 = vmax.f32 %v591_v21, 0.0 }
 0x12e   : > { %v435_v26 = vpop.f32.mrb[10].mxu0  ;;  %v595_v27 = vpop.f32.mrb[10].mxu1 }
 0x12f   : > { %798 = vst.msk [vmem:[%s1329_s30 + $0x20] sm:$0xff] %vm793_vm0, %v733_v24  ;;  %830 = vst.msk [vmem:[%s1329_s30 + $0x120] sm:$0xff] %vm793_vm0, %v765_v25  ;;  %v436_v28 = vadd.f32 %v1321_v49, %v435_v26  ;;  %v596_v29 = vadd.f32 %v1321_v49, %v595_v27  ;;  %v437_v30 = vpop.f32.mrb[11].mxu0  ;;  %v597_v31 = vpop.f32.mrb[11].mxu1 }
 0x131   : > { %v734_v32 = vmax.f32 %v436_v28, 0.0  ;;  %v766_v33 = vmax.f32 %v596_v29, 0.0 }
 0x132   : > { %v440_v34 = vpop.f32.mrb[12].mxu0  ;;  %v600_v35 = vpop.f32.mrb[12].mxu1 }
 0x133   : > { %799 = vst.msk [vmem:[%s1329_s30 + $0x28] sm:$0xff] %vm793_vm0, %v734_v32  ;;  %831 = vst.msk [vmem:[%s1329_s30 + $0x128] sm:$0xff] %vm793_vm0, %v766_v33  ;;  %v441_v36 = vadd.f32 %v1321_v49, %v440_v34  ;;  %v601_v37 = vadd.f32 %v1321_v49, %v600_v35  ;;  %v442_v38 = vpop.f32.mrb[13].mxu0  ;;  %v602_v39 = vpop.f32.mrb[13].mxu1 }
 0x135   : > { %v735_v40 = vmax.f32 %v441_v36, 0.0  ;;  %v767_v41 = vmax.f32 %v601_v37, 0.0 }
 0x136   : > { %v445_v42 = vpop.f32.mrb[14].mxu0  ;;  %v605_v43 = vpop.f32.mrb[14].mxu1 }
 0x137   : > { %800 = vst.msk [vmem:[%s1329_s30 + $0x30] sm:$0xff] %vm793_vm0, %v735_v40  ;;  %832 = vst.msk [vmem:[%s1329_s30 + $0x130] sm:$0xff] %vm793_vm0, %v767_v41  ;;  %v446_v44 = vadd.f32 %v1321_v49, %v445_v42  ;;  %v606_v45 = vadd.f32 %v1321_v49, %v605_v43  ;;  %v447_v46 = vpop.f32.mrb[15].mxu0  ;;  %v607_v47 = vpop.f32.mrb[15].mxu1 }
 0x139   : > { %v736_v48 = vmax.f32 %v446_v44, 0.0  ;;  %v768_v50 = vmax.f32 %v606_v45, 0.0 }
 0x13a   : > { %v450_v51 = vpop.f32.mrb[16].mxu0  ;;  %v610_v52 = vpop.f32.mrb[16].mxu1 }
 0x13b   : > { %801 = vst.msk [vmem:[%s1329_s30 + $0x38] sm:$0xff] %vm793_vm0, %v736_v48  ;;  %833 = vst.msk [vmem:[%s1329_s30 + $0x138] sm:$0xff] %vm793_vm0, %v768_v50  ;;  %v451_v53 = vadd.f32 %v1321_v49, %v450_v51  ;;  %v611_v54 = vadd.f32 %v1321_v49, %v610_v52  ;;  %v452_v55 = vpop.f32.mrb[17].mxu0  ;;  %v612_v56 = vpop.f32.mrb[17].mxu1 }
 0x13d   : > { %v737_v57 = vmax.f32 %v451_v53, 0.0  ;;  %v769_v58 = vmax.f32 %v611_v54, 0.0 }
 0x13e   : > { %v455_v59 = vpop.f32.mrb[18].mxu0  ;;  %v615_v60 = vpop.f32.mrb[18].mxu1 }
 0x13f   : > { %802 = vst.msk [vmem:[%s1329_s30 + $0x40] sm:$0xff] %vm793_vm0, %v737_v57  ;;  %834 = vst.msk [vmem:[%s1329_s30 + $0x140] sm:$0xff] %vm793_vm0, %v769_v58  ;;  %v456_v61 = vadd.f32 %v1321_v49, %v455_v59  ;;  %v616_v62 = vadd.f32 %v1321_v49, %v615_v60  ;;  %v457_v63 = vpop.f32.mrb[19].mxu0  ;;  %v617_v0 = vpop.f32.mrb[19].mxu1 }
 0x141   : > { %v738_v1 = vmax.f32 %v456_v61, 0.0  ;;  %v770_v2 = vmax.f32 %v616_v62, 0.0 }
 0x142   : > { %v460_v3 = vpop.f32.mrb[20].mxu0  ;;  %v620_v4 = vpop.f32.mrb[20].mxu1 }
 0x143   : > { %803 = vst.msk [vmem:[%s1329_s30 + $0x48] sm:$0xff] %vm793_vm0, %v738_v1  ;;  %835 = vst.msk [vmem:[%s1329_s30 + $0x148] sm:$0xff] %vm793_vm0, %v770_v2  ;;  %v461_v5 = vadd.f32 %v1321_v49, %v460_v3  ;;  %v621_v6 = vadd.f32 %v1321_v49, %v620_v4  ;;  %v462_v7 = vpop.f32.mrb[21].mxu0  ;;  %v622_v8 = vpop.f32.mrb[21].mxu1 }
 0x145   : > { %v739_v9 = vmax.f32 %v461_v5, 0.0  ;;  %v771_v10 = vmax.f32 %v621_v6, 0.0 }
 0x146   : > { %v465_v11 = vpop.f32.mrb[22].mxu0  ;;  %v625_v12 = vpop.f32.mrb[22].mxu1 }
 0x147   : > { %804 = vst.msk [vmem:[%s1329_s30 + $0x50] sm:$0xff] %vm793_vm0, %v739_v9  ;;  %836 = vst.msk [vmem:[%s1329_s30 + $0x150] sm:$0xff] %vm793_vm0, %v771_v10  ;;  %v466_v13 = vadd.f32 %v1321_v49, %v465_v11  ;;  %v626_v14 = vadd.f32 %v1321_v49, %v625_v12  ;;  %v467_v15 = vpop.f32.mrb[23].mxu0  ;;  %v627_v16 = vpop.f32.mrb[23].mxu1 }
 0x149   : > { %v740_v17 = vmax.f32 %v466_v13, 0.0  ;;  %v772_v18 = vmax.f32 %v626_v14, 0.0 }
 0x14a   : > { %v470_v19 = vpop.f32.mrb[24].mxu0  ;;  %v630_v20 = vpop.f32.mrb[24].mxu1 }
 0x14b   : > { %805 = vst.msk [vmem:[%s1329_s30 + $0x58] sm:$0xff] %vm793_vm0, %v740_v17  ;;  %837 = vst.msk [vmem:[%s1329_s30 + $0x158] sm:$0xff] %vm793_vm0, %v772_v18  ;;  %v471_v21 = vadd.f32 %v1321_v49, %v470_v19  ;;  %v631_v22 = vadd.f32 %v1321_v49, %v630_v20  ;;  %v472_v23 = vpop.f32.mrb[25].mxu0  ;;  %v632_v24 = vpop.f32.mrb[25].mxu1 }
 0x14d   : > { %v741_v25 = vmax.f32 %v471_v21, 0.0  ;;  %v773_v26 = vmax.f32 %v631_v22, 0.0 }
 0x14e   : > { %v475_v27 = vpop.f32.mrb[26].mxu0  ;;  %v635_v28 = vpop.f32.mrb[26].mxu1 }
 0x14f   : > { %806 = vst.msk [vmem:[%s1329_s30 + $0x60] sm:$0xff] %vm793_vm0, %v741_v25  ;;  %838 = vst.msk [vmem:[%s1329_s30 + $0x160] sm:$0xff] %vm793_vm0, %v773_v26  ;;  %v476_v29 = vadd.f32 %v1321_v49, %v475_v27  ;;  %v636_v30 = vadd.f32 %v1321_v49, %v635_v28  ;;  %v477_v31 = vpop.f32.mrb[27].mxu0  ;;  %v637_v32 = vpop.f32.mrb[27].mxu1 }
 0x151   : > { %v742_v33 = vmax.f32 %v476_v29, 0.0  ;;  %v774_v34 = vmax.f32 %v636_v30, 0.0 }
 0x152   : > { %v480_v35 = vpop.f32.mrb[28].mxu0  ;;  %v640_v36 = vpop.f32.mrb[28].mxu1 }
 0x153   : > { %807 = vst.msk [vmem:[%s1329_s30 + $0x68] sm:$0xff] %vm793_vm0, %v742_v33  ;;  %839 = vst.msk [vmem:[%s1329_s30 + $0x168] sm:$0xff] %vm793_vm0, %v774_v34  ;;  %v481_v37 = vadd.f32 %v1321_v49, %v480_v35  ;;  %v641_v38 = vadd.f32 %v1321_v49, %v640_v36  ;;  %v482_v39 = vpop.f32.mrb[29].mxu0  ;;  %v642_v40 = vpop.f32.mrb[29].mxu1 }
 0x155   : > { %v743_v41 = vmax.f32 %v481_v37, 0.0  ;;  %v775_v42 = vmax.f32 %v641_v38, 0.0 }
 0x156   : > { %v485_v43 = vpop.f32.mrb[30].mxu0  ;;  %v645_v44 = vpop.f32.mrb[30].mxu1 }
 0x157   : > { %808 = vst.msk [vmem:[%s1329_s30 + $0x70] sm:$0xff] %vm793_vm0, %v743_v41  ;;  %840 = vst.msk [vmem:[%s1329_s30 + $0x170] sm:$0xff] %vm793_vm0, %v775_v42  ;;  %v486_v45 = vadd.f32 %v1321_v49, %v485_v43  ;;  %v646_v46 = vadd.f32 %v1321_v49, %v645_v44  ;;  %v487_v47 = vpop.f32.mrb[31].mxu0  ;;  %v647_v48 = vpop.f32.mrb[31].mxu1 }
 0x159   : > { %v744_v50 = vmax.f32 %v486_v45, 0.0  ;;  %v776_v51 = vmax.f32 %v646_v46, 0.0 }
 0x15a   : > { %v490_v52 = vpop.f32.mrb[32].mxu0  ;;  %v650_v53 = vpop.f32.mrb[32].mxu1 }
 0x15b   : > { %809 = vst.msk [vmem:[%s1329_s30 + $0x78] sm:$0xff] %vm793_vm0, %v744_v50  ;;  %841 = vst.msk [vmem:[%s1329_s30 + $0x178] sm:$0xff] %vm793_vm0, %v776_v51  ;;  %v491_v54 = vadd.f32 %v1321_v49, %v490_v52  ;;  %v651_v55 = vadd.f32 %v1321_v49, %v650_v53  ;;  %v492_v56 = vpop.f32.mrb[33].mxu0  ;;  %v652_v57 = vpop.f32.mrb[33].mxu1 }
 0x15d   : > { %v745_v58 = vmax.f32 %v491_v54, 0.0  ;;  %v777_v59 = vmax.f32 %v651_v55, 0.0 }
 0x15e   : > { %v495_v60 = vpop.f32.mrb[34].mxu0  ;;  %v655_v61 = vpop.f32.mrb[34].mxu1 }
 0x15f   : > { %810 = vst.msk [vmem:[%s1329_s30 + $0x80] sm:$0xff] %vm793_vm0, %v745_v58  ;;  %842 = vst.msk [vmem:[%s1329_s30 + $0x180] sm:$0xff] %vm793_vm0, %v777_v59  ;;  %v496_v62 = vadd.f32 %v1321_v49, %v495_v60  ;;  %v656_v63 = vadd.f32 %v1321_v49, %v655_v61  ;;  %v497_v0 = vpop.f32.mrb[35].mxu0  ;;  %v657_v1 = vpop.f32.mrb[35].mxu1 }
 0x161   : > { %v746_v2 = vmax.f32 %v496_v62, 0.0  ;;  %v778_v3 = vmax.f32 %v656_v63, 0.0 }
 0x162   : > { %v500_v4 = vpop.f32.mrb[36].mxu0  ;;  %v660_v5 = vpop.f32.mrb[36].mxu1 }
 0x163   : > { %811 = vst.msk [vmem:[%s1329_s30 + $0x88] sm:$0xff] %vm793_vm0, %v746_v2  ;;  %843 = vst.msk [vmem:[%s1329_s30 + $0x188] sm:$0xff] %vm793_vm0, %v778_v3  ;;  %v501_v6 = vadd.f32 %v1321_v49, %v500_v4  ;;  %v661_v7 = vadd.f32 %v1321_v49, %v660_v5  ;;  %v502_v8 = vpop.f32.mrb[37].mxu0  ;;  %v662_v9 = vpop.f32.mrb[37].mxu1 }
 0x165   : > { %v747_v10 = vmax.f32 %v501_v6, 0.0  ;;  %v779_v11 = vmax.f32 %v661_v7, 0.0 }
 0x166   : > { %v505_v12 = vpop.f32.mrb[38].mxu0  ;;  %v665_v13 = vpop.f32.mrb[38].mxu1 }
 0x167   : > { %812 = vst.msk [vmem:[%s1329_s30 + $0x90] sm:$0xff] %vm793_vm0, %v747_v10  ;;  %844 = vst.msk [vmem:[%s1329_s30 + $0x190] sm:$0xff] %vm793_vm0, %v779_v11  ;;  %v506_v14 = vadd.f32 %v1321_v49, %v505_v12  ;;  %v666_v15 = vadd.f32 %v1321_v49, %v665_v13  ;;  %v507_v16 = vpop.f32.mrb[39].mxu0  ;;  %v667_v17 = vpop.f32.mrb[39].mxu1 }
 0x169   : > { %v748_v18 = vmax.f32 %v506_v14, 0.0  ;;  %v780_v19 = vmax.f32 %v666_v15, 0.0 }
 0x16a   : > { %v510_v20 = vpop.f32.mrb[40].mxu0  ;;  %v670_v21 = vpop.f32.mrb[40].mxu1 }
 0x16b   : > { %813 = vst.msk [vmem:[%s1329_s30 + $0x98] sm:$0xff] %vm793_vm0, %v748_v18  ;;  %845 = vst.msk [vmem:[%s1329_s30 + $0x198] sm:$0xff] %vm793_vm0, %v780_v19  ;;  %v511_v22 = vadd.f32 %v1321_v49, %v510_v20  ;;  %v671_v23 = vadd.f32 %v1321_v49, %v670_v21  ;;  %v512_v24 = vpop.f32.mrb[41].mxu0  ;;  %v672_v25 = vpop.f32.mrb[41].mxu1 }
 0x16d   : > { %v749_v26 = vmax.f32 %v511_v22, 0.0  ;;  %v781_v27 = vmax.f32 %v671_v23, 0.0 }
 0x16e   : > { %v515_v28 = vpop.f32.mrb[42].mxu0  ;;  %v675_v29 = vpop.f32.mrb[42].mxu1 }
 0x16f   : > { %814 = vst.msk [vmem:[%s1329_s30 + $0xa0] sm:$0xff] %vm793_vm0, %v749_v26  ;;  %846 = vst.msk [vmem:[%s1329_s30 + $0x1a0] sm:$0xff] %vm793_vm0, %v781_v27  ;;  %v516_v30 = vadd.f32 %v1321_v49, %v515_v28  ;;  %v676_v31 = vadd.f32 %v1321_v49, %v675_v29  ;;  %v517_v32 = vpop.f32.mrb[43].mxu0  ;;  %v677_v33 = vpop.f32.mrb[43].mxu1 }
 0x171   : > { %v750_v34 = vmax.f32 %v516_v30, 0.0  ;;  %v782_v35 = vmax.f32 %v676_v31, 0.0 }
 0x172   : > { %v520_v36 = vpop.f32.mrb[44].mxu0  ;;  %v680_v37 = vpop.f32.mrb[44].mxu1 }
 0x173   : > { %815 = vst.msk [vmem:[%s1329_s30 + $0xa8] sm:$0xff] %vm793_vm0, %v750_v34  ;;  %847 = vst.msk [vmem:[%s1329_s30 + $0x1a8] sm:$0xff] %vm793_vm0, %v782_v35  ;;  %v521_v38 = vadd.f32 %v1321_v49, %v520_v36  ;;  %v681_v39 = vadd.f32 %v1321_v49, %v680_v37  ;;  %v522_v40 = vpop.f32.mrb[45].mxu0  ;;  %v682_v41 = vpop.f32.mrb[45].mxu1 }
 0x175   : > { %v751_v42 = vmax.f32 %v521_v38, 0.0  ;;  %v783_v43 = vmax.f32 %v681_v39, 0.0 }
 0x176   : > { %v525_v44 = vpop.f32.mrb[46].mxu0  ;;  %v685_v45 = vpop.f32.mrb[46].mxu1 }
 0x177   : > { %816 = vst.msk [vmem:[%s1329_s30 + $0xb0] sm:$0xff] %vm793_vm0, %v751_v42  ;;  %848 = vst.msk [vmem:[%s1329_s30 + $0x1b0] sm:$0xff] %vm793_vm0, %v783_v43  ;;  %v526_v46 = vadd.f32 %v1321_v49, %v525_v44  ;;  %v686_v47 = vadd.f32 %v1321_v49, %v685_v45  ;;  %v527_v48 = vpop.f32.mrb[47].mxu0  ;;  %v687_v50 = vpop.f32.mrb[47].mxu1 }
 0x179   : > { %v752_v51 = vmax.f32 %v526_v46, 0.0  ;;  %v784_v52 = vmax.f32 %v686_v47, 0.0 }
 0x17a   : > { %v530_v53 = vpop.f32.mrb[48].mxu0  ;;  %v690_v54 = vpop.f32.mrb[48].mxu1 }
 0x17b   : > { %817 = vst.msk [vmem:[%s1329_s30 + $0xb8] sm:$0xff] %vm793_vm0, %v752_v51  ;;  %849 = vst.msk [vmem:[%s1329_s30 + $0x1b8] sm:$0xff] %vm793_vm0, %v784_v52  ;;  %v531_v55 = vadd.f32 %v1321_v49, %v530_v53  ;;  %v691_v56 = vadd.f32 %v1321_v49, %v690_v54  ;;  %v532_v57 = vpop.f32.mrb[49].mxu0  ;;  %v692_v58 = vpop.f32.mrb[49].mxu1 }
 0x17d   : > { %v753_v59 = vmax.f32 %v531_v55, 0.0  ;;  %v785_v60 = vmax.f32 %v691_v56, 0.0 }
 0x17e   : > { %v535_v61 = vpop.f32.mrb[50].mxu0  ;;  %v695_v62 = vpop.f32.mrb[50].mxu1 }
 0x17f   : > { %818 = vst.msk [vmem:[%s1329_s30 + $0xc0] sm:$0xff] %vm793_vm0, %v753_v59  ;;  %850 = vst.msk [vmem:[%s1329_s30 + $0x1c0] sm:$0xff] %vm793_vm0, %v785_v60  ;;  %v536_v63 = vadd.f32 %v1321_v49, %v535_v61  ;;  %v696_v0 = vadd.f32 %v1321_v49, %v695_v62  ;;  %v537_v1 = vpop.f32.mrb[51].mxu0  ;;  %v697_v2 = vpop.f32.mrb[51].mxu1 }
 0x181   : > { %v754_v3 = vmax.f32 %v536_v63, 0.0  ;;  %v786_v4 = vmax.f32 %v696_v0, 0.0 }
 0x182   : > { %v540_v5 = vpop.f32.mrb[52].mxu0  ;;  %v700_v6 = vpop.f32.mrb[52].mxu1 }
 0x183   : > { %819 = vst.msk [vmem:[%s1329_s30 + $0xc8] sm:$0xff] %vm793_vm0, %v754_v3  ;;  %851 = vst.msk [vmem:[%s1329_s30 + $0x1c8] sm:$0xff] %vm793_vm0, %v786_v4  ;;  %v541_v7 = vadd.f32 %v1321_v49, %v540_v5  ;;  %v701_v8 = vadd.f32 %v1321_v49, %v700_v6  ;;  %v542_v9 = vpop.f32.mrb[53].mxu0  ;;  %v702_v10 = vpop.f32.mrb[53].mxu1 }
 0x185   : > { %v755_v11 = vmax.f32 %v541_v7, 0.0  ;;  %v787_v12 = vmax.f32 %v701_v8, 0.0 }
 0x186   : > { %v545_v13 = vpop.f32.mrb[54].mxu0  ;;  %v705_v14 = vpop.f32.mrb[54].mxu1 }
 0x187   : > { %820 = vst.msk [vmem:[%s1329_s30 + $0xd0] sm:$0xff] %vm793_vm0, %v755_v11  ;;  %852 = vst.msk [vmem:[%s1329_s30 + $0x1d0] sm:$0xff] %vm793_vm0, %v787_v12  ;;  %v546_v15 = vadd.f32 %v1321_v49, %v545_v13  ;;  %v706_v16 = vadd.f32 %v1321_v49, %v705_v14  ;;  %v547_v17 = vpop.f32.mrb[55].mxu0  ;;  %v707_v18 = vpop.f32.mrb[55].mxu1 }
 0x189   : > { %v756_v19 = vmax.f32 %v546_v15, 0.0  ;;  %v788_v20 = vmax.f32 %v706_v16, 0.0 }
 0x18a   : > { %v550_v21 = vpop.f32.mrb[56].mxu0  ;;  %v710_v22 = vpop.f32.mrb[56].mxu1 }
 0x18b   : > { %821 = vst.msk [vmem:[%s1329_s30 + $0xd8] sm:$0xff] %vm793_vm0, %v756_v19  ;;  %853 = vst.msk [vmem:[%s1329_s30 + $0x1d8] sm:$0xff] %vm793_vm0, %v788_v20  ;;  %v551_v23 = vadd.f32 %v1321_v49, %v550_v21  ;;  %v711_v24 = vadd.f32 %v1321_v49, %v710_v22  ;;  %v552_v25 = vpop.f32.mrb[57].mxu0  ;;  %v712_v26 = vpop.f32.mrb[57].mxu1 }
 0x18d   : > { %v757_v27 = vmax.f32 %v551_v23, 0.0  ;;  %v789_v28 = vmax.f32 %v711_v24, 0.0 }
 0x18e   : > { %v555_v29 = vpop.f32.mrb[58].mxu0  ;;  %v715_v30 = vpop.f32.mrb[58].mxu1 }
 0x18f   : > { %822 = vst.msk [vmem:[%s1329_s30 + $0xe0] sm:$0xff] %vm793_vm0, %v757_v27  ;;  %854 = vst.msk [vmem:[%s1329_s30 + $0x1e0] sm:$0xff] %vm793_vm0, %v789_v28  ;;  %v556_v31 = vadd.f32 %v1321_v49, %v555_v29  ;;  %v716_v32 = vadd.f32 %v1321_v49, %v715_v30  ;;  %v557_v33 = vpop.f32.mrb[59].mxu0  ;;  %v717_v34 = vpop.f32.mrb[59].mxu1 }
 0x191   : > { %v758_v35 = vmax.f32 %v556_v31, 0.0  ;;  %v790_v36 = vmax.f32 %v716_v32, 0.0 }
 0x192   : > { %v560_v37 = vpop.f32.mrb[60].mxu0  ;;  %v720_v38 = vpop.f32.mrb[60].mxu1 }
 0x193   : > { %823 = vst.msk [vmem:[%s1329_s30 + $0xe8] sm:$0xff] %vm793_vm0, %v758_v35  ;;  %855 = vst.msk [vmem:[%s1329_s30 + $0x1e8] sm:$0xff] %vm793_vm0, %v790_v36  ;;  %v561_v39 = vadd.f32 %v1321_v49, %v560_v37  ;;  %v721_v40 = vadd.f32 %v1321_v49, %v720_v38  ;;  %v562_v41 = vpop.f32.mrb[61].mxu0  ;;  %v722_v42 = vpop.f32.mrb[61].mxu1 }
 0x195   : > { %v759_v43 = vmax.f32 %v561_v39, 0.0  ;;  %v791_v44 = vmax.f32 %v721_v40, 0.0 }
 0x196   : > { %v565_v45 = vpop.f32.mrb[62].mxu0  ;;  %v725_v46 = vpop.f32.mrb[62].mxu1 }
 0x197   : > { %824 = vst.msk [vmem:[%s1329_s30 + $0xf0] sm:$0xff] %vm793_vm0, %v759_v43  ;;  %856 = vst.msk [vmem:[%s1329_s30 + $0x1f0] sm:$0xff] %vm793_vm0, %v791_v44  ;;  %v566_v47 = vadd.f32 %v1321_v49, %v565_v45  ;;  %v726_v48 = vadd.f32 %v1321_v49, %v725_v46  ;;  %v567_v50 = vpop.f32.mrb[63].mxu0  ;;  %v727_v51 = vpop.f32.mrb[63].mxu1 }
 0x199   : > { %v760_v52 = vmax.f32 %v566_v47, 0.0  ;;  %v792_v53 = vmax.f32 %v726_v48, 0.0 }
 0x19b   : > { %825 = vst.msk [vmem:[%s1329_s30 + $0xf8] sm:$0xff] %vm793_vm0, %v760_v52  ;;  %857 = vst.msk [vmem:[%s1329_s30 + $0x1f8] sm:$0xff] %vm793_vm0, %v792_v53 }
 0x19c PF: > { %s13_s12 = sadd.s32 1, %s1023_s12  }
 0x19d   : > { %p10_p4 = scmp.ge.s32.totalorder %s13_s12, 4  }
 0x19f   :  { %12 = sbr.rel (!%p10_p4) target bundleno = 1 (0x1), region = 62 }

// kernel: policy_forward.3
= control target key start
LH: loop header
LB: loop body
LE: loop exit
PB: predicated region body
PF: predicated region fallthrough
CT: control target
= control target key end

     0   :  { %s6867_s25 = smov 0   ;;  %s6869_s26 = smov 0   ;;  %s9786_s0 = inlined_call_operand.vmem [shape: f32[9,16,512], index: 0, kind: input, shape index: {}]   ;;  %s9787_s1 = inlined_call_operand.vmem [shape: f32[512,64], index: 1, kind: input, shape index: {}]   ;;  %s9788_s2 = inlined_call_operand.vmem [shape: f32[1,64], index: 2, kind: input, shape index: {}]   ;;  %s9789_s3 = inlined_call_operand.vmem [shape: f32[576,64], index: 3, kind: input, shape index: {}]   ;;  %s9790_s4 = inlined_call_operand.vmem [shape: f32[1,64], index: 4, kind: input, shape index: {}]   ;;  %s9791_s5 = inlined_call_operand.vmem [shape: f32[64,256], index: 5, kind: input, shape index: {}]   ;;  %s9792_s6 = inlined_call_operand.vmem [shape: f32[1,256], index: 6, kind: input, shape index: {}]   ;;  %s9793_s7 = inlined_call_operand.vmem [shape: f32[256,448], index: 7, kind: input, shape index: {}]   ;;  %s9794_s8 = inlined_call_operand.vmem [shape: f32[1,448], index: 8, kind: input, shape index: {}]   ;;  %s9795_s9 = inlined_call_operand.vmem [shape: f32[448,896], index: 9, kind: input, shape index: {}]   ;;  %s9796_s10 = inlined_call_operand.vmem [shape: f32[1,896], index: 10, kind: input, shape index: {}]   ;;  %s9797_s11 = inlined_call_operand.vmem [shape: f32[448,128], index: 11, kind: input, shape index: {}]   ;;  %s9798_s12 = inlined_call_operand.vmem [shape: f32[1,128], index: 12, kind: input, shape index: {}]   ;;  %s9799_s13 = inlined_call_operand.vmem [shape: f32[16,128], index: 13, kind: output, shape index: {}]  }
   0x1   :  { %s6871_s27 = smov 0  }
   0x2 LB: > { %s4389_s28 = sadd.s32 4294967295, %s6791_s27   ;;  %s6884_s29 = sadd.s32 1, %s6791_s27   ;;  %s6791_s27 = sphi %s6871_s27, %s9802_s27   ;;  %s6787_s26 = sphi %s6869_s26, %s9801_s26   ;;  %s6783_s25 = sphi %s6867_s25, %s9800_s25  }
   0x3   : > { %s27_s30 = ssub.s32 %s6791_s27, %s6884_s29  ;;  %s30_s14 = sadd.s32 1, %s6787_s26 }
   0x4   : > { %p28_p0 = scmp.eq.s32.totalorder %s27_s30, 0  ;;  %p37_p1 = scmp.ne.s32.totalorder %s6787_s26, %s6783_s25 }
   0x5   : > { %p38_p2 = scmp.eq.s32.totalorder %s6791_s27, 0  ;;  %p4392_p4 = scmp.ge.s32.totalorder %s6791_s27, 2 }
   0x6   : > { %s6893_s15 = scalar_select %p28_p0, %s6787_s26, %s30_s14  }
   0x7   : > { %p39_p3 = por %p38_p2, %p37_p1  ;;  %377 = sbr.rel (%p4392_p4) target bundleno = 37 (0x25), region = 64 }
   0xe   : > { %380 = sbr.rel (!%p39_p3) target bundleno = 37 (0x25), region = 68  ;;  %s382_s16 = sand.u32 (%p39_p3), 1, %s6787_s26  }
   0xf   : > { %s4450_s17 = sshll.u32 (%p39_p3), %s6791_s27, 5  ;;  %s6735_s18 = smul.u32 (%p39_p3), 288, %s382_s16 }
  0x10   : > { %s6901_s21 = scalar_lea.vmem (%p39_p3), %s9786_s0, %s4450_s17 }
  0x11   : > { %v400_v0 = vld [vmem:[%s6901_s21] sm:$0xff] (%p39_p3)  ;;  %v402_v1 = vld [vmem:[%s6901_s21 + $0x8] sm:$0xff] (%p39_p3)  ;;  %v404_v2 = vld [vmem:[%s6901_s21 + $0x10] sm:$0xff] (%p39_p3)  ;;  %s6909_s22 = scalar_lea.vmem (%p39_p3), [#allocation2], %s6735_s18 }
  0x12   : > { %v406_v3 = vld [vmem:[%s6901_s21 + $0x18] sm:$0xff] (%p39_p3)  ;;  %v408_v4 = vld [vmem:[%s6901_s21 + $0x40] sm:$0xff] (%p39_p3)  ;;  %v410_v5 = vld [vmem:[%s6901_s21 + $0x48] sm:$0xff] (%p39_p3)  ;;  %401 = vst [vmem:[%s6909_s22] sm:$0xff] (%p39_p3), %v400_v0 }
  0x13   : > { %403 = vst [vmem:[%s6909_s22 + $0x8] sm:$0xff] (%p39_p3), %v402_v1  ;;  %405 = vst [vmem:[%s6909_s22 + $0x10] sm:$0xff] (%p39_p3), %v404_v2  ;;  %v412_v6 = vld [vmem:[%s6901_s21 + $0x50] sm:$0xff] (%p39_p3)  ;;  %v414_v7 = vld [vmem:[%s6901_s21 + $0x58] sm:$0xff] (%p39_p3) }
  0x14   : > { %407 = vst [vmem:[%s6909_s22 + $0x18] sm:$0xff] (%p39_p3), %v406_v3  ;;  %409 = vst [vmem:[%s6909_s22 + $0x20] sm:$0xff] (%p39_p3), %v408_v4  ;;  %v416_v8 = vld [vmem:[%s6901_s21 + $0x80] sm:$0xff] (%p39_p3)  ;;  %v418_v9 = vld [vmem:[%s6901_s21 + $0x88] sm:$0xff] (%p39_p3) }
  0x15   : > { %411 = vst [vmem:[%s6909_s22 + $0x28] sm:$0xff] %v410_v5  ;;  %413 = vst [vmem:[%s6909_s22 + $0x30] sm:$0xff] %v412_v6  ;;  %v420_v10 = vld [vmem:[%s6901_s21 + $0x90] sm:$0xff]  ;;  %v422_v11 = vld [vmem:[%s6901_s21 + $0x98] sm:$0xff] }
  0x16   : > { %415 = vst [vmem:[%s6909_s22 + $0x38] sm:$0xff] %v414_v7  ;;  %417 = vst [vmem:[%s6909_s22 + $0x40] sm:$0xff] %v416_v8  ;;  %v424_v12 = vld [vmem:[%s6901_s21 + $0xc0] sm:$0xff]  ;;  %v426_v13 = vld [vmem:[%s6901_s21 + $0xc8] sm:$0xff] }
  0x17   : > { %419 = vst [vmem:[%s6909_s22 + $0x48] sm:$0xff] %v418_v9  ;;  %421 = vst [vmem:[%s6909_s22 + $0x50] sm:$0xff] %v420_v10  ;;  %v428_v14 = vld [vmem:[%s6901_s21 + $0xd0] sm:$0xff]  ;;  %v430_v15 = vld [vmem:[%s6901_s21 + $0xd8] sm:$0xff] }
  0x18   : > { %423 = vst [vmem:[%s6909_s22 + $0x58] sm:$0xff] %v422_v11  ;;  %425 = vst [vmem:[%s6909_s22 + $0x60] sm:$0xff] %v424_v12  ;;  %v432_v16 = vld [vmem:[%s6901_s21 + $0x100] sm:$0xff]  ;;  %v434_v17 = vld [vmem:[%s6901_s21 + $0x108] sm:$0xff] }
  0x19   : > { %427 = vst [vmem:[%s6909_s22 + $0x68] sm:$0xff] %v426_v13  ;;  %429 = vst [vmem:[%s6909_s22 + $0x70] sm:$0xff] %v428_v14  ;;  %v436_v18 = vld [vmem:[%s6901_s21 + $0x110] sm:$0xff]  ;;  %v438_v19 = vld [vmem:[%s6901_s21 + $0x118] sm:$0xff] }
  0x1a   : > { %431 = vst [vmem:[%s6909_s22 + $0x78] sm:$0xff] %v430_v15  ;;  %433 = vst [vmem:[%s6909_s22 + $0x80] sm:$0xff] %v432_v16  ;;  %v440_v20 = vld [vmem:[%s6901_s21 + $0x140] sm:$0xff]  ;;  %v442_v21 = vld [vmem:[%s6901_s21 + $0x148] sm:$0xff] }
  0x1b   : > { %435 = vst [vmem:[%s6909_s22 + $0x88] sm:$0xff] %v434_v17  ;;  %437 = vst [vmem:[%s6909_s22 + $0x90] sm:$0xff] %v436_v18  ;;  %v444_v22 = vld [vmem:[%s6901_s21 + $0x150] sm:$0xff]  ;;  %v446_v23 = vld [vmem:[%s6901_s21 + $0x158] sm:$0xff] }
  0x1c   : > { %439 = vst [vmem:[%s6909_s22 + $0x98] sm:$0xff] %v438_v19  ;;  %441 = vst [vmem:[%s6909_s22 + $0xa0] sm:$0xff] %v440_v20  ;;  %v448_v24 = vld [vmem:[%s6901_s21 + $0x180] sm:$0xff]  ;;  %v450_v25 = vld [vmem:[%s6901_s21 + $0x188] sm:$0xff] }
  0x1d   : > { %443 = vst [vmem:[%s6909_s22 + $0xa8] sm:$0xff] %v442_v21  ;;  %445 = vst [vmem:[%s6909_s22 + $0xb0] sm:$0xff] %v444_v22  ;;  %v452_v26 = vld [vmem:[%s6901_s21 + $0x190] sm:$0xff]  ;;  %v454_v27 = vld [vmem:[%s6901_s21 + $0x198] sm:$0xff] }
  0x1e   : > { %447 = vst [vmem:[%s6909_s22 + $0xb8] sm:$0xff] %v446_v23  ;;  %449 = vst [vmem:[%s6909_s22 + $0xc0] sm:$0xff] %v448_v24  ;;  %v456_v28 = vld [vmem:[%s6901_s21 + $0x1c0] sm:$0xff]  ;;  %v458_v29 = vld [vmem:[%s6901_s21 + $0x1c8] sm:$0xff] }
  0x1f   : > { %451 = vst [vmem:[%s6909_s22 + $0xc8] sm:$0xff] %v450_v25  ;;  %453 = vst [vmem:[%s6909_s22 + $0xd0] sm:$0xff] %v452_v26  ;;  %v460_v30 = vld [vmem:[%s6901_s21 + $0x1d0] sm:$0xff]  ;;  %v462_v31 = vld [vmem:[%s6901_s21 + $0x1d8] sm:$0xff] }
  0x20   : > { %455 = vst [vmem:[%s6909_s22 + $0xd8] sm:$0xff] %v454_v27  ;;  %457 = vst [vmem:[%s6909_s22 + $0xe0] sm:$0xff] %v456_v28  ;;  %v464_v32 = vld [vmem:[%s6901_s21 + $0x200] sm:$0xff]  ;;  %v466_v33 = vld [vmem:[%s6901_s21 + $0x208] sm:$0xff] }
  0x21   : > { %459 = vst [vmem:[%s6909_s22 + $0xe8] sm:$0xff] %v458_v29  ;;  %461 = vst [vmem:[%s6909_s22 + $0xf0] sm:$0xff] %v460_v30  ;;  %v468_v34 = vld [vmem:[%s6901_s21 + $0x210] sm:$0xff]  ;;  %v470_v35 = vld [vmem:[%s6901_s21 + $0x218] sm:$0xff] }
  0x22   : > { %463 = vst [vmem:[%s6909_s22 + $0xf8] sm:$0xff] %v462_v31  ;;  %465 = vst [vmem:[%s6909_s22 + $0x100] sm:$0xff] %v464_v32 }
  0x23   : > { %467 = vst [vmem:[%s6909_s22 + $0x108] sm:$0xff] %v466_v33  ;;  %469 = vst [vmem:[%s6909_s22 + $0x110] sm:$0xff] %v468_v34 }
  0x24   : > { %471 = vst [vmem:[%s6909_s22 + $0x118] sm:$0xff] %v470_v35 }
  0x25 PF: > { %p4395_p5 = scmp.ge.s32.totalorder %s6791_s27, 1  ;;  %p476_p6 = scmp.lt.s32.totalorder %s6791_s27, 3 }
  0x27   : > { %p477_p7 = pnand %p4395_p5, %p476_p6 }
  0x28   : > { %v545_v36 = vld [vmem:[%s9787_s1 + $0x80] sm:$0xff] (!%p477_p7)  ;;  %v546_v37 = vld [vmem:[%s9787_s1 + $0x88] sm:$0xff] (!%p477_p7)  ;;  %s483_s18 = sand.u32 (!%p477_p7), 1, %s6783_s25   ;;  %v547_v41 = vld [vmem:[%s9787_s1 + $0x90] sm:$0xff] (!%p477_p7)  ;;  %vm6794_vm0 = vmmov (!%p477_p7), 0   ;;  %vm1986_vm1 = vcmask (!%p477_p7), 523264  }
  0x29   : > { %480 = sbr.rel (%p477_p7) target bundleno = 2283 (0x8eb), region = 91  ;;  %v529_v38 = vld [vmem:[%s9787_s1] sm:$0xff] (!%p477_p7)  ;;  %v6989_v39 = vpack.c.bf16 (!%p477_p7), %v546_v37, %v545_v36  ;;  %v530_v40 = vld [vmem:[%s9787_s1 + $0x8] sm:$0xff] (!%p477_p7)  ;;  %v548_v42 = vld [vmem:[%s9787_s1 + $0x98] sm:$0xff] (!%p477_p7)  ;;  %p525_p8 = scmp.lt.s32.totalorder (!%p477_p7), %s4389_s28, 1 }
  0x2a   : > { %v7000_v43 = vpack.c.bf16 (!%p477_p7), %v530_v40, %v529_v38  ;;  %v7002_v44 = vpack.c.bf16 (!%p477_p7), %v548_v42, %v547_v41  ;;  %v531_v45 = vld [vmem:[%s9787_s1 + $0x10] sm:$0xff] (!%p477_p7)  ;;  %v532_v46 = vld [vmem:[%s9787_s1 + $0x18] sm:$0xff] (!%p477_p7)  ;;  %v549_v47 = vld [vmem:[%s9787_s1 + $0xa0] sm:$0xff] (!%p477_p7)  ;;  %s6736_s22 = smul.u32 (!%p477_p7), 288, %s483_s18 }
  0x2b   : > { %5407 = vmatprep.subr.bf16.mxu1 (!%p477_p7), %v6989_v39  ;;  %v550_v48 = vld [vmem:[%s9787_s1 + $0xa8] sm:$0xff] (!%p477_p7)  ;;  %5471 = vmatprep.subr.bf16.mxu0 (!%p477_p7), %v6989_v39  ;;  %v7019_v49 = vpack.c.bf16 (!%p477_p7), %v532_v46, %v531_v45  ;;  %v533_v51 = vld [vmem:[%s9787_s1 + $0x20] sm:$0xff] (!%p477_p7)  ;;  %v551_v53 = vld [vmem:[%s9787_s1 + $0xb0] sm:$0xff] (!%p477_p7) }
  0x2c   : > { %5409 = vmatpush3.bf16.msra.mxu1 (!%p477_p7), %v7000_v43  ;;  %5473 = vmatpush3.bf16.msra.mxu0 (!%p477_p7), %v7000_v43  ;;  %v7023_v50 = vpack.c.bf16 (!%p477_p7), %v550_v48, %v549_v47  ;;  %v534_v52 = vld [vmem:[%s9787_s1 + $0x28] sm:$0xff] (!%p477_p7)  ;;  %v552_v54 = vld [vmem:[%s9787_s1 + $0xb8] sm:$0xff] (!%p477_p7)  ;;  %v535_v57 = vld [vmem:[%s9787_s1 + $0x30] sm:$0xff] (!%p477_p7)  ;;  %s7058_s14 = scalar_lea.vmem (!%p477_p7), [#allocation2], %s6736_s22  ;;  %s6796_s22 = smov (!%p477_p7), 64  }
  0x2d   : > { %5411 = vmatprep.subr.bf16.mxu1 (!%p477_p7), %v7002_v44  ;;  %5475 = vmatprep.subr.bf16.mxu0 (!%p477_p7), %v7002_v44  ;;  %v7039_v55 = vpack.c.bf16 (!%p477_p7), %v534_v52, %v533_v51  ;;  %v7043_v56 = vpack.c.bf16 (!%p477_p7), %v552_v54, %v551_v53  ;;  %v536_v58 = vld [vmem:[%s9787_s1 + $0x38] sm:$0xff] (!%p477_p7)  ;;  %v553_v59 = vld [vmem:[%s9787_s1 + $0xc0] sm:$0xff] (!%p477_p7)  ;;  %v554_v60 = vld [vmem:[%s9787_s1 + $0xc8] sm:$0xff] (!%p477_p7) }
  0x2e   : > { %v595_v61 = vld [vmem:[%s7058_s14 + $0x8] sm:$0xff] (!%p477_p7)  ;;  %v7062_v62 = vpack.c.bf16 (!%p477_p7), %v536_v58, %v535_v57  ;;  %v7066_v63 = vpack.c.bf16 (!%p477_p7), %v554_v60, %v553_v59  ;;  %v537_v0 = vld [vmem:[%s9787_s1 + $0x40] sm:$0xff] (!%p477_p7)  ;;  %v555_v2 = vld [vmem:[%s9787_s1 + $0xd0] sm:$0xff] (!%p477_p7) }
  0x2f   : > { %668 = vmatprep.mubr.f32.mxu1 (!%p477_p7), %v595_v61  ;;  %v538_v1 = vld [vmem:[%s9787_s1 + $0x48] sm:$0xff] (!%p477_p7)  ;;  %v556_v3 = vld [vmem:[%s9787_s1 + $0xd8] sm:$0xff] (!%p477_p7)  ;;  %v539_v7 = vld [vmem:[%s9787_s1 + $0x50] sm:$0xff] (!%p477_p7) }
  0x30   : > { %5413 = vmatpush3.bf16.msra.mxu1 %v7019_v49  ;;  %5477 = vmatpush3.bf16.msra.mxu0 %v7019_v49  ;;  %v4399_v4 = vld [vmem:[%s7058_s14 + $0x28] sm:$0xff]  ;;  %v7083_v5 = vpack.c.bf16 %v538_v1, %v537_v0  ;;  %v7087_v6 = vpack.c.bf16 %v556_v3, %v555_v2  ;;  %v540_v8 = vld [vmem:[%s9787_s1 + $0x58] sm:$0xff]  ;;  %v557_v9 = vld [vmem:[%s9787_s1 + $0xe0] sm:$0xff]  ;;  %s9804_s28 = smov (!%p525_p8, %s4389_s28), 1 }
  0x31   : > { %5415 = vmatprep.subr.bf16.mxu1 %v7023_v50  ;;  %5479 = vmatprep.subr.bf16.mxu0 %v7023_v50  ;;  %v558_v10 = vld [vmem:[%s9787_s1 + $0xe8] sm:$0xff]  ;;  %v7103_v11 = vpack.c.bf16 %v540_v8, %v539_v7  ;;  %v541_v13 = vld [vmem:[%s9787_s1 + $0x60] sm:$0xff]  ;;  %v559_v15 = vld [vmem:[%s9787_s1 + $0xf0] sm:$0xff]  ;;  %s4396_s21 = sshll.u32 %s9804_s28, 3 }
  0x32   : > { %814 = vmatprep.mubr.f32.mxu0 %v4399_v4  ;;  %v7107_v12 = vpack.c.bf16 %v558_v10, %v557_v9  ;;  %v542_v14 = vld [vmem:[%s9787_s1 + $0x68] sm:$0xff]  ;;  %v560_v16 = vld [vmem:[%s9787_s1 + $0xf8] sm:$0xff]  ;;  %v543_v19 = vld [vmem:[%s9787_s1 + $0x70] sm:$0xff] }
  0x33   : > { %v7123_v17 = vpack.c.bf16 %v542_v14, %v541_v13  ;;  %v7127_v18 = vpack.c.bf16 %v560_v16, %v559_v15  ;;  %v544_v20 = vld [vmem:[%s9787_s1 + $0x78] sm:$0xff]  ;;  %v577_v21 = vld [vmem:[%s9787_s1 + $0x180] sm:$0xff]  ;;  %v578_v22 = vld [vmem:[%s9787_s1 + $0x188] sm:$0xff] }
  0x34   : > { %5417 = vmatpush3.bf16.msra.mxu1 %v7039_v55  ;;  %5481 = vmatpush3.bf16.msra.mxu0 %v7039_v55  ;;  %v7143_v23 = vpack.c.bf16 %v544_v20, %v543_v19  ;;  %v7147_v24 = vpack.c.bf16 %v578_v22, %v577_v21  ;;  %v561_v25 = vld [vmem:[%s9787_s1 + $0x100] sm:$0xff]  ;;  %v562_v26 = vld [vmem:[%s9787_s1 + $0x108] sm:$0xff]  ;;  %v579_v27 = vld [vmem:[%s9787_s1 + $0x190] sm:$0xff] }
  0x35   : > { %5419 = vmatprep.subr.bf16.mxu1 %v7043_v56  ;;  %5483 = vmatprep.subr.bf16.mxu0 %v7043_v56  ;;  %v580_v28 = vld [vmem:[%s9787_s1 + $0x198] sm:$0xff]  ;;  %v594_v29 = vld [vmem:[%s7058_s14] sm:$0xff]  ;;  %v7164_v30 = vpack.c.bf16 %v562_v26, %v561_v25  ;;  %v563_v33 = vld [vmem:[%s9787_s1 + $0x110] sm:$0xff] }
  0x36   : > { %v4398_v31 = vld [vmem:[%s7058_s14 + $0x20] sm:$0xff]  ;;  %v7169_v32 = vpack.c.bf16 %v580_v28, %v579_v27  ;;  %v564_v34 = vld [vmem:[%s9787_s1 + $0x118] sm:$0xff]  ;;  %v582_v36 = vld [vmem:[%s9787_s1 + $0x1a8] sm:$0xff] }
  0x37   : > { %v581_v35 = vld [vmem:[%s9787_s1 + $0x1a0] sm:$0xff]  ;;  %v597_v37 = vld [vmem:[%s7058_s14 + $0x18] sm:$0xff]  ;;  %v4403_v38 = vld [vmem:[%s7058_s14 + $0x48] sm:$0xff]  ;;  %v7187_v40 = vpack.c.bf16 %v564_v34, %v563_v33 }
  0x38   : > { %5421 = vmatpush3.bf16.msra.mxu1 %v7062_v62  ;;  %5485 = vmatpush3.bf16.msra.mxu0 %v7062_v62  ;;  %v7191_v41 = vpack.c.bf16 %v582_v36, %v581_v35  ;;  %v565_v42 = vld [vmem:[%s9787_s1 + $0x120] sm:$0xff]  ;;  %v566_v45 = vld [vmem:[%s9787_s1 + $0x128] sm:$0xff]  ;;  %v583_v46 = vld [vmem:[%s9787_s1 + $0x1b0] sm:$0xff] }
  0x39   : > { %5423 = vmatprep.subr.bf16.mxu1 %v7066_v63  ;;  %5487 = vmatprep.subr.bf16.mxu0 %v7066_v63  ;;  %v584_v47 = vld [vmem:[%s9787_s1 + $0x1b8] sm:$0xff]  ;;  %v7207_v48 = vpack.c.bf16 %v566_v45, %v565_v42  ;;  %v567_v52 = vld [vmem:[%s9787_s1 + $0x130] sm:$0xff]  ;;  %v585_v54 = vld [vmem:[%s9787_s1 + $0x1c0] sm:$0xff] }
  0x3a   : > { %v7211_v51 = vpack.c.bf16 %v584_v47, %v583_v46  ;;  %v568_v53 = vld [vmem:[%s9787_s1 + $0x138] sm:$0xff]  ;;  %v586_v57 = vld [vmem:[%s9787_s1 + $0x1c8] sm:$0xff]  ;;  %v569_v60 = vld [vmem:[%s9787_s1 + $0x140] sm:$0xff] }
  0x3b   : > { %v7227_v58 = vpack.c.bf16 %v568_v53, %v567_v52  ;;  %v7231_v59 = vpack.c.bf16 %v586_v57, %v585_v54  ;;  %v570_v61 = vld [vmem:[%s9787_s1 + $0x148] sm:$0xff]  ;;  %v587_v0 = vld [vmem:[%s9787_s1 + $0x1d0] sm:$0xff]  ;;  %v588_v1 = vld [vmem:[%s9787_s1 + $0x1d8] sm:$0xff] }
  0x3c   : > { %5425 = vmatpush3.bf16.msra.mxu1 %v7083_v5  ;;  %5489 = vmatpush3.bf16.msra.mxu0 %v7083_v5  ;;  %v7247_v2 = vpack.c.bf16 %v570_v61, %v569_v60  ;;  %v7251_v3 = vpack.c.bf16 %v588_v1, %v587_v0  ;;  %v571_v4 = vld [vmem:[%s9787_s1 + $0x150] sm:$0xff]  ;;  %v572_v7 = vld [vmem:[%s9787_s1 + $0x158] sm:$0xff]  ;;  %v589_v8 = vld [vmem:[%s9787_s1 + $0x1e0] sm:$0xff] }
  0x3d   : > { %5427 = vmatprep.subr.bf16.mxu1 %v7087_v6  ;;  %5491 = vmatprep.subr.bf16.mxu0 %v7087_v6  ;;  %v590_v9 = vld [vmem:[%s9787_s1 + $0x1e8] sm:$0xff]  ;;  %v7267_v10 = vpack.c.bf16 %v572_v7, %v571_v4  ;;  %v573_v14 = vld [vmem:[%s9787_s1 + $0x160] sm:$0xff]  ;;  %v591_v16 = vld [vmem:[%s9787_s1 + $0x1f0] sm:$0xff] }
  0x3e   : > { %v7271_v13 = vpack.c.bf16 %v590_v9, %v589_v8  ;;  %v574_v15 = vld [vmem:[%s9787_s1 + $0x168] sm:$0xff]  ;;  %v592_v19 = vld [vmem:[%s9787_s1 + $0x1f8] sm:$0xff]  ;;  %v575_v22 = vld [vmem:[%s9787_s1 + $0x170] sm:$0xff] }
  0x3f   : > { %v7287_v20 = vpack.c.bf16 %v574_v15, %v573_v14  ;;  %v7291_v21 = vpack.c.bf16 %v592_v19, %v591_v16  ;;  %v576_v25 = vld [vmem:[%s9787_s1 + $0x178] sm:$0xff]  ;;  %v596_v27 = vld [vmem:[%s7058_s14 + $0x10] sm:$0xff]  ;;  %v4402_v28 = vld [vmem:[%s7058_s14 + $0x40] sm:$0xff]  ;;  %v6795_v14 = vmov 0.0  }
  0x40   : > { %5429 = vmatpush3.bf16.msra.mxu1 %v7103_v11  ;;  %5493 = vmatpush3.bf16.msra.mxu0 %v7103_v11  ;;  %v7301_v26 = vpack.c.bf16 %v576_v25, %v575_v22  ;;  %v4400_v33 = vld [vmem:[%s7058_s14 + $0x30] sm:$0xff]  ;;  %v4406_v34 = vld [vmem:[%s7058_s14 + $0x60] sm:$0xff]  ;;  %v4405_v35 = vld [vmem:[%s7058_s14 + $0x58] sm:$0xff] }
  0x41   : > { %5431 = vmatprep.subr.bf16.mxu1 %v7107_v12  ;;  %5495 = vmatprep.subr.bf16.mxu0 %v7107_v12  ;;  %v4411_v36 = vld [vmem:[%s7058_s14 + $0x88] sm:$0xff]  ;;  %v4409_v42 = vld [vmem:[%s7058_s14 + $0x78] sm:$0xff]  ;;  %v4408_v46 = vld [vmem:[%s7058_s14 + $0x70] sm:$0xff] }
  0x42   : > { %v4415_v45 = vld [vmem:[%s7058_s14 + $0xa8] sm:$0xff]  ;;  %v4414_v47 = vld [vmem:[%s7058_s14 + $0xa0] sm:$0xff]  ;;  %v4413_v52 = vld [vmem:[%s7058_s14 + $0x98] sm:$0xff] }
  0x43   : > { %v4419_v53 = vld [vmem:[%s7058_s14 + $0xc8] sm:$0xff]  ;;  %v4412_v54 = vld [vmem:[%s7058_s14 + $0x90] sm:$0xff]  ;;  %v4418_v57 = vld [vmem:[%s7058_s14 + $0xc0] sm:$0xff] }
  0x44   : > { %5433 = vmatpush3.bf16.msra.mxu1 %v7123_v17  ;;  %5497 = vmatpush3.bf16.msra.mxu0 %v7123_v17  ;;  %v4417_v60 = vld [vmem:[%s7058_s14 + $0xb8] sm:$0xff]  ;;  %v4423_v61 = vld [vmem:[%s7058_s14 + $0xe8] sm:$0xff]  ;;  %v4416_v0 = vld [vmem:[%s7058_s14 + $0xb0] sm:$0xff] }
  0x45   : > { %5435 = vmatprep.subr.bf16.mxu1 %v7127_v18  ;;  %5499 = vmatprep.subr.bf16.mxu0 %v7127_v18  ;;  %v4422_v1 = vld [vmem:[%s7058_s14 + $0xe0] sm:$0xff]  ;;  %v4421_v4 = vld [vmem:[%s7058_s14 + $0xd8] sm:$0xff]  ;;  %v4427_v7 = vld [vmem:[%s7058_s14 + $0x108] sm:$0xff] }
  0x46   : > { %v1917_v8 = vld [vmem:[%s9789_s3 + $0x20] sm:$0xff]  ;;  %v1918_v9 = vld [vmem:[%s9789_s3 + $0x28] sm:$0xff]  ;;  %v1919_v16 = vld [vmem:[%s9789_s3 + $0x30] sm:$0xff] }
  0x47   : > { %v5989_v15 = vpack.c.bf16 %v1918_v9, %v1917_v8  ;;  %v1920_v19 = vld [vmem:[%s9789_s3 + $0x38] sm:$0xff]  ;;  %v7573_v25 = vld [vmem:[%s9788_s2] ss:$0 sm:$0xff] }
  0x48   : > { %5437 = vmatpush3.bf16.msra.mxu1 %v7143_v23  ;;  %5501 = vmatpush3.bf16.msra.mxu0 %v7143_v23  ;;  %v5992_v22 = vpack.c.bf16 %v1920_v19, %v1919_v16  ;;  %v1940_v16 = vld [vmem:[%s9789_s3 + $0xd8] sm:$0xff] }
  0x49   : > { %5439 = vmatprep.subr.bf16.mxu1 %v7147_v24  ;;  %5535 = vmatprep.subr.bf16.mxu0 %v6989_v39 }
  0x4b   : > { %669 = vmatmul.mubr.f32.vlgmr.msra.gmra.mrb[0].mxu1 %v594_v29  ;;  %815 = vmatmul.mubr.f32.vlgmr.msra.gmra.mrb[0].mxu0 %v4398_v31  ;;  %v4401_v29 = vld [vmem:[%s7058_s14 + $0x38] sm:$0xff]  ;;  %v4407_v31 = vld [vmem:[%s7058_s14 + $0x68] sm:$0xff] }
  0x4c   : > { %5441 = vmatpush3.bf16.msra.mxu1 %v7164_v30  ;;  %5537 = vmatpush3.bf16.msra.mxu0 %v7000_v43 }
  0x4d   : > { %5443 = vmatprep.subr.bf16.mxu1 %v7169_v32  ;;  %5539 = vmatprep.subr.bf16.mxu0 %v7002_v44 }
  0x4e   : > { %738 = vmatprep.mubr.f32.mxu1 %v597_v37  ;;  %960 = vmatprep.mubr.f32.mxu0 %v4403_v38  ;;  %v4404_v37 = vld [vmem:[%s7058_s14 + $0x50] sm:$0xff]  ;;  %v4410_v38 = vld [vmem:[%s7058_s14 + $0x80] sm:$0xff] }
  0x50   : > { %5445 = vmatpush3.bf16.msra.mxu1 %v7187_v40  ;;  %5541 = vmatpush3.bf16.msra.mxu0 %v7019_v49 }
  0x51   : > { %5447 = vmatprep.subr.bf16.mxu1 %v7191_v41  ;;  %5543 = vmatprep.subr.bf16.mxu0 %v7023_v50 }
  0x54   : > { %5449 = vmatpush3.bf16.msra.mxu1 %v7207_v48  ;;  %5545 = vmatpush3.bf16.msra.mxu0 %v7039_v55 }
  0x55   : > { %5451 = vmatprep.subr.bf16.mxu1 %v7211_v51  ;;  %5547 = vmatprep.subr.bf16.mxu0 %v7043_v56 }
  0x58   : > { %5453 = vmatpush3.bf16.msra.mxu1 %v7227_v58  ;;  %5549 = vmatpush3.bf16.msra.mxu0 %v7062_v62 }
  0x59   : > { %5455 = vmatprep.subr.bf16.mxu1 %v7231_v59  ;;  %5551 = vmatprep.subr.bf16.mxu0 %v7066_v63 }
  0x5c   : > { %5457 = vmatpush3.bf16.msra.mxu1 %v7247_v2  ;;  %5553 = vmatpush3.bf16.msra.mxu0 %v7083_v5 }
  0x5d   : > { %5459 = vmatprep.subr.bf16.mxu1 %v7251_v3  ;;  %5555 = vmatprep.subr.bf16.mxu0 %v7087_v6 }
  0x60   : > { %5461 = vmatpush3.bf16.msra.mxu1 %v7267_v10  ;;  %5557 = vmatpush3.bf16.msra.mxu0 %v7103_v11 }
  0x61   : > { %5463 = vmatprep.subr.bf16.mxu1 %v7271_v13  ;;  %5559 = vmatprep.subr.bf16.mxu0 %v7107_v12 }
  0x64   : > { %5465 = vmatpush3.bf16.msra.mxu1 %v7287_v20  ;;  %5561 = vmatpush3.bf16.msra.mxu0 %v7123_v17 }
  0x65   : > { %5467 = vmatprep.subr.bf16.mxu1 %v7291_v21  ;;  %5563 = vmatprep.subr.bf16.mxu0 %v7127_v18 }
  0x68   : > { %5469 = vmatpush3.bf16.msra.mxu1 %v7301_v26  ;;  %5565 = vmatpush3.bf16.msra.mxu0 %v7143_v23 }
  0x69   : > { %5503 = vmatprep.subr.bf16.mxu1 %v7147_v24  ;;  %5599 = vmatprep.subr.bf16.mxu0 %v6989_v39 }
  0x6b   : > { %739 = vmatmul.mubr.f32.vlgmr.msra.gmra.mrb[2].mxu1 %v596_v27  ;;  %961 = vmatmul.mubr.f32.vlgmr.msra.gmra.mrb[2].mxu0 %v4402_v28 }
  0x6c   : > { %5505 = vmatpush3.bf16.msra.mxu1 %v7164_v30  ;;  %5601 = vmatpush3.bf16.msra.mxu0 %v7000_v43 }
  0x6d   : > { %5507 = vmatprep.subr.bf16.mxu1 %v7169_v32  ;;  %5603 = vmatprep.subr.bf16.mxu0 %v7002_v44 }
  0x6e   : > { %884 = vmatprep.mubr.f32.mxu1 %v4401_v29  ;;  %1106 = vmatprep.mubr.f32.mxu0 %v4407_v31 }
  0x70   : > { %5509 = vmatpush3.bf16.msra.mxu1 %v7187_v40  ;;  %5605 = vmatpush3.bf16.msra.mxu0 %v7019_v49 }
  0x71   : > { %5511 = vmatprep.subr.bf16.mxu1 %v7191_v41  ;;  %5607 = vmatprep.subr.bf16.mxu0 %v7023_v50 }
  0x74   : > { %5513 = vmatpush3.bf16.msra.mxu1 %v7207_v48  ;;  %5609 = vmatpush3.bf16.msra.mxu0 %v7039_v55 }
  0x75   : > { %5515 = vmatprep.subr.bf16.mxu1 %v7211_v51  ;;  %5611 = vmatprep.subr.bf16.mxu0 %v7043_v56 }
  0x78   : > { %5517 = vmatpush3.bf16.msra.mxu1 %v7227_v58  ;;  %5613 = vmatpush3.bf16.msra.mxu0 %v7062_v62 }
  0x79   : > { %5519 = vmatprep.subr.bf16.mxu1 %v7231_v59  ;;  %5615 = vmatprep.subr.bf16.mxu0 %v7066_v63 }
  0x7c   : > { %5521 = vmatpush3.bf16.msra.mxu1 %v7247_v2  ;;  %5617 = vmatpush3.bf16.msra.mxu0 %v7083_v5 }
  0x7d   : > { %5523 = vmatprep.subr.bf16.mxu1 %v7251_v3  ;;  %5619 = vmatprep.subr.bf16.mxu0 %v7087_v6 }
  0x80   : > { %5525 = vmatpush3.bf16.msra.mxu1 %v7267_v10  ;;  %5621 = vmatpush3.bf16.msra.mxu0 %v7103_v11 }
  0x81   : > { %5527 = vmatprep.subr.bf16.mxu1 %v7271_v13  ;;  %5623 = vmatprep.subr.bf16.mxu0 %v7107_v12 }
  0x84   : > { %5529 = vmatpush3.bf16.msra.mxu1 %v7287_v20  ;;  %5625 = vmatpush3.bf16.msra.mxu0 %v7123_v17 }
  0x85   : > { %5531 = vmatprep.subr.bf16.mxu1 %v7291_v21  ;;  %5627 = vmatprep.subr.bf16.mxu0 %v7127_v18 }
  0x88   : > { %5533 = vmatpush3.bf16.msra.mxu1 %v7301_v26  ;;  %5629 = vmatpush3.bf16.msra.mxu0 %v7143_v23 }
  0x89   : > { %5567 = vmatprep.subr.bf16.mxu1 %v7147_v24  ;;  %5663 = vmatprep.subr.bf16.mxu0 %v6989_v39 }
  0x8b   : > { %885 = vmatmul.mubr.f32.vlgmr.msra.gmra.mrb[4].mxu1 %v4400_v33  ;;  %1107 = vmatmul.mubr.f32.vlgmr.msra.gmra.mrb[4].mxu0 %v4406_v34 }
  0x8c   : > { %5569 = vmatpush3.bf16.msra.mxu1 %v7164_v30  ;;  %5665 = vmatpush3.bf16.msra.mxu0 %v7000_v43 }
  0x8d   : > { %5571 = vmatprep.subr.bf16.mxu1 %v7169_v32  ;;  %5667 = vmatprep.subr.bf16.mxu0 %v7002_v44 }
  0x8e   : > { %1030 = vmatprep.mubr.f32.mxu1 %v4405_v35  ;;  %1252 = vmatprep.mubr.f32.mxu0 %v4411_v36  ;;  %v1921_v35 = vld [vmem:[%s9789_s3 + $0x40] sm:$0xff]  ;;  %v1922_v36 = vld [vmem:[%s9789_s3 + $0x48] sm:$0xff] }
  0x90   : > { %5573 = vmatpush3.bf16.msra.mxu1 %v7187_v40  ;;  %5669 = vmatpush3.bf16.msra.mxu0 %v7019_v49 }
  0x91   : > { %5575 = vmatprep.subr.bf16.mxu1 %v7191_v41  ;;  %5671 = vmatprep.subr.bf16.mxu0 %v7023_v50 }
  0x94   : > { %5577 = vmatpush3.bf16.msra.mxu1 %v7207_v48  ;;  %5673 = vmatpush3.bf16.msra.mxu0 %v7039_v55 }
  0x95   : > { %5579 = vmatprep.subr.bf16.mxu1 %v7211_v51  ;;  %5675 = vmatprep.subr.bf16.mxu0 %v7043_v56 }
  0x98   : > { %5581 = vmatpush3.bf16.msra.mxu1 %v7227_v58  ;;  %5677 = vmatpush3.bf16.msra.mxu0 %v7062_v62 }
  0x99   : > { %5583 = vmatprep.subr.bf16.mxu1 %v7231_v59  ;;  %5679 = vmatprep.subr.bf16.mxu0 %v7066_v63 }
  0x9c   : > { %5585 = vmatpush3.bf16.msra.mxu1 %v7247_v2  ;;  %5681 = vmatpush3.bf16.msra.mxu0 %v7083_v5 }
  0x9d   : > { %5587 = vmatprep.subr.bf16.mxu1 %v7251_v3  ;;  %5683 = vmatprep.subr.bf16.mxu0 %v7087_v6 }
  0xa0   : > { %5589 = vmatpush3.bf16.msra.mxu1 %v7267_v10  ;;  %5685 = vmatpush3.bf16.msra.mxu0 %v7103_v11 }
  0xa1   : > { %5591 = vmatprep.subr.bf16.mxu1 %v7271_v13  ;;  %5687 = vmatprep.subr.bf16.mxu0 %v7107_v12 }
  0xa4   : > { %5593 = vmatpush3.bf16.msra.mxu1 %v7287_v20  ;;  %5689 = vmatpush3.bf16.msra.mxu0 %v7123_v17 }
  0xa5   : > { %5595 = vmatprep.subr.bf16.mxu1 %v7291_v21  ;;  %5691 = vmatprep.subr.bf16.mxu0 %v7127_v18 }
  0xa8   : > { %5597 = vmatpush3.bf16.msra.mxu1 %v7301_v26  ;;  %5693 = vmatpush3.bf16.msra.mxu0 %v7143_v23 }
  0xa9   : > { %5631 = vmatprep.subr.bf16.mxu1 %v7147_v24  ;;  %5727 = vmatprep.subr.bf16.mxu0 %v6989_v39 }
  0xab   : > { %1031 = vmatmul.mubr.f32.vlgmr.msra.gmra.mrb[6].mxu1 %v4404_v37  ;;  %1253 = vmatmul.mubr.f32.vlgmr.msra.gmra.mrb[6].mxu0 %v4410_v38 }
  0xac   : > { %5633 = vmatpush3.bf16.msra.mxu1 %v7164_v30  ;;  %5729 = vmatpush3.bf16.msra.mxu0 %v7000_v43 }
  0xad   : > { %5635 = vmatprep.subr.bf16.mxu1 %v7169_v32  ;;  %5731 = vmatprep.subr.bf16.mxu0 %v7002_v44 }
  0xae   : > { %1176 = vmatprep.mubr.f32.mxu1 %v4409_v42  ;;  %1398 = vmatprep.mubr.f32.mxu0 %v4415_v45  ;;  %v5995_v42 = vpack.c.bf16 %v1922_v36, %v1921_v35 }
  0xb0   : > { %5637 = vmatpush3.bf16.msra.mxu1 %v7187_v40  ;;  %5733 = vmatpush3.bf16.msra.mxu0 %v7019_v49 }
  0xb1   : > { %5639 = vmatprep.subr.bf16.mxu1 %v7191_v41  ;;  %5735 = vmatprep.subr.bf16.mxu0 %v7023_v50 }
  0xb4   : > { %5641 = vmatpush3.bf16.msra.mxu1 %v7207_v48  ;;  %5737 = vmatpush3.bf16.msra.mxu0 %v7039_v55 }
  0xb5   : > { %5643 = vmatprep.subr.bf16.mxu1 %v7211_v51  ;;  %5739 = vmatprep.subr.bf16.mxu0 %v7043_v56 }
  0xb8   : > { %5645 = vmatpush3.bf16.msra.mxu1 %v7227_v58  ;;  %5741 = vmatpush3.bf16.msra.mxu0 %v7062_v62 }
  0xb9   : > { %5647 = vmatprep.subr.bf16.mxu1 %v7231_v59  ;;  %5743 = vmatprep.subr.bf16.mxu0 %v7066_v63 }
  0xbc   : > { %5649 = vmatpush3.bf16.msra.mxu1 %v7247_v2  ;;  %5745 = vmatpush3.bf16.msra.mxu0 %v7083_v5 }
  0xbd   : > { %5651 = vmatprep.subr.bf16.mxu1 %v7251_v3  ;;  %5747 = vmatprep.subr.bf16.mxu0 %v7087_v6 }
  0xc0   : > { %5653 = vmatpush3.bf16.msra.mxu1 %v7267_v10  ;;  %5749 = vmatpush3.bf16.msra.mxu0 %v7103_v11 }
  0xc1   : > { %5655 = vmatprep.subr.bf16.mxu1 %v7271_v13  ;;  %5751 = vmatprep.subr.bf16.mxu0 %v7107_v12 }
  0xc4   : > { %5657 = vmatpush3.bf16.msra.mxu1 %v7287_v20  ;;  %5753 = vmatpush3.bf16.msra.mxu0 %v7123_v17 }
  0xc5   : > { %5659 = vmatprep.subr.bf16.mxu1 %v7291_v21  ;;  %5755 = vmatprep.subr.bf16.mxu0 %v7127_v18 }
  0xc8   : > { %5661 = vmatpush3.bf16.msra.mxu1 %v7301_v26  ;;  %5757 = vmatpush3.bf16.msra.mxu0 %v7143_v23 }
  0xc9   : > { %5695 = vmatprep.subr.bf16.mxu1 %v7147_v24  ;;  %5791 = vmatprep.subr.bf16.mxu0 %v6989_v39 }
  0xcb   : > { %1177 = vmatmul.mubr.f32.vlgmr.msra.gmra.mrb[8].mxu1 %v4408_v46  ;;  %1399 = vmatmul.mubr.f32.vlgmr.msra.gmra.mrb[8].mxu0 %v4414_v47  ;;  %v1923_v46 = vld [vmem:[%s9789_s3 + $0x50] sm:$0xff]  ;;  %v1924_v47 = vld [vmem:[%s9789_s3 + $0x58] sm:$0xff] }
  0xcc   : > { %5697 = vmatpush3.bf16.msra.mxu1 %v7164_v30  ;;  %5793 = vmatpush3.bf16.msra.mxu0 %v7000_v43 }
  0xcd   : > { %5699 = vmatprep.subr.bf16.mxu1 %v7169_v32  ;;  %5795 = vmatprep.subr.bf16.mxu0 %v7002_v44 }
  0xce   : > { %1322 = vmatprep.mubr.f32.mxu1 %v4413_v52  ;;  %1544 = vmatprep.mubr.f32.mxu0 %v4419_v53  ;;  %v5998_v52 = vpack.c.bf16 %v1924_v47, %v1923_v46  ;;  %v4424_v53 = vld [vmem:[%s7058_s14 + $0xf0] sm:$0xff]  ;;  %v1946_v46 = vld [vmem:[%s9789_s3 + $0x108] sm:$0xff] }
  0xd0   : > { %5701 = vmatpush3.bf16.msra.mxu1 %v7187_v40  ;;  %5797 = vmatpush3.bf16.msra.mxu0 %v7019_v49 }
  0xd1   : > { %5703 = vmatprep.subr.bf16.mxu1 %v7191_v41  ;;  %5799 = vmatprep.subr.bf16.mxu0 %v7023_v50 }
  0xd4   : > { %5705 = vmatpush3.bf16.msra.mxu1 %v7207_v48  ;;  %5801 = vmatpush3.bf16.msra.mxu0 %v7039_v55 }
  0xd5   : > { %5707 = vmatprep.subr.bf16.mxu1 %v7211_v51  ;;  %5803 = vmatprep.subr.bf16.mxu0 %v7043_v56 }
  0xd8   : > { %5709 = vmatpush3.bf16.msra.mxu1 %v7227_v58  ;;  %5805 = vmatpush3.bf16.msra.mxu0 %v7062_v62 }
  0xd9   : > { %5711 = vmatprep.subr.bf16.mxu1 %v7231_v59  ;;  %5807 = vmatprep.subr.bf16.mxu0 %v7066_v63 }
  0xdc   : > { %5713 = vmatpush3.bf16.msra.mxu1 %v7247_v2  ;;  %5809 = vmatpush3.bf16.msra.mxu0 %v7083_v5 }
  0xdd   : > { %5715 = vmatprep.subr.bf16.mxu1 %v7251_v3  ;;  %5811 = vmatprep.subr.bf16.mxu0 %v7087_v6 }
  0xe0   : > { %5717 = vmatpush3.bf16.msra.mxu1 %v7267_v10  ;;  %5813 = vmatpush3.bf16.msra.mxu0 %v7103_v11 }
  0xe1   : > { %5719 = vmatprep.subr.bf16.mxu1 %v7271_v13  ;;  %5815 = vmatprep.subr.bf16.mxu0 %v7107_v12 }
  0xe4   : > { %5721 = vmatpush3.bf16.msra.mxu1 %v7287_v20  ;;  %5817 = vmatpush3.bf16.msra.mxu0 %v7123_v17 }
  0xe5   : > { %5723 = vmatprep.subr.bf16.mxu1 %v7291_v21  ;;  %5819 = vmatprep.subr.bf16.mxu0 %v7127_v18 }
  0xe8   : > { %5725 = vmatpush3.bf16.msra.mxu1 %v7301_v26  ;;  %5821 = vmatpush3.bf16.msra.mxu0 %v7143_v23 }
  0xe9   : > { %5759 = vmatprep.subr.bf16.mxu1 %v7147_v24  ;;  %5855 = vmatprep.subr.bf16.mxu0 %v6989_v39 }
  0xeb   : > { %1323 = vmatmul.mubr.f32.vlgmr.msra.gmra.mrb[10].mxu1 %v4412_v54  ;;  %1545 = vmatmul.mubr.f32.vlgmr.msra.gmra.mrb[10].mxu0 %v4418_v57  ;;  %v1925_v54 = vld [vmem:[%s9789_s3 + $0x60] sm:$0xff]  ;;  %v1926_v57 = vld [vmem:[%s9789_s3 + $0x68] sm:$0xff] }
  0xec   : > { %5761 = vmatpush3.bf16.msra.mxu1 %v7164_v30  ;;  %5857 = vmatpush3.bf16.msra.mxu0 %v7000_v43 }
  0xed   : > { %5763 = vmatprep.subr.bf16.mxu1 %v7169_v32  ;;  %5859 = vmatprep.subr.bf16.mxu0 %v7002_v44 }
  0xee   : > { %1468 = vmatprep.mubr.f32.mxu1 %v4417_v60  ;;  %1690 = vmatprep.mubr.f32.mxu0 %v4423_v61  ;;  %v4429_v60 = vld [vmem:[%s7058_s14 + $0x118] sm:$0xff]  ;;  %v6001_v61 = vpack.c.bf16 %v1926_v57, %v1925_v54  ;;  %v1947_v57 = vld [vmem:[%s9789_s3 + $0x110] sm:$0xff] }
  0xf0   : > { %5765 = vmatpush3.bf16.msra.mxu1 %v7187_v40  ;;  %5861 = vmatpush3.bf16.msra.mxu0 %v7019_v49 }
  0xf1   : > { %5767 = vmatprep.subr.bf16.mxu1 %v7191_v41  ;;  %5863 = vmatprep.subr.bf16.mxu0 %v7023_v50 }
  0xf4   : > { %5769 = vmatpush3.bf16.msra.mxu1 %v7207_v48  ;;  %5865 = vmatpush3.bf16.msra.mxu0 %v7039_v55 }
  0xf5   : > { %5771 = vmatprep.subr.bf16.mxu1 %v7211_v51  ;;  %5867 = vmatprep.subr.bf16.mxu0 %v7043_v56 }
  0xf8   : > { %5773 = vmatpush3.bf16.msra.mxu1 %v7227_v58  ;;  %5869 = vmatpush3.bf16.msra.mxu0 %v7062_v62 }
  0xf9   : > { %5775 = vmatprep.subr.bf16.mxu1 %v7231_v59  ;;  %5871 = vmatprep.subr.bf16.mxu0 %v7066_v63 }
  0xfc   : > { %5777 = vmatpush3.bf16.msra.mxu1 %v7247_v2  ;;  %5873 = vmatpush3.bf16.msra.mxu0 %v7083_v5 }
  0xfd   : > { %5779 = vmatprep.subr.bf16.mxu1 %v7251_v3  ;;  %5875 = vmatprep.subr.bf16.mxu0 %v7087_v6 }
 0x100   : > { %5781 = vmatpush3.bf16.msra.mxu1 %v7267_v10  ;;  %5877 = vmatpush3.bf16.msra.mxu0 %v7103_v11 }
 0x101   : > { %5783 = vmatprep.subr.bf16.mxu1 %v7271_v13  ;;  %5879 = vmatprep.subr.bf16.mxu0 %v7107_v12 }
 0x104   : > { %5785 = vmatpush3.bf16.msra.mxu1 %v7287_v20  ;;  %5881 = vmatpush3.bf16.msra.mxu0 %v7123_v17 }
 0x105   : > { %5787 = vmatprep.subr.bf16.mxu1 %v7291_v21  ;;  %5883 = vmatprep.subr.bf16.mxu0 %v7127_v18 }
 0x108   : > { %5789 = vmatpush3.bf16.msra.mxu1 %v7301_v26  ;;  %5885 = vmatpush3.bf16.msra.mxu0 %v7143_v23 }
 0x109   : > { %5823 = vmatprep.subr.bf16.mxu1 %v7147_v24  ;;  %5919 = vmatprep.subr.bf16.mxu0 %v6989_v39 }
 0x10b   : > { %1469 = vmatmul.mubr.f32.vlgmr.msra.gmra.mrb[12].mxu1 %v4416_v0  ;;  %1691 = vmatmul.mubr.f32.vlgmr.msra.gmra.mrb[12].mxu0 %v4422_v1  ;;  %v1927_v0 = vld [vmem:[%s9789_s3 + $0x70] sm:$0xff]  ;;  %v1928_v1 = vld [vmem:[%s9789_s3 + $0x78] sm:$0xff] }
 0x10c   : > { %5825 = vmatpush3.bf16.msra.mxu1 %v7164_v30  ;;  %5921 = vmatpush3.bf16.msra.mxu0 %v7000_v43 }
 0x10d   : > { %5827 = vmatprep.subr.bf16.mxu1 %v7169_v32  ;;  %5923 = vmatprep.subr.bf16.mxu0 %v7002_v44 }
 0x10e   : > { %1614 = vmatprep.mubr.f32.mxu1 %v4421_v4  ;;  %1836 = vmatprep.mubr.f32.mxu0 %v4427_v7 }
 0x110   : > { %5829 = vmatpush3.bf16.msra.mxu1 %v7187_v40  ;;  %5925 = vmatpush3.bf16.msra.mxu0 %v7019_v49 }
 0x111   : > { %5831 = vmatprep.subr.bf16.mxu1 %v7191_v41  ;;  %5927 = vmatprep.subr.bf16.mxu0 %v7023_v50 }
 0x114   : > { %5833 = vmatpush3.bf16.msra.mxu1 %v7207_v48  ;;  %5929 = vmatpush3.bf16.msra.mxu0 %v7039_v55 }
 0x115   : > { %5835 = vmatprep.subr.bf16.mxu1 %v7211_v51  ;;  %5931 = vmatprep.subr.bf16.mxu0 %v7043_v56  ;;  %v1913_v56 = vld [vmem:[%s9789_s3] sm:$0xff] }
 0x118   : > { %5837 = vmatpush3.bf16.msra.mxu1 %v7227_v58  ;;  %5933 = vmatpush3.bf16.msra.mxu0 %v7062_v62  ;;  %v1914_v62 = vld [vmem:[%s9789_s3 + $0x8] sm:$0xff] }
 0x119   : > { %5839 = vmatprep.subr.bf16.mxu1 %v7231_v59  ;;  %5935 = vmatprep.subr.bf16.mxu0 %v7066_v63  ;;  %v4420_v63 = vld [vmem:[%s7058_s14 + $0xd0] sm:$0xff] }
 0x11c   : > { %5841 = vmatpush3.bf16.msra.mxu1 %v7247_v2  ;;  %5937 = vmatpush3.bf16.msra.mxu0 %v7083_v5  ;;  %v4426_v5 = vld [vmem:[%s7058_s14 + $0x100] sm:$0xff] }
 0x11d   : > { %5843 = vmatprep.subr.bf16.mxu1 %v7251_v3  ;;  %5939 = vmatprep.subr.bf16.mxu0 %v7087_v6  ;;  %v5983_v6 = vpack.c.bf16 %v1914_v62, %v1913_v56 }
 0x11e   : > { %v4483_v39 = vpop.f32.mrb[0].mxu1  ;;  %v4553_v43 = vpop.f32.mrb[0].mxu0 }
 0x11f   : > { %v4484_v44 = vpop.f32.mrb[1].mxu1  ;;  %v4554_v49 = vpop.f32.mrb[1].mxu0 }
 0x120   : > { %v4485_v50 = vadd.f32 %v4484_v44, %v4483_v39  ;;  %5845 = vmatpush3.bf16.msra.mxu1 %v7267_v10  ;;  %5941 = vmatpush3.bf16.msra.mxu0 %v7103_v11  ;;  %v7516_v55 = vadd.f32 %v4554_v49, %v4553_v43  ;;  %v6793_v11 = vmov 0.0|0.0   ;;  %v1932_v39 = vld [vmem:[%s9789_s3 + $0x98] sm:$0xff] }
 0x121   : > { %5847 = vmatprep.subr.bf16.mxu1 %v7271_v13  ;;  %5943 = vmatprep.subr.bf16.mxu0 %v7107_v12  ;;  %v1915_v12 = vld [vmem:[%s9789_s3 + $0x10] sm:$0xff]  ;;  %v1936_v49 = vld [vmem:[%s9789_s3 + $0xb8] sm:$0xff] }
 0x122   : > { %v671_v33 = vadd.f32 %v4485_v50, %v7573_v25 }
 0x124   : > { %5849 = vmatpush3.bf16.msra.mxu1 %v7287_v20  ;;  %5945 = vmatpush3.bf16.msra.mxu0 %v7123_v17  ;;  %v1916_v17 = vld [vmem:[%s9789_s3 + $0x18] sm:$0xff] }
 0x125   : > { %5851 = vmatprep.subr.bf16.mxu1 %v7291_v21  ;;  %5947 = vmatprep.subr.bf16.mxu0 %v7127_v18  ;;  %v4425_v18 = vld [vmem:[%s7058_s14 + $0xf8] sm:$0xff] }
 0x128   : > { %5853 = vmatpush3.bf16.msra.mxu1 %v7301_v26  ;;  %5949 = vmatpush3.bf16.msra.mxu0 %v7143_v23  ;;  %v5986_v23 = vpack.c.bf16 %v1916_v17, %v1915_v12  ;;  %v1937_v12 = vld [vmem:[%s9789_s3 + $0xc0] sm:$0xff]  ;;  %v1938_v17 = vld [vmem:[%s9789_s3 + $0xc8] sm:$0xff] }
 0x129   : > { %5887 = vmatprep.subr.bf16.mxu1 %v7147_v24  ;;  %5982 = vmatprep.subr.bf16.mxu0 %v6793_v11  ;;  %v6019_v8 = vpack.c.bf16 %v1938_v17, %v1937_v12  ;;  %v2664_v17 = vld [vmem:[%s9791_s5 + $0x20] sm:$0xff] }
 0x12b   : > { %1615 = vmatmul.mubr.f32.vlgmr.msra.gmra.mrb[14].mxu1 %v4420_v63  ;;  %1837 = vmatmul.mubr.f32.vlgmr.msra.gmra.mrb[14].mxu0 %v4426_v5 }
 0x12c   : > { %5889 = vmatpush3.bf16.msra.mxu1 %v7164_v30  ;;  %5984 = vmatpush3.bf16.msra.mxu0 %v5983_v6 }
 0x12d   : > { %5891 = vmatprep.subr.bf16.mxu1 %v7169_v32  ;;  %5985 = vmatprep.subr.bf16.mxu0 %v6793_v11 }
 0x12e   : > { %5251 = vmatprep.mubr.msk.f32.mxu0 %vm6794_vm0, %v6795_v14  ;;  %1760 = vmatprep.mubr.f32.mxu1 %v4425_v18 }
 0x130   : > { %5893 = vmatpush3.bf16.msra.mxu1 %v7187_v40  ;;  %5987 = vmatpush3.bf16.msra.mxu0 %v5986_v23 }
 0x131   : > { %5895 = vmatprep.subr.bf16.mxu1 %v7191_v41  ;;  %5988 = vmatprep.subr.bf16.mxu0 %v6793_v11 }
 0x134   : > { %5897 = vmatpush3.bf16.msra.mxu1 %v7207_v48  ;;  %5990 = vmatpush3.bf16.msra.mxu0 %v5989_v15  ;;  %v1939_v15 = vld [vmem:[%s9789_s3 + $0xd0] sm:$0xff] }
 0x135   : > { %5899 = vmatprep.subr.bf16.mxu1 %v7211_v51  ;;  %5991 = vmatprep.subr.bf16.mxu0 %v6793_v11  ;;  %v6022_v19 = vpack.c.bf16 %v1940_v16, %v1939_v15 }
 0x138   : > { %5901 = vmatpush3.bf16.msra.mxu1 %v7227_v58  ;;  %5993 = vmatpush3.bf16.msra.mxu0 %v5992_v22  ;;  %v1941_v22 = vld [vmem:[%s9789_s3 + $0xe0] sm:$0xff] }
 0x139   : > { %5903 = vmatprep.subr.bf16.mxu1 %v7231_v59  ;;  %5994 = vmatprep.subr.bf16.mxu0 %v6793_v11 }
 0x13c   : > { %5905 = vmatpush3.bf16.msra.mxu1 %v7247_v2 }
 0x13d   : > { %5907 = vmatprep.subr.bf16.mxu1 %v7251_v3 }
 0x13e   : > { %v4518_v27 = vpop.f32.mrb[2].mxu1  ;;  %v4623_v28 = vpop.f32.mrb[2].mxu0 }
 0x13f   : > { %v4519_v29 = vpop.f32.mrb[3].mxu1  ;;  %v4624_v31 = vpop.f32.mrb[3].mxu0 }
 0x140   : > { %v4520_v34 = vadd.f32 %v4519_v29, %v4518_v27  ;;  %5909 = vmatpush3.bf16.msra.mxu1 %v7267_v10  ;;  %v7584_v37 = vadd.f32 %v4624_v31, %v4623_v28  ;;  %v1942_v27 = vld [vmem:[%s9789_s3 + $0xe8] sm:$0xff]  ;;  %v1943_v29 = vld [vmem:[%s9789_s3 + $0xf0] sm:$0xff]  ;;  %v1944_v31 = vld [vmem:[%s9789_s3 + $0xf8] sm:$0xff] }
 0x141   : > { %5911 = vmatprep.subr.bf16.mxu1 %v7271_v13  ;;  %v6025_v28 = vpack.c.bf16 %v1942_v27, %v1941_v22  ;;  %v2670_v22 = vld [vmem:[%s9791_s5 + $0x50] sm:$0xff] }
 0x142   : > { %v741_v38 = vadd.f32 %v4520_v34, %v671_v33  ;;  %v6028_v33 = vpack.c.bf16 %v1944_v31, %v1943_v29  ;;  %v1959_v27 = vld [vmem:[%s9789_s3 + $0x170] sm:$0xff] }
 0x144   : > { %v744_v45 = vmax.f32 %v741_v38, 0.0  ;;  %5913 = vmatpush3.bf16.msra.mxu1 %v7287_v20 }
 0x145   : > { %5915 = vmatprep.subr.bf16.mxu1 %v7291_v21 }
 0x146   : > { %5252 = vmatmul.mubr.msk.f32.vlgmr.msra.gmra.mrb[16].mxu0 %vm1986_vm1, %v744_v45  ;;  %v1945_v45 = vld [vmem:[%s9789_s3 + $0x100] sm:$0xff] }
 0x147   : > { %5996 = vmatpush3.bf16.msra.mxu0 %v5995_v42  ;;  %5270 = vmatprep.mubr.msk.f32.mxu0 %vm6794_vm0, %v6795_v14 }
 0x148   : > { %5917 = vmatpush3.bf16.msra.mxu1 %v7301_v26  ;;  %5997 = vmatprep.subr.bf16.mxu0 %v6793_v11 }
 0x149   : > { %5951 = vmatprep.subr.bf16.mxu1 %v7147_v24  ;;  %v6004_v24 = vpack.c.bf16 %v1928_v1, %v1927_v0  ;;  %v1949_v0 = vld [vmem:[%s9789_s3 + $0x120] sm:$0xff]  ;;  %v1950_v1 = vld [vmem:[%s9789_s3 + $0x128] sm:$0xff] }
 0x14b   : > { %1761 = vmatmul.mubr.f32.vlgmr.msra.gmra.mrb[16].mxu1 %v4424_v53  ;;  %5999 = vmatpush3.bf16.msra.mxu0 %v5998_v52  ;;  %v6031_v53 = vpack.c.bf16 %v1946_v46, %v1945_v45  ;;  %v1962_v45 = vld [vmem:[%s9789_s3 + $0x188] sm:$0xff] }
 0x14c   : > { %5953 = vmatpush3.bf16.msra.mxu1 %v7164_v30  ;;  %6000 = vmatprep.subr.bf16.mxu0 %v6793_v11  ;;  %v817_v30 = vadd.f32 %v7516_v55, %v7573_v25  ;;  %v963_v55 = vadd.f32 %v7584_v37, %v7573_v25 }
 0x14d   : > { %5955 = vmatprep.subr.bf16.mxu1 %v7169_v32  ;;  %1906 = vmatprep.mubr.f32.mxu1 %v4429_v60  ;;  %v1948_v60 = vld [vmem:[%s9789_s3 + $0x118] sm:$0xff] }
 0x14f   : > { %6002 = vmatpush3.bf16.msra.mxu0 %v6001_v61  ;;  %v6034_v61 = vpack.c.bf16 %v1948_v60, %v1947_v57  ;;  %v1964_v57 = vld [vmem:[%s9789_s3 + $0x198] sm:$0xff] }
 0x150   : > { %5957 = vmatpush3.bf16.msra.mxu1 %v7187_v40  ;;  %6003 = vmatprep.subr.bf16.mxu0 %v6793_v11 }
 0x151   : > { %5959 = vmatprep.subr.bf16.mxu1 %v7191_v41 }
 0x153   : > { %6005 = vmatpush3.bf16.msra.mxu0 %v6004_v24  ;;  %v6037_v24 = vpack.c.bf16 %v1950_v1, %v1949_v0  ;;  %v1966_v0 = vld [vmem:[%s9789_s3 + $0x1a8] sm:$0xff] }
 0x154   : > { %5961 = vmatpush3.bf16.msra.mxu1 %v7207_v48  ;;  %6006 = vmatprep.subr.bf16.mxu0 %v6793_v11 }
 0x155   : > { %5963 = vmatprep.subr.bf16.mxu1 %v7211_v51  ;;  %v1929_v51 = vld [vmem:[%s9789_s3 + $0x80] sm:$0xff] }
 0x158   : > { %5965 = vmatpush3.bf16.msra.mxu1 %v7227_v58  ;;  %v1930_v58 = vld [vmem:[%s9789_s3 + $0x88] sm:$0xff] }
 0x159   : > { %5967 = vmatprep.subr.bf16.mxu1 %v7231_v59 }
 0x15c   : > { %5969 = vmatpush3.bf16.msra.mxu1 %v7247_v2 }
 0x15d   : > { %5971 = vmatprep.subr.bf16.mxu1 %v7251_v3  ;;  %v6007_v3 = vpack.c.bf16 %v1930_v58, %v1929_v51 }
 0x15e   : > { %v4588_v32 = vpop.f32.mrb[4].mxu1  ;;  %v4693_v40 = vpop.f32.mrb[4].mxu0 }
 0x15f   : > { %v4589_v41 = vpop.f32.mrb[5].mxu1  ;;  %v4694_v4 = vpop.f32.mrb[5].mxu0 }
 0x160   : > { %v4590_v48 = vadd.f32 %v4589_v41, %v4588_v32  ;;  %5973 = vmatpush3.bf16.msra.mxu1 %v7267_v10  ;;  %v4695_v59 = vadd.f32 %v4694_v4, %v4693_v40  ;;  %v1931_v10 = vld [vmem:[%s9789_s3 + $0x90] sm:$0xff]  ;;  %v1952_v32 = vld [vmem:[%s9789_s3 + $0x138] sm:$0xff] }
 0x161   : > { %5975 = vmatprep.subr.bf16.mxu1 %v7271_v13  ;;  %v6010_v43 = vpack.c.bf16 %v1932_v39, %v1931_v10  ;;  %v4428_v13 = vld [vmem:[%s7058_s14 + $0x110] sm:$0xff]  ;;  %s528_s14 = scalar_lea.vmem %s9799_s13, %s4396_s21 }
 0x162   : > { %v887_v2 = vadd.f32 %v4590_v48, %v817_v30  ;;  %v1109_v34 = vadd.f32 %v4695_v59, %v7573_v25  ;;  %v1951_v30 = vld [vmem:[%s9789_s3 + $0x130] sm:$0xff] }
 0x163   : > { %v6040_v40 = vpack.c.bf16 %v1952_v32, %v1951_v30  ;;  %v1968_v30 = vld [vmem:[%s9789_s3 + $0x1b8] sm:$0xff] }
 0x164   : > { %v890_v7 = vmax.f32 %v887_v2, 0.0  ;;  %5977 = vmatpush3.bf16.msra.mxu1 %v7287_v20  ;;  %v1933_v20 = vld [vmem:[%s9789_s3 + $0xa0] sm:$0xff] }
 0x165   : > { %5979 = vmatprep.subr.bf16.mxu1 %v7291_v21  ;;  %v1934_v21 = vld [vmem:[%s9789_s3 + $0xa8] sm:$0xff]  ;;  %v1953_v2 = vld [vmem:[%s9789_s3 + $0x140] sm:$0xff] }
 0x166   : > { %5271 = vmatmul.mubr.msk.f32.vlgmr.msra.gmra.mrb[16].mxu0 %vm1986_vm1, %v890_v7  ;;  %v6013_v44 = vpack.c.bf16 %v1934_v21, %v1933_v20  ;;  %v1956_v20 = vld [vmem:[%s9789_s3 + $0x158] sm:$0xff]  ;;  %v1957_v21 = vld [vmem:[%s9789_s3 + $0x160] sm:$0xff] }
 0x167   : > { %6008 = vmatpush3.bf16.msra.mxu0 %v6007_v3  ;;  %5289 = vmatprep.mubr.msk.f32.mxu0 %vm6794_vm0, %v6795_v14  ;;  %v1954_v3 = vld [vmem:[%s9789_s3 + $0x148] sm:$0xff] }
 0x168   : > { %5981 = vmatpush3.bf16.msra.mxu1 %v7301_v26  ;;  %6009 = vmatprep.subr.bf16.mxu0 %v6793_v11  ;;  %v1935_v26 = vld [vmem:[%s9789_s3 + $0xb0] sm:$0xff]  ;;  %v6043_v39 = vpack.c.bf16 %v1954_v3, %v1953_v2  ;;  %v1970_v2 = vld [vmem:[%s9789_s3 + $0x1c8] sm:$0xff] }
 0x169   : > { %v6016_v50 = vpack.c.bf16 %v1936_v49, %v1935_v26  ;;  %v2661_v26 = vld [vmem:[%s9791_s5 + $0x8] sm:$0xff]  ;;  %v2663_v49 = vld [vmem:[%s9791_s5 + $0x18] sm:$0xff] }
 0x16b   : > { %1907 = vmatmul.mubr.f32.vlgmr.msra.gmra.mrb[18].mxu1 %v4428_v13  ;;  %6011 = vmatpush3.bf16.msra.mxu0 %v6010_v43  ;;  %v1955_v13 = vld [vmem:[%s9789_s3 + $0x150] sm:$0xff] }
 0x16c   : > { %6012 = vmatprep.subr.bf16.mxu0 %v6793_v11  ;;  %2744 = vmatprep.mubr.f32.mxu1 %v6795_v14 }
 0x16f   : > { %6014 = vmatpush3.bf16.msra.mxu0 %v6013_v44  ;;  %v1958_v44 = vld [vmem:[%s9789_s3 + $0x168] sm:$0xff] }
 0x170   : > { %6015 = vmatprep.subr.bf16.mxu0 %v6793_v11  ;;  %v6049_v15 = vpack.c.bf16 %v1958_v44, %v1957_v21  ;;  %v1973_v21 = vld [vmem:[%s9789_s3 + $0x1e0] sm:$0xff]  ;;  %v1974_v44 = vld [vmem:[%s9789_s3 + $0x1e8] sm:$0xff] }
 0x173   : > { %6017 = vmatpush3.bf16.msra.mxu0 %v6016_v50  ;;  %v2660_v50 = vld [vmem:[%s9791_s5] sm:$0xff] }
 0x174   : > { %6018 = vmatprep.subr.bf16.mxu0 %v6793_v11 }
 0x17e   : > { %v4658_v56 = vpop.f32.mrb[6].mxu1  ;;  %v4763_v62 = vpop.f32.mrb[6].mxu0 }
 0x17f   : > { %v4659_v63 = vpop.f32.mrb[7].mxu1  ;;  %v4764_v5 = vpop.f32.mrb[7].mxu0 }
 0x180   : > { %v4660_v6 = vadd.f32 %v4659_v63, %v4658_v56  ;;  %v4765_v18 = vadd.f32 %v4764_v5, %v4763_v62  ;;  %v6090_v56 = vpack.c.bf16 %v2663_v49, %v2661_v26  ;;  %v2662_v62 = vld [vmem:[%s9791_s5 + $0x10] sm:$0xff]  ;;  %v2665_v63 = vld [vmem:[%s9791_s5 + $0x28] sm:$0xff]  ;;  %v2667_v5 = vld [vmem:[%s9791_s5 + $0x38] sm:$0xff]  ;;  %v6073_v26 = vpack.c.bf16 %v1974_v44, %v1973_v21 }
 0x181   : > { %v6094_v12 = vpack.c.bf16 %v2667_v5, %v2665_v63  ;;  %v1975_v49 = vld [vmem:[%s9789_s3 + $0x1f0] sm:$0xff]  ;;  %v2794_v21 = vld [vmem:[%s9793_s7 + $0xe0] sm:$0xff]  ;;  %v2799_v44 = vld [vmem:[%s9793_s7 + $0x108] sm:$0xff] }
 0x182   : > { %v1033_v23 = vadd.f32 %v4660_v6, %v963_v55  ;;  %v1255_v41 = vadd.f32 %v4765_v18, %v7573_v25  ;;  %v6046_v55 = vpack.c.bf16 %v1956_v20, %v1955_v13  ;;  %v6092_v6 = vpack.c.bf16 %v2662_v62, %v2660_v50  ;;  %v2666_v18 = vld [vmem:[%s9791_s5 + $0x30] sm:$0xff]  ;;  %6091 = vmatprep.subr.bf16.mxu1 %v6090_v56  ;;  %v1972_v13 = vld [vmem:[%s9789_s3 + $0x1d8] sm:$0xff] }
 0x183   : > { %v1976_v50 = vld [vmem:[%s9789_s3 + $0x1f8] sm:$0xff] }
 0x184   : > { %v1036_v9 = vmax.f32 %v1033_v23, 0.0  ;;  %v2669_v23 = vld [vmem:[%s9791_s5 + $0x48] sm:$0xff]  ;;  %6093 = vmatpush1.bf16.msra.mxu1 %v6092_v6  ;;  %v1977_v6 = vld [vmem:[%s9789_s3 + $0x200] sm:$0xff] }
 0x185   : > { %6095 = vmatprep.subr.bf16.mxu1 %v6094_v12  ;;  %v1978_v12 = vld [vmem:[%s9789_s3 + $0x208] sm:$0xff] }
 0x186   : > { %5290 = vmatmul.mubr.msk.f32.vlgmr.msra.gmra.mrb[16].mxu0 %vm1986_vm1, %v1036_v9  ;;  %v6096_v9 = vpack.c.bf16 %v2666_v18, %v2664_v17  ;;  %v6079_v18 = vpack.c.bf16 %v1978_v12, %v1977_v6  ;;  %v2806_v12 = vld [vmem:[%s9793_s7 + $0x140] sm:$0xff] }
 0x187   : > { %6020 = vmatpush3.bf16.msra.mxu0 %v6019_v8  ;;  %5308 = vmatprep.mubr.msk.f32.mxu0 %vm6794_vm0, %v6795_v14  ;;  %v2671_v8 = vld [vmem:[%s9791_s5 + $0x58] sm:$0xff] }
 0x188   : > { %6021 = vmatprep.subr.bf16.mxu0 %v6793_v11  ;;  %v6098_v16 = vpack.c.bf16 %v2671_v8, %v2669_v23  ;;  %6097 = vmatpush1.bf16.msra.mxu1 %v6096_v9  ;;  %v1979_v8 = vld [vmem:[%s9789_s3 + $0x210] sm:$0xff]  ;;  %v1980_v9 = vld [vmem:[%s9789_s3 + $0x218] sm:$0xff] }
 0x18a   : > { %6099 = vmatprep.subr.bf16.mxu1 %v6098_v16  ;;  %v1981_v16 = vld [vmem:[%s9789_s3 + $0x220] sm:$0xff] }
 0x18b   : > { %6023 = vmatpush3.bf16.msra.mxu0 %v6022_v19  ;;  %v2668_v19 = vld [vmem:[%s9791_s5 + $0x40] sm:$0xff] }
 0x18c   : > { %6024 = vmatprep.subr.bf16.mxu0 %v6793_v11  ;;  %v6100_v29 = vpack.c.bf16 %v2670_v22, %v2668_v19  ;;  %v1982_v19 = vld [vmem:[%s9789_s3 + $0x228] sm:$0xff] }
 0x18d   : > { %v6085_v22 = vpack.c.bf16 %v1982_v19, %v1981_v16  ;;  %v2818_v16 = vld [vmem:[%s9793_s7 + $0x1a0] sm:$0xff]  ;;  %v2823_v19 = vld [vmem:[%s9793_s7 + $0x1c8] sm:$0xff] }
 0x18e   : > { %6101 = vmatpush1.bf16.msra.mxu1 %v6100_v29 }
 0x18f   : > { %6026 = vmatpush3.bf16.msra.mxu0 %v6025_v28  ;;  %v1960_v28 = vld [vmem:[%s9789_s3 + $0x178] sm:$0xff] }
 0x190   : > { %6027 = vmatprep.subr.bf16.mxu0 %v6793_v11  ;;  %v6052_v31 = vpack.c.bf16 %v1960_v28, %v1959_v27  ;;  %v1983_v27 = vld [vmem:[%s9789_s3 + $0x230] sm:$0xff] }
 0x193   : > { %6029 = vmatpush3.bf16.msra.mxu0 %v6028_v33 }
 0x194   : > { %6030 = vmatprep.subr.bf16.mxu0 %v6793_v11 }
 0x19e   : > { %v4728_v35 = vpop.f32.mrb[8].mxu1  ;;  %v4833_v36 = vpop.f32.mrb[8].mxu0 }
 0x19f   : > { %v4729_v37 = vpop.f32.mrb[9].mxu1  ;;  %v4834_v38 = vpop.f32.mrb[9].mxu0 }
 0x1a0   : > { %v4730_v42 = vadd.f32 %v4729_v37, %v4728_v35  ;;  %v7708_v47 = vadd.f32 %v4834_v38, %v4833_v36 }
 0x1a2   : > { %v1179_v52 = vadd.f32 %v4730_v42, %v1109_v34  ;;  %v1401_v33 = vadd.f32 %v7708_v47, %v7573_v25  ;;  %v1961_v42 = vld [vmem:[%s9789_s3 + $0x180] sm:$0xff]  ;;  %v1963_v47 = vld [vmem:[%s9789_s3 + $0x190] sm:$0xff] }
 0x1a3   : > { %v6058_v60 = vpack.c.bf16 %v1964_v57, %v1963_v47  ;;  %v4431_v47 = vld [vmem:[%s9790_s4] ss:$0 sm:$0xff] }
 0x1a4   : > { %v1182_v54 = vmax.f32 %v1179_v52, 0.0  ;;  %v2766_v57 = vld [vmem:[%s9793_s7] sm:$0xff] }
 0x1a6   : > { %5309 = vmatmul.mubr.msk.f32.vlgmr.msra.gmra.mrb[16].mxu0 %vm1986_vm1, %v1182_v54 }
 0x1a7   : > { %6032 = vmatpush3.bf16.msra.mxu0 %v6031_v53  ;;  %5327 = vmatprep.mubr.msk.f32.mxu0 %vm6794_vm0, %v6795_v14  ;;  %v6055_v53 = vpack.c.bf16 %v1962_v45, %v1961_v42  ;;  %v2674_v45 = vld [vmem:[%s9791_s5 + $0x70] sm:$0xff] }
 0x1a8   : > { %6033 = vmatprep.subr.bf16.mxu0 %v6793_v11 }
 0x1ab   : > { %6035 = vmatpush3.bf16.msra.mxu0 %v6034_v61  ;;  %v1965_v61 = vld [vmem:[%s9789_s3 + $0x1a0] sm:$0xff] }
 0x1ac   : > { %6036 = vmatprep.subr.bf16.mxu0 %v6793_v11  ;;  %v6061_v1 = vpack.c.bf16 %v1966_v0, %v1965_v61  ;;  %v2775_v0 = vld [vmem:[%s9793_s7 + $0x48] sm:$0xff] }
 0x1af   : > { %6038 = vmatpush3.bf16.msra.mxu0 %v6037_v24  ;;  %v1967_v24 = vld [vmem:[%s9789_s3 + $0x1b0] sm:$0xff] }
 0x1b0   : > { %6039 = vmatprep.subr.bf16.mxu0 %v6793_v11  ;;  %v6064_v32 = vpack.c.bf16 %v1968_v30, %v1967_v24 }
 0x1b3   : > { %6041 = vmatpush3.bf16.msra.mxu0 %v6040_v40 }
 0x1b4   : > { %6042 = vmatprep.subr.bf16.mxu0 %v6793_v11 }
 0x1be   : > { %v4798_v4 = vpop.f32.mrb[10].mxu1  ;;  %v4903_v48 = vpop.f32.mrb[10].mxu0 }
 0x1bf   : > { %v4799_v51 = vpop.f32.mrb[11].mxu1  ;;  %v4904_v58 = vpop.f32.mrb[11].mxu0 }
 0x1c0   : > { %v4800_v59 = vadd.f32 %v4799_v51, %v4798_v4  ;;  %v7742_v7 = vadd.f32 %v4904_v58, %v4903_v48 }
 0x1c2   : > { %v1325_v10 = vadd.f32 %v4800_v59, %v1255_v41  ;;  %v1547_v40 = vadd.f32 %v7742_v7, %v7573_v25  ;;  %v1969_v59 = vld [vmem:[%s9789_s3 + $0x1c0] sm:$0xff]  ;;  %v1971_v7 = vld [vmem:[%s9789_s3 + $0x1d0] sm:$0xff] }
 0x1c3   : > { %v6070_v20 = vpack.c.bf16 %v1972_v13, %v1971_v7 }
 0x1c4   : > { %v1328_v43 = vmax.f32 %v1325_v10, 0.0 }
 0x1c6   : > { %5328 = vmatmul.mubr.msk.f32.vlgmr.msra.gmra.mrb[16].mxu0 %vm1986_vm1, %v1328_v43 }
 0x1c7   : > { %6044 = vmatpush3.bf16.msra.mxu0 %v6043_v39  ;;  %5346 = vmatprep.mubr.msk.f32.mxu0 %vm6794_vm0, %v6795_v14  ;;  %v6067_v39 = vpack.c.bf16 %v1970_v2, %v1969_v59 }
 0x1c8   : > { %6045 = vmatprep.subr.bf16.mxu0 %v6793_v11 }
 0x1cb   : > { %6047 = vmatpush3.bf16.msra.mxu0 %v6046_v55  ;;  %v6076_v55 = vpack.c.bf16 %v1976_v50, %v1975_v49 }
 0x1cc   : > { %6048 = vmatprep.subr.bf16.mxu0 %v6793_v11 }
 0x1cf   : > { %6050 = vmatpush3.bf16.msra.mxu0 %v6049_v15  ;;  %v6082_v15 = vpack.c.bf16 %v1980_v9, %v1979_v8 }
 0x1d0   : > { %6051 = vmatprep.subr.bf16.mxu0 %v6793_v11 }
 0x1d3   : > { %6053 = vmatpush3.bf16.msra.mxu0 %v6052_v31 }
 0x1d4   : > { %6054 = vmatprep.subr.bf16.mxu0 %v6793_v11 }
 0x1de   : > { %v4868_v34 = vpop.f32.mrb[12].mxu1  ;;  %v4973_v35 = vpop.f32.mrb[12].mxu0 }
 0x1df   : > { %v4869_v36 = vpop.f32.mrb[13].mxu1  ;;  %v4974_v37 = vpop.f32.mrb[13].mxu0 }
 0x1e0   : > { %v4870_v38 = vadd.f32 %v4869_v36, %v4868_v34  ;;  %v4975_v46 = vadd.f32 %v4974_v37, %v4973_v35  ;;  %v2673_v37 = vld [vmem:[%s9791_s5 + $0x68] sm:$0xff] }
 0x1e2   : > { %v1471_v52 = vadd.f32 %v4870_v38, %v1401_v33  ;;  %v1693_v56 = vadd.f32 %v4975_v46, %v7573_v25  ;;  %v2675_v38 = vld [vmem:[%s9791_s5 + $0x78] sm:$0xff] }
 0x1e3   : > { %v6102_v42 = vpack.c.bf16 %v2675_v38, %v2673_v37  ;;  %v2834_v37 = vld [vmem:[%s9793_s7 + $0x220] sm:$0xff]  ;;  %v2839_v38 = vld [vmem:[%s9793_s7 + $0x248] sm:$0xff] }
 0x1e4   : > { %v1474_v54 = vmax.f32 %v1471_v52, 0.0  ;;  %v2767_v52 = vld [vmem:[%s9793_s7 + $0x8] sm:$0xff] }
 0x1e5   : > { %6103 = vmatprep.subr.bf16.mxu1 %v6102_v42  ;;  %v2843_v42 = vld [vmem:[%s9793_s7 + $0x268] sm:$0xff] }
 0x1e6   : > { %5347 = vmatmul.mubr.msk.f32.vlgmr.msra.gmra.mrb[16].mxu0 %vm1986_vm1, %v1474_v54 }
 0x1e7   : > { %6056 = vmatpush3.bf16.msra.mxu0 %v6055_v53  ;;  %5365 = vmatprep.mubr.msk.f32.mxu0 %vm6794_vm0, %v6795_v14  ;;  %v2771_v53 = vld [vmem:[%s9793_s7 + $0x28] sm:$0xff] }
 0x1e8   : > { %6057 = vmatprep.subr.bf16.mxu0 %v6793_v11  ;;  %v6106_v54 = vpack.c.bf16 %v2771_v53, %v2767_v52  ;;  %v2842_v52 = vld [vmem:[%s9793_s7 + $0x260] sm:$0xff]  ;;  %v2847_v53 = vld [vmem:[%s9793_s7 + $0x288] sm:$0xff] }
 0x1eb   : > { %6059 = vmatpush3.bf16.msra.mxu0 %v6058_v60  ;;  %v2770_v60 = vld [vmem:[%s9793_s7 + $0x20] sm:$0xff] }
 0x1ec   : > { %6060 = vmatprep.subr.bf16.mxu0 %v6793_v11 }
 0x1ef   : > { %6062 = vmatpush3.bf16.msra.mxu0 %v6061_v1  ;;  %v2779_v1 = vld [vmem:[%s9793_s7 + $0x68] sm:$0xff] }
 0x1f0   : > { %6063 = vmatprep.subr.bf16.mxu0 %v6793_v11 }
 0x1f3   : > { %6065 = vmatpush3.bf16.msra.mxu0 %v6064_v32  ;;  %v6108_v32 = vpack.c.bf16 %v2770_v60, %v2766_v57  ;;  %v2846_v60 = vld [vmem:[%s9793_s7 + $0x280] sm:$0xff] }
 0x1f4   : > { %6066 = vmatprep.subr.bf16.mxu0 %v6793_v11 }
 0x1fe   : > { %v4938_v41 = vpop.f32.mrb[14].mxu1  ;;  %v5043_v4 = vpop.f32.mrb[14].mxu0 }
 0x1ff   : > { %v4939_v48 = vpop.f32.mrb[15].mxu1  ;;  %v5044_v51 = vpop.f32.mrb[15].mxu0 }
 0x200   : > { %v4940_v58 = vadd.f32 %v4939_v48, %v4938_v41  ;;  %v5045_v3 = vadd.f32 %v5044_v51, %v5043_v4  ;;  %v6110_v41 = vpack.c.bf16 %v2779_v1, %v2775_v0  ;;  %v2774_v4 = vld [vmem:[%s9793_s7 + $0x40] sm:$0xff]  ;;  %v2783_v51 = vld [vmem:[%s9793_s7 + $0x88] sm:$0xff] }
 0x201   : > { %v2778_v48 = vld [vmem:[%s9793_s7 + $0x60] sm:$0xff]  ;;  %v2855_v0 = vld [vmem:[%s9793_s7 + $0x2c8] sm:$0xff] }
 0x202   : > { %v1617_v10 = vadd.f32 %v4940_v58, %v1547_v40  ;;  %v1839_v29 = vadd.f32 %v5045_v3, %v7573_v25  ;;  %v2672_v25 = vld [vmem:[%s9791_s5 + $0x60] sm:$0xff]  ;;  %v2787_v58 = vld [vmem:[%s9793_s7 + $0xa8] sm:$0xff]  ;;  %v6112_v59 = vpack.c.bf16 %v2778_v48, %v2774_v4 }
 0x203   : > { %v6104_v46 = vpack.c.bf16 %v2674_v45, %v2672_v25  ;;  %v6114_v2 = vpack.c.bf16 %v2787_v58, %v2783_v51  ;;  %v2782_v3 = vld [vmem:[%s9793_s7 + $0x80] sm:$0xff]  ;;  %v6142_v45 = vpack.c.bf16 %v2843_v42, %v2839_v38  ;;  %v2859_v1 = vld [vmem:[%s9793_s7 + $0x2e8] sm:$0xff]  ;;  %v3105_v42 = vld [vmem:[%s9795_s9 + $0x158] sm:$0xff] }
 0x204   : > { %v1620_v43 = vmax.f32 %v1617_v10, 0.0  ;;  %v2786_v10 = vld [vmem:[%s9793_s7 + $0xa0] sm:$0xff]  ;;  %v2867_v4 = vld [vmem:[%s9793_s7 + $0x328] sm:$0xff] }
 0x205   : > { %6105 = vmatpush1.bf16.msra.mxu1 %v6104_v46  ;;  %v6116_v7 = vpack.c.bf16 %v2786_v10, %v2782_v3  ;;  %v2838_v46 = vld [vmem:[%s9793_s7 + $0x240] sm:$0xff]  ;;  %v2875_v3 = vld [vmem:[%s9793_s7 + $0x368] sm:$0xff] }
 0x206   : > { %5366 = vmatmul.mubr.msk.f32.vlgmr.msra.gmra.mrb[16].mxu0 %vm1986_vm1, %v1620_v43  ;;  %6107 = vmatprep.subr.bf16.mxu1 %v6106_v54  ;;  %v2795_v43 = vld [vmem:[%s9793_s7 + $0xe8] sm:$0xff]  ;;  %v2862_v58 = vld [vmem:[%s9793_s7 + $0x300] sm:$0xff] }
 0x207   : > { %6068 = vmatpush3.bf16.msra.mxu0 %v6067_v39  ;;  %5384 = vmatprep.mubr.msk.f32.mxu0 %vm6794_vm0, %v6795_v14  ;;  %v2791_v39 = vld [vmem:[%s9793_s7 + $0xc8] sm:$0xff] }
 0x208   : > { %6069 = vmatprep.subr.bf16.mxu0 %v6793_v11  ;;  %v6118_v13 = vpack.c.bf16 %v2795_v43, %v2791_v39  ;;  %v2851_v54 = vld [vmem:[%s9793_s7 + $0x2a8] sm:$0xff]  ;;  %v2870_v43 = vld [vmem:[%s9793_s7 + $0x340] sm:$0xff] }
 0x209   : > { %v6146_v57 = vpack.c.bf16 %v2851_v54, %v2847_v53  ;;  %v3119_v54 = vld [vmem:[%s9795_s9 + $0x1c8] sm:$0xff] }
 0x20b   : > { %6071 = vmatpush3.bf16.msra.mxu0 %v6070_v20  ;;  %v2790_v20 = vld [vmem:[%s9793_s7 + $0xc0] sm:$0xff] }
 0x20c   : > { %6072 = vmatprep.subr.bf16.mxu0 %v6793_v11  ;;  %v6120_v49 = vpack.c.bf16 %v2794_v21, %v2790_v20  ;;  %v2883_v20 = vld [vmem:[%s9793_s7 + $0x3a8] sm:$0xff] }
 0x20f   : > { %6074 = vmatpush3.bf16.msra.mxu0 %v6073_v26  ;;  %v2803_v26 = vld [vmem:[%s9793_s7 + $0x128] sm:$0xff] }
 0x210   : > { %6075 = vmatprep.subr.bf16.mxu0 %v6793_v11  ;;  %v6122_v50 = vpack.c.bf16 %v2803_v26, %v2799_v44  ;;  %v2878_v26 = vld [vmem:[%s9793_s7 + $0x380] sm:$0xff] }
 0x213   : > { %6077 = vmatpush3.bf16.msra.mxu0 %v6076_v55  ;;  %v2798_v55 = vld [vmem:[%s9793_s7 + $0x100] sm:$0xff] }
 0x214   : > { %6078 = vmatprep.subr.bf16.mxu0 %v6793_v11 }
 0x21e   : > { %v5008_v62 = vpop.f32.mrb[16].mxu1 }
 0x21f   : > { %v5009_v63 = vpop.f32.mrb[17].mxu1 }
 0x220   : > { %v5010_v5 = vadd.f32 %v5009_v63, %v5008_v62  ;;  %v2807_v62 = vld [vmem:[%s9793_s7 + $0x148] sm:$0xff] }
 0x221   : > { %v2811_v63 = vld [vmem:[%s9793_s7 + $0x168] sm:$0xff] }
 0x222   : > { %v1763_v17 = vadd.f32 %v5010_v5, %v1693_v56  ;;  %v2802_v56 = vld [vmem:[%s9793_s7 + $0x120] sm:$0xff]  ;;  %v6126_v6 = vpack.c.bf16 %v2811_v63, %v2807_v62 }
 0x223   : > { %v6124_v5 = vpack.c.bf16 %v2802_v56, %v2798_v55  ;;  %v2887_v55 = vld [vmem:[%s9793_s7 + $0x3c8] sm:$0xff]  ;;  %v2886_v63 = vld [vmem:[%s9793_s7 + $0x3c0] sm:$0xff] }
 0x224   : > { %v1766_v23 = vmax.f32 %v1763_v17, 0.0  ;;  %v2810_v17 = vld [vmem:[%s9793_s7 + $0x160] sm:$0xff]  ;;  %v2891_v56 = vld [vmem:[%s9793_s7 + $0x3e8] sm:$0xff] }
 0x225   : > { %v6128_v8 = vpack.c.bf16 %v2810_v17, %v2806_v12  ;;  %v6166_v62 = vpack.c.bf16 %v2891_v56, %v2887_v55  ;;  %v2769_v12 = vld [vmem:[%s9793_s7 + $0x18] sm:$0xff]  ;;  %v3196_v56 = vld [vmem:[%s9795_s9 + $0x430] sm:$0xff] }
 0x226   : > { %5385 = vmatmul.mubr.msk.f32.vlgmr.msra.gmra.mrb[16].mxu0 %vm1986_vm1, %v1766_v23  ;;  %v2819_v23 = vld [vmem:[%s9793_s7 + $0x1a8] sm:$0xff]  ;;  %v2773_v17 = vld [vmem:[%s9793_s7 + $0x38] sm:$0xff] }
 0x227   : > { %6080 = vmatpush3.bf16.msra.mxu0 %v6079_v18  ;;  %5403 = vmatprep.mubr.msk.f32.mxu0 %vm6794_vm0, %v6795_v14  ;;  %v1984_v14 = vld [vmem:[%s9789_s3 + $0x238] sm:$0xff]  ;;  %v2815_v18 = vld [vmem:[%s9793_s7 + $0x188] sm:$0xff] }
 0x228   : > { %6081 = vmatprep.subr.bf16.mxu0 %v6793_v11  ;;  %v6088_v28 = vpack.c.bf16 %v1984_v14, %v1983_v27  ;;  %v6130_v9 = vpack.c.bf16 %v2819_v23, %v2815_v18  ;;  %v6170_v18 = vpack.c.bf16 %v2773_v17, %v2769_v12  ;;  %v3063_v23 = vld [vmem:[%s9795_s9 + $0x8] sm:$0xff]  ;;  %v3189_v55 = vld [vmem:[%s9795_s9 + $0x3f8] sm:$0xff]  ;;  %v3210_v17 = vld [vmem:[%s9795_s9 + $0x4a0] sm:$0xff] }
 0x229   : > { %v3203_v12 = vld [vmem:[%s9795_s9 + $0x468] sm:$0xff] }
 0x22b   : > { %6083 = vmatpush3.bf16.msra.mxu0 %v6082_v15  ;;  %v2814_v15 = vld [vmem:[%s9793_s7 + $0x180] sm:$0xff] }
 0x22c   : > { %6084 = vmatprep.subr.bf16.mxu0 %v6793_v11  ;;  %v6132_v27 = vpack.c.bf16 %v2818_v16, %v2814_v15  ;;  %v3062_v15 = vld [vmem:[%s9795_s9] sm:$0xff]  ;;  %v3069_v16 = vld [vmem:[%s9795_s9 + $0x38] sm:$0xff] }
 0x22f   : > { %6086 = vmatpush3.bf16.msra.mxu0 %v6085_v22  ;;  %v2827_v22 = vld [vmem:[%s9793_s7 + $0x1e8] sm:$0xff] }
 0x230   : > { %6087 = vmatprep.subr.bf16.mxu0 %v6793_v11  ;;  %v6134_v14 = vpack.c.bf16 %v2827_v22, %v2823_v19  ;;  %v6236_v19 = vpack.c.bf16 %v3069_v16, %v3062_v15  ;;  %v3077_v22 = vld [vmem:[%s9795_s9 + $0x78] sm:$0xff]  ;;  %v3224_v16 = vld [vmem:[%s9795_s9 + $0x510] sm:$0xff] }
 0x231   : > { %v3217_v15 = vld [vmem:[%s9795_s9 + $0x4d8] sm:$0xff] }
 0x233   : > { %6089 = vmatpush3.bf16.msra.mxu0 %v6088_v28  ;;  %v2822_v28 = vld [vmem:[%s9793_s7 + $0x1c0] sm:$0xff] }
 0x23e   : > { %v5078_v31 = vpop.f32.mrb[18].mxu1 }
 0x23f   : > { %v5079_v33 = vpop.f32.mrb[19].mxu1 }
 0x240   : > { %v5080_v34 = vadd.f32 %v5079_v33, %v5078_v31  ;;  %v2831_v31 = vld [vmem:[%s9793_s7 + $0x208] sm:$0xff] }
 0x241   : > { %v2835_v33 = vld [vmem:[%s9793_s7 + $0x228] sm:$0xff] }
 0x242   : > { %v1909_v35 = vadd.f32 %v5080_v34, %v1839_v29  ;;  %v2826_v29 = vld [vmem:[%s9793_s7 + $0x1e0] sm:$0xff] }
 0x243   : > { %v6136_v34 = vpack.c.bf16 %v2826_v29, %v2822_v28  ;;  %v3076_v28 = vld [vmem:[%s9795_s9 + $0x70] sm:$0xff]  ;;  %v3083_v29 = vld [vmem:[%s9795_s9 + $0xa8] sm:$0xff] }
 0x244   : > { %v1912_v36 = vmax.f32 %v1909_v35, 0.0  ;;  %v6138_v35 = vpack.c.bf16 %v2835_v33, %v2831_v31  ;;  %v6240_v31 = vpack.c.bf16 %v3083_v29, %v3076_v28  ;;  %v3091_v33 = vld [vmem:[%s9795_s9 + $0xe8] sm:$0xff] }
 0x245   : > { %v3231_v29 = vld [vmem:[%s9795_s9 + $0x548] sm:$0xff] }
 0x246   : > { %5404 = vmatmul.mubr.msk.f32.vlgmr.msra.gmra.mrb[16].mxu0 %vm1986_vm1, %v1912_v36  ;;  %v2830_v36 = vld [vmem:[%s9793_s7 + $0x200] sm:$0xff] }
 0x247   : > { %v6140_v25 = vpack.c.bf16 %v2834_v37, %v2830_v36  ;;  %v3090_v36 = vld [vmem:[%s9795_s9 + $0xe0] sm:$0xff]  ;;  %v3097_v37 = vld [vmem:[%s9795_s9 + $0x118] sm:$0xff] }
 0x248   : > { %v6244_v38 = vpack.c.bf16 %v3097_v37, %v3090_v36  ;;  %v3237_v36 = vld [vmem:[%s9795_s9 + $0x578] sm:$0xff] }
 0x319   : > { %v2654_v61 = vpop.f32.mrb[16].mxu0 }
 0x31a   : > { %v6706_v24 = vadd.f32 %v4431_v47, %v2654_v61  ;;  %v5405_v30 = vpop.f32.mrb[17].mxu0  ;;  %v6144_v47 = vpack.c.bf16 %v2842_v52, %v2838_v46  ;;  %v2850_v61 = vld [vmem:[%s9793_s7 + $0x2a0] sm:$0xff]  ;;  %v3104_v46 = vld [vmem:[%s9795_s9 + $0x150] sm:$0xff]  ;;  %v3111_v52 = vld [vmem:[%s9795_s9 + $0x188] sm:$0xff] }
 0x31b   : > { %v6150_v30 = vpack.c.bf16 %v2859_v1, %v2855_v0  ;;  %v6248_v53 = vpack.c.bf16 %v3111_v52, %v3104_v46  ;;  %v3133_v1 = vld [vmem:[%s9795_s9 + $0x238] sm:$0xff]  ;;  %v3244_v46 = vld [vmem:[%s9795_s9 + $0x5b0] sm:$0xff]  ;;  %v3251_v52 = vld [vmem:[%s9795_s9 + $0x5e8] sm:$0xff] }
 0x31c   : > { %v2659_v40 = vmax.f32 %v6706_v24, 0.0  ;;  %v6148_v24 = vpack.c.bf16 %v2850_v61, %v2846_v60  ;;  %v3118_v60 = vld [vmem:[%s9795_s9 + $0x1c0] sm:$0xff]  ;;  %v3125_v61 = vld [vmem:[%s9795_s9 + $0x1f8] sm:$0xff] }
 0x31d   : > { %v6252_v0 = vpack.c.bf16 %v3125_v61, %v3118_v60  ;;  %v3266_v60 = vld [vmem:[%s9795_s9 + $0x660] sm:$0xff] }
 0x31e   : > { %4440 = vmatmul.mubr.msk.f32.vlgmr.msra.gmra.mrb[20].mxu1 %vm1986_vm1, %v2659_v40  ;;  %v2858_v40 = vld [vmem:[%s9793_s7 + $0x2e0] sm:$0xff] }
 0x31f   : > { %6109 = vmatpush1.bf16.msra.mxu1 %v6108_v32  ;;  %v2854_v32 = vld [vmem:[%s9793_s7 + $0x2c0] sm:$0xff] }
 0x320   : > { %6111 = vmatprep.subr.bf16.mxu1 %v6110_v41  ;;  %v2863_v41 = vld [vmem:[%s9793_s7 + $0x308] sm:$0xff]  ;;  %v6152_v48 = vpack.c.bf16 %v2858_v40, %v2854_v32  ;;  %v3132_v32 = vld [vmem:[%s9795_s9 + $0x230] sm:$0xff] }
 0x321   : > { %v6154_v51 = vpack.c.bf16 %v2867_v4, %v2863_v41  ;;  %v3139_v40 = vld [vmem:[%s9795_s9 + $0x268] sm:$0xff] }
 0x322   : > { %v6256_v41 = vpack.c.bf16 %v3139_v40, %v3132_v32  ;;  %v3147_v4 = vld [vmem:[%s9795_s9 + $0x2a8] sm:$0xff]  ;;  %v2768_v40 = vld [vmem:[%s9793_s7 + $0x10] sm:$0xff] }
 0x323   : > { %6113 = vmatpush1.bf16.msra.mxu1 %v6112_v59  ;;  %v2866_v59 = vld [vmem:[%s9793_s7 + $0x320] sm:$0xff] }
 0x324   : > { %6115 = vmatprep.subr.bf16.mxu1 %v6114_v2  ;;  %v2871_v2 = vld [vmem:[%s9793_s7 + $0x348] sm:$0xff]  ;;  %v6156_v10 = vpack.c.bf16 %v2866_v59, %v2862_v58  ;;  %v3146_v58 = vld [vmem:[%s9795_s9 + $0x2a0] sm:$0xff]  ;;  %v3153_v59 = vld [vmem:[%s9795_s9 + $0x2d8] sm:$0xff] }
 0x325   : > { %v6158_v39 = vpack.c.bf16 %v2875_v3, %v2871_v2  ;;  %v6260_v2 = vpack.c.bf16 %v3153_v59, %v3146_v58  ;;  %v3161_v3 = vld [vmem:[%s9795_s9 + $0x318] sm:$0xff] }
 0x327   : > { %6117 = vmatpush1.bf16.msra.mxu1 %v6116_v7  ;;  %v2874_v7 = vld [vmem:[%s9793_s7 + $0x360] sm:$0xff] }
 0x328   : > { %6119 = vmatprep.subr.bf16.mxu1 %v6118_v13  ;;  %v2879_v13 = vld [vmem:[%s9793_s7 + $0x388] sm:$0xff]  ;;  %v6160_v21 = vpack.c.bf16 %v2874_v7, %v2870_v43  ;;  %v3160_v43 = vld [vmem:[%s9795_s9 + $0x310] sm:$0xff] }
 0x329   : > { %v6162_v44 = vpack.c.bf16 %v2883_v20, %v2879_v13  ;;  %v3167_v7 = vld [vmem:[%s9795_s9 + $0x348] sm:$0xff] }
 0x32a   : > { %v6264_v13 = vpack.c.bf16 %v3167_v7, %v3160_v43  ;;  %v3175_v20 = vld [vmem:[%s9795_s9 + $0x388] sm:$0xff]  ;;  %v2785_v43 = vld [vmem:[%s9793_s7 + $0x98] sm:$0xff] }
 0x32b   : > { %6121 = vmatpush1.bf16.msra.mxu1 %v6120_v49  ;;  %v2882_v49 = vld [vmem:[%s9793_s7 + $0x3a0] sm:$0xff]  ;;  %v2789_v7 = vld [vmem:[%s9793_s7 + $0xb8] sm:$0xff] }
 0x32c   : > { %6123 = vmatprep.subr.bf16.mxu1 %v6122_v50  ;;  %v6164_v50 = vpack.c.bf16 %v2882_v49, %v2878_v26  ;;  %v3174_v26 = vld [vmem:[%s9795_s9 + $0x380] sm:$0xff]  ;;  %v3181_v49 = vld [vmem:[%s9795_s9 + $0x3b8] sm:$0xff] }
 0x32f   : > { %6125 = vmatpush1.bf16.msra.mxu1 %v6124_v5  ;;  %v2890_v5 = vld [vmem:[%s9793_s7 + $0x3e0] sm:$0xff] }
 0x330   : > { %6127 = vmatprep.subr.bf16.mxu1 %v6126_v6  ;;  %v6168_v6 = vpack.c.bf16 %v2890_v5, %v2886_v63  ;;  %v3188_v63 = vld [vmem:[%s9795_s9 + $0x3f0] sm:$0xff]  ;;  %v3195_v5 = vld [vmem:[%s9795_s9 + $0x428] sm:$0xff] }
 0x333   : > { %6129 = vmatpush1.bf16.msra.mxu1 %v6128_v8  ;;  %v3070_v8 = vld [vmem:[%s9795_s9 + $0x40] sm:$0xff] }
 0x334   : > { %6131 = vmatprep.subr.bf16.mxu1 %v6130_v9  ;;  %v6234_v9 = vpack.c.bf16 %v3070_v8, %v3063_v23  ;;  %v3202_v23 = vld [vmem:[%s9795_s9 + $0x460] sm:$0xff]  ;;  %v3209_v8 = vld [vmem:[%s9795_s9 + $0x498] sm:$0xff] }
 0x336   : > { %6235 = vmatprep.subr.bf16.mxu0 %v6234_v9  ;;  %v6276_v9 = vpack.c.bf16 %v3209_v8, %v3202_v23  ;;  %v2809_v23 = vld [vmem:[%s9793_s7 + $0x158] sm:$0xff] }
 0x337   : > { %6133 = vmatpush1.bf16.msra.mxu1 %v6132_v27  ;;  %v3084_v27 = vld [vmem:[%s9795_s9 + $0xb0] sm:$0xff]  ;;  %6237 = vmatpush1.bf16.msra.mxu0 %v6236_v19  ;;  %v2752_v19 = vlaneseq  ;;  %v2813_v8 = vld [vmem:[%s9793_s7 + $0x178] sm:$0xff] }
 0x338   : > { %6135 = vmatprep.subr.bf16.mxu1 %v6134_v14  ;;  %v6238_v14 = vpack.c.bf16 %v3084_v27, %v3077_v22  ;;  %v6278_v22 = vpack.c.bf16 %v3224_v16, %v3217_v15  ;;  %v3216_v27 = vld [vmem:[%s9795_s9 + $0x4d0] sm:$0xff]  ;;  %v6190_v15 = vpack.c.bf16 %v2813_v8, %v2809_v23 }
 0x339   : > { %v2808_v16 = vld [vmem:[%s9793_s7 + $0x150] sm:$0xff] }
 0x33a   : > { %6239 = vmatprep.subr.bf16.mxu0 %v6238_v14  ;;  %v3223_v14 = vld [vmem:[%s9795_s9 + $0x508] sm:$0xff]  ;;  %v2880_v8 = vld [vmem:[%s9793_s7 + $0x390] sm:$0xff] }
 0x33b   : > { %6137 = vmatpush1.bf16.msra.mxu1 %v6136_v34  ;;  %v3098_v34 = vld [vmem:[%s9795_s9 + $0x120] sm:$0xff]  ;;  %6241 = vmatpush1.bf16.msra.mxu0 %v6240_v31  ;;  %v6280_v28 = vpack.c.bf16 %v3223_v14, %v3216_v27  ;;  %v2817_v27 = vld [vmem:[%s9793_s7 + $0x198] sm:$0xff] }
 0x33c   : > { %6139 = vmatprep.subr.bf16.mxu1 %v6138_v35  ;;  %v6242_v35 = vpack.c.bf16 %v3098_v34, %v3091_v33  ;;  %v3238_v31 = vld [vmem:[%s9795_s9 + $0x580] sm:$0xff]  ;;  %v8269_v33 = vshrl.u32 %v2752_v19, 7  ;;  %v2821_v14 = vld [vmem:[%s9793_s7 + $0x1b8] sm:$0xff] }
 0x33d   : > { %v6282_v34 = vpack.c.bf16 %v3238_v31, %v3231_v29  ;;  %v6194_v29 = vpack.c.bf16 %v2821_v14, %v2817_v27  ;;  %v2816_v31 = vld [vmem:[%s9793_s7 + $0x190] sm:$0xff] }
 0x33e   : > { %6243 = vmatprep.subr.bf16.mxu0 %v6242_v35  ;;  %v3230_v35 = vld [vmem:[%s9795_s9 + $0x540] sm:$0xff]  ;;  %v2888_v14 = vld [vmem:[%s9793_s7 + $0x3d0] sm:$0xff] }
 0x33f   : > { %6141 = vmatpush1.bf16.msra.mxu1 %v6140_v25  ;;  %v3112_v25 = vld [vmem:[%s9795_s9 + $0x190] sm:$0xff]  ;;  %6245 = vmatpush1.bf16.msra.mxu0 %v6244_v38  ;;  %v6284_v37 = vpack.c.bf16 %v3237_v36, %v3230_v35  ;;  %v3245_v38 = vld [vmem:[%s9795_s9 + $0x5b8] sm:$0xff] }
 0x340   : > { %6143 = vmatprep.subr.bf16.mxu1 %v6142_v45  ;;  %v6246_v45 = vpack.c.bf16 %v3112_v25, %v3105_v42  ;;  %v3252_v42 = vld [vmem:[%s9795_s9 + $0x5f0] sm:$0xff]  ;;  %v8284_v25 = vsub.s32 0, %v8269_v33  ;;  %v2825_v35 = vld [vmem:[%s9793_s7 + $0x1d8] sm:$0xff] }
 0x341   : > { %v2829_v36 = vld [vmem:[%s9793_s7 + $0x1f8] sm:$0xff] }
 0x342   : > { %6247 = vmatprep.subr.bf16.mxu0 %v6246_v45  ;;  %v6286_v45 = vpack.c.bf16 %v3252_v42, %v3245_v38  ;;  %v6198_v38 = vpack.c.bf16 %v2829_v36, %v2825_v35  ;;  %v2824_v42 = vld [vmem:[%s9793_s7 + $0x1d0] sm:$0xff] }
 0x343   : > { %6145 = vmatpush1.bf16.msra.mxu1 %v6144_v47  ;;  %v3126_v47 = vld [vmem:[%s9795_s9 + $0x200] sm:$0xff]  ;;  %6249 = vmatpush1.bf16.msra.mxu0 %v6248_v53  ;;  %v3064_v36 = vld [vmem:[%s9795_s9 + $0x10] sm:$0xff] }
 0x344   : > { %6147 = vmatprep.subr.bf16.mxu1 %v6146_v57  ;;  %v6250_v57 = vpack.c.bf16 %v3126_v47, %v3119_v54  ;;  %v2676_v53 = vld [vmem:[%s9792_s6] sm:$0x3]  ;;  %v8296_v54 = vsub.s32 1, %v8269_v33  ;;  %v6288_v47 = vpack.c.bf16 %v3251_v52, %v3244_v46  ;;  %v2833_v46 = vld [vmem:[%s9793_s7 + $0x218] sm:$0xff] }
 0x345   : > { %v2755_v61 = vrot.slane %v2676_v53, %v8284_v25  ;;  %v2837_v52 = vld [vmem:[%s9793_s7 + $0x238] sm:$0xff] }
 0x346   : > { %6251 = vmatprep.subr.bf16.mxu0 %v6250_v57  ;;  %v3259_v57 = vld [vmem:[%s9795_s9 + $0x628] sm:$0xff] }
 0x347   : > { %6149 = vmatpush1.bf16.msra.mxu1 %v6148_v24  ;;  %v3140_v24 = vld [vmem:[%s9795_s9 + $0x270] sm:$0xff]  ;;  %6253 = vmatpush1.bf16.msra.mxu0 %v6252_v0  ;;  %v6290_v0 = vpack.c.bf16 %v3266_v60, %v3259_v57 }
 0x348   : > { %6151 = vmatprep.subr.bf16.mxu1 %v6150_v30  ;;  %v6254_v30 = vpack.c.bf16 %v3140_v24, %v3133_v1  ;;  %v2759_v1 = vrot.slane %v2676_v53, %v8296_v54  ;;  %v2832_v57 = vld [vmem:[%s9793_s7 + $0x210] sm:$0xff] }
 0x349   : > { %v2836_v60 = vld [vmem:[%s9793_s7 + $0x230] sm:$0xff] }
 0x34a   : > { %6255 = vmatprep.subr.bf16.mxu0 %v6254_v30 }
 0x34b   : > { %6153 = vmatpush1.bf16.msra.mxu1 %v6152_v48  ;;  %v3154_v48 = vld [vmem:[%s9795_s9 + $0x2e0] sm:$0xff]  ;;  %6257 = vmatpush1.bf16.msra.mxu0 %v6256_v41  ;;  %v2772_v41 = vld [vmem:[%s9793_s7 + $0x30] sm:$0xff] }
 0x34c   : > { %6155 = vmatprep.subr.bf16.mxu1 %v6154_v51  ;;  %v6258_v51 = vpack.c.bf16 %v3154_v48, %v3147_v4  ;;  %v2777_v48 = vld [vmem:[%s9793_s7 + $0x58] sm:$0xff]  ;;  %v6172_v59 = vpack.c.bf16 %v2772_v41, %v2768_v40  ;;  %v2844_v40 = vld [vmem:[%s9793_s7 + $0x270] sm:$0xff] }
 0x34d   : > { %v2849_v41 = vld [vmem:[%s9793_s7 + $0x298] sm:$0xff] }
 0x34e   : > { %6259 = vmatprep.subr.bf16.mxu0 %v6258_v51  ;;  %v2781_v51 = vld [vmem:[%s9793_s7 + $0x78] sm:$0xff] }
 0x34f   : > { %6157 = vmatpush1.bf16.msra.mxu1 %v6156_v10  ;;  %v3168_v10 = vld [vmem:[%s9795_s9 + $0x350] sm:$0xff]  ;;  %6261 = vmatpush1.bf16.msra.mxu0 %v6260_v2 }
 0x350   : > { %6159 = vmatprep.subr.bf16.mxu1 %v6158_v39  ;;  %v6262_v39 = vpack.c.bf16 %v3168_v10, %v3161_v3  ;;  %v6174_v3 = vpack.c.bf16 %v2781_v51, %v2777_v48  ;;  %v2776_v10 = vld [vmem:[%s9793_s7 + $0x50] sm:$0xff] }
 0x352   : > { %6263 = vmatprep.subr.bf16.mxu0 %v6262_v39  ;;  %v2780_v39 = vld [vmem:[%s9793_s7 + $0x70] sm:$0xff] }
 0x353   : > { %6161 = vmatpush1.bf16.msra.mxu1 %v6160_v21  ;;  %v3182_v21 = vld [vmem:[%s9795_s9 + $0x3c0] sm:$0xff]  ;;  %6265 = vmatpush1.bf16.msra.mxu0 %v6264_v13  ;;  %v6176_v13 = vpack.c.bf16 %v2780_v39, %v2776_v10  ;;  %v2861_v10 = vld [vmem:[%s9793_s7 + $0x2f8] sm:$0xff] }
 0x354   : > { %6163 = vmatprep.subr.bf16.mxu1 %v6162_v44  ;;  %v6266_v44 = vpack.c.bf16 %v3182_v21, %v3175_v20  ;;  %v6178_v20 = vpack.c.bf16 %v2789_v7, %v2785_v43  ;;  %v2784_v21 = vld [vmem:[%s9793_s7 + $0x90] sm:$0xff] }
 0x355   : > { %v2856_v7 = vld [vmem:[%s9793_s7 + $0x2d0] sm:$0xff] }
 0x356   : > { %6267 = vmatprep.subr.bf16.mxu0 %v6266_v44  ;;  %v2788_v44 = vld [vmem:[%s9793_s7 + $0xb0] sm:$0xff] }
 0x357   : > { %6165 = vmatpush1.bf16.msra.mxu1 %v6164_v50  ;;  %v6268_v50 = vpack.c.bf16 %v3181_v49, %v3174_v26  ;;  %v2793_v26 = vld [vmem:[%s9793_s7 + $0xd8] sm:$0xff] }
 0x358   : > { %6167 = vmatprep.subr.bf16.mxu1 %v6166_v62  ;;  %v6270_v62 = vpack.c.bf16 %v3196_v56, %v3189_v55  ;;  %v2797_v49 = vld [vmem:[%s9793_s7 + $0xf8] sm:$0xff]  ;;  %v2792_v56 = vld [vmem:[%s9793_s7 + $0xd0] sm:$0xff] }
 0x359   : > { %6269 = vmatpush1.bf16.msra.mxu0 %v6268_v50  ;;  %v6180_v50 = vpack.c.bf16 %v2788_v44, %v2784_v21  ;;  %v6182_v55 = vpack.c.bf16 %v2797_v49, %v2793_v26  ;;  %v2869_v21 = vld [vmem:[%s9793_s7 + $0x338] sm:$0xff]  ;;  %v2864_v49 = vld [vmem:[%s9793_s7 + $0x310] sm:$0xff] }
 0x35a   : > { %6271 = vmatprep.subr.bf16.mxu0 %v6270_v62  ;;  %v2796_v62 = vld [vmem:[%s9793_s7 + $0xf0] sm:$0xff] }
 0x35b   : > { %6169 = vmatpush1.bf16.msra.mxu1 %v6168_v6  ;;  %v6272_v6 = vpack.c.bf16 %v3195_v5, %v3188_v63  ;;  %v2801_v63 = vld [vmem:[%s9793_s7 + $0x118] sm:$0xff] }
 0x35c   : > { %6171 = vmatprep.subr.bf16.mxu1 %v6170_v18  ;;  %v6274_v18 = vpack.c.bf16 %v3210_v17, %v3203_v12  ;;  %v2805_v5 = vld [vmem:[%s9793_s7 + $0x138] sm:$0xff]  ;;  %v2800_v17 = vld [vmem:[%s9793_s7 + $0x110] sm:$0xff] }
 0x35d   : > { %6273 = vmatpush1.bf16.msra.mxu0 %v6272_v6  ;;  %v6184_v6 = vpack.c.bf16 %v2796_v62, %v2792_v56  ;;  %v6186_v12 = vpack.c.bf16 %v2805_v5, %v2801_v63  ;;  %v2877_v56 = vld [vmem:[%s9793_s7 + $0x378] sm:$0xff]  ;;  %v2872_v5 = vld [vmem:[%s9793_s7 + $0x350] sm:$0xff] }
 0x35e   : > { %6275 = vmatprep.subr.bf16.mxu0 %v6274_v18  ;;  %v2804_v18 = vld [vmem:[%s9793_s7 + $0x130] sm:$0xff] }
 0x361   : > { %6277 = vmatpush1.bf16.msra.mxu0 %v6276_v9  ;;  %v6188_v9 = vpack.c.bf16 %v2804_v18, %v2800_v17  ;;  %v2885_v17 = vld [vmem:[%s9793_s7 + $0x3b8] sm:$0xff] }
 0x362   : > { %6279 = vmatprep.subr.bf16.mxu0 %v6278_v22  ;;  %v2812_v22 = vld [vmem:[%s9793_s7 + $0x170] sm:$0xff] }
 0x365   : > { %6281 = vmatpush1.bf16.msra.mxu0 %v6280_v28  ;;  %v6192_v28 = vpack.c.bf16 %v2812_v22, %v2808_v16  ;;  %v2893_v16 = vld [vmem:[%s9793_s7 + $0x3f8] sm:$0xff] }
 0x366   : > { %6283 = vmatprep.subr.bf16.mxu0 %v6282_v34  ;;  %v2820_v34 = vld [vmem:[%s9793_s7 + $0x1b0] sm:$0xff] }
 0x369   : > { %6285 = vmatpush1.bf16.msra.mxu0 %v6284_v37  ;;  %v6196_v37 = vpack.c.bf16 %v2820_v34, %v2816_v31  ;;  %v3072_v31 = vld [vmem:[%s9795_s9 + $0x50] sm:$0xff] }
 0x36a   : > { %6287 = vmatprep.subr.bf16.mxu0 %v6286_v45  ;;  %v2828_v45 = vld [vmem:[%s9793_s7 + $0x1f0] sm:$0xff] }
 0x36b   : > { %v6200_v53 = vpack.c.bf16 %v2828_v45, %v2824_v42  ;;  %v3086_v42 = vld [vmem:[%s9795_s9 + $0xc0] sm:$0xff] }
 0x36d   : > { %6289 = vmatpush1.bf16.msra.mxu0 %v6288_v47  ;;  %v6202_v47 = vpack.c.bf16 %v2837_v52, %v2833_v46  ;;  %v3078_v52 = vld [vmem:[%s9795_s9 + $0x80] sm:$0xff] }
 0x36e   : > { %6291 = vmatprep.subr.bf16.mxu0 %v6290_v0  ;;  %v2845_v0 = vld [vmem:[%s9793_s7 + $0x278] sm:$0xff] }
 0x3f1   : > { %v2746_v24 = vpop.f32.mrb[20].mxu1 }
 0x3f2   : > { %v8306_v30 = vadd.f32 %v2755_v61, %v2746_v24  ;;  %v2748_v32 = vpop.f32.mrb[21].mxu1  ;;  %v2841_v61 = vld [vmem:[%s9793_s7 + $0x258] sm:$0xff] }
 0x3f3   : > { %v2763_v4 = vadd.f32 %v2759_v1, %v2748_v32  ;;  %v6204_v1 = vpack.c.bf16 %v2836_v60, %v2832_v57  ;;  %v6206_v24 = vpack.c.bf16 %v2845_v0, %v2841_v61  ;;  %v2840_v32 = vld [vmem:[%s9793_s7 + $0x250] sm:$0xff] }
 0x3f4   : > { %v2764_v2 = vmax.f32 %v8306_v30, 0.0  ;;  %v6208_v48 = vpack.c.bf16 %v2844_v40, %v2840_v32  ;;  %v3100_v57 = vld [vmem:[%s9795_s9 + $0x130] sm:$0xff]  ;;  %v3114_v30 = vld [vmem:[%s9795_s9 + $0x1a0] sm:$0xff] }
 0x3f5   : > { %v2765_v58 = vmax.f32 %v2763_v4, 0.0  ;;  %v2853_v4 = vld [vmem:[%s9793_s7 + $0x2b8] sm:$0xff]  ;;  %v3092_v0 = vld [vmem:[%s9795_s9 + $0xf0] sm:$0xff]  ;;  %v3106_v40 = vld [vmem:[%s9795_s9 + $0x160] sm:$0xff] }
 0x3f6   : > { %v6210_v51 = vpack.c.bf16 %v2853_v4, %v2849_v41  ;;  %v3113_v41 = vld [vmem:[%s9795_s9 + $0x198] sm:$0xff] }
 0x3f7   : > { %2980 = vmatprep.mubr.f32.mxu1 %v2765_v58  ;;  %v3121_v4 = vld [vmem:[%s9795_s9 + $0x1d8] sm:$0xff] }
 0x3f8   : > { %2981 = vmatmul.mubr.f32.vlgmr.msra.gmra.mrb[22].mxu1 %v2764_v2 }
 0x3f9   : > { %6173 = vmatpush1.bf16.msra.mxu1 %v6172_v59  ;;  %3051 = vmatprep.mubr.f32.mxu1 %v2765_v58  ;;  %v2848_v58 = vld [vmem:[%s9793_s7 + $0x290] sm:$0xff] }
 0x3fa   : > { %6175 = vmatprep.subr.bf16.mxu1 %v6174_v3  ;;  %v2852_v59 = vld [vmem:[%s9793_s7 + $0x2b0] sm:$0xff]  ;;  %v2857_v3 = vld [vmem:[%s9793_s7 + $0x2d8] sm:$0xff] }
 0x3fb   : > { %v6212_v39 = vpack.c.bf16 %v2852_v59, %v2848_v58  ;;  %v6214_v43 = vpack.c.bf16 %v2861_v10, %v2857_v3  ;;  %v3120_v59 = vld [vmem:[%s9795_s9 + $0x1d0] sm:$0xff]  ;;  %v3127_v3 = vld [vmem:[%s9795_s9 + $0x208] sm:$0xff] }
 0x3fc   : > { %v3135_v10 = vld [vmem:[%s9795_s9 + $0x248] sm:$0xff] }
 0x3fd   : > { %6177 = vmatpush1.bf16.msra.mxu1 %v6176_v13  ;;  %v2860_v13 = vld [vmem:[%s9793_s7 + $0x2f0] sm:$0xff] }
 0x3fe   : > { %6179 = vmatprep.subr.bf16.mxu1 %v6178_v20  ;;  %v2865_v20 = vld [vmem:[%s9793_s7 + $0x318] sm:$0xff]  ;;  %v6216_v44 = vpack.c.bf16 %v2860_v13, %v2856_v7  ;;  %v3134_v13 = vld [vmem:[%s9795_s9 + $0x240] sm:$0xff] }
 0x3ff   : > { %v6218_v26 = vpack.c.bf16 %v2869_v21, %v2865_v20  ;;  %v3141_v20 = vld [vmem:[%s9795_s9 + $0x278] sm:$0xff] }
 0x400   : > { %v3149_v21 = vld [vmem:[%s9795_s9 + $0x2b8] sm:$0xff] }
 0x401   : > { %6181 = vmatpush1.bf16.msra.mxu1 %v6180_v50  ;;  %v2868_v50 = vld [vmem:[%s9793_s7 + $0x330] sm:$0xff] }
 0x402   : > { %6183 = vmatprep.subr.bf16.mxu1 %v6182_v55  ;;  %v2873_v55 = vld [vmem:[%s9793_s7 + $0x358] sm:$0xff]  ;;  %v6220_v62 = vpack.c.bf16 %v2868_v50, %v2864_v49  ;;  %v3258_v49 = vld [vmem:[%s9795_s9 + $0x620] sm:$0xff] }
 0x403   : > { %v6222_v63 = vpack.c.bf16 %v2877_v56, %v2873_v55  ;;  %v3265_v50 = vld [vmem:[%s9795_s9 + $0x658] sm:$0xff]  ;;  %v3148_v56 = vld [vmem:[%s9795_s9 + $0x2b0] sm:$0xff] }
 0x405   : > { %6185 = vmatpush1.bf16.msra.mxu1 %v6184_v6  ;;  %v2876_v6 = vld [vmem:[%s9793_s7 + $0x370] sm:$0xff] }
 0x406   : > { %6187 = vmatprep.subr.bf16.mxu1 %v6186_v12  ;;  %v2881_v12 = vld [vmem:[%s9793_s7 + $0x398] sm:$0xff]  ;;  %v6224_v18 = vpack.c.bf16 %v2876_v6, %v2872_v5  ;;  %v3163_v5 = vld [vmem:[%s9795_s9 + $0x328] sm:$0xff]  ;;  %v3170_v6 = vld [vmem:[%s9795_s9 + $0x360] sm:$0xff] }
 0x407   : > { %v6226_v23 = vpack.c.bf16 %v2885_v17, %v2881_v12  ;;  %v3273_v12 = vld [vmem:[%s9795_s9 + $0x698] sm:$0xff]  ;;  %v3280_v17 = vld [vmem:[%s9795_s9 + $0x6d0] sm:$0xff] }
 0x409   : > { %6189 = vmatpush1.bf16.msra.mxu1 %v6188_v9  ;;  %v2884_v9 = vld [vmem:[%s9793_s7 + $0x3b0] sm:$0xff] }
 0x40a   : > { %6191 = vmatprep.subr.bf16.mxu1 %v6190_v15  ;;  %v2889_v15 = vld [vmem:[%s9793_s7 + $0x3d8] sm:$0xff]  ;;  %v6228_v22 = vpack.c.bf16 %v2884_v9, %v2880_v8  ;;  %v3272_v8 = vld [vmem:[%s9795_s9 + $0x690] sm:$0xff]  ;;  %v3279_v9 = vld [vmem:[%s9795_s9 + $0x6c8] sm:$0xff] }
 0x40b   : > { %v6230_v27 = vpack.c.bf16 %v2893_v16, %v2889_v15  ;;  %v6374_v15 = vpack.c.bf16 %v3170_v6, %v3163_v5  ;;  %v3162_v16 = vld [vmem:[%s9795_s9 + $0x320] sm:$0xff] }
 0x40d   : > { %6193 = vmatpush1.bf16.msra.mxu1 %v6192_v28  ;;  %v2892_v28 = vld [vmem:[%s9793_s7 + $0x3f0] sm:$0xff] }
 0x40e   : > { %6195 = vmatprep.subr.bf16.mxu1 %v6194_v29  ;;  %v3065_v29 = vld [vmem:[%s9795_s9 + $0x18] sm:$0xff]  ;;  %v6232_v34 = vpack.c.bf16 %v2892_v28, %v2888_v14  ;;  %v3184_v28 = vld [vmem:[%s9795_s9 + $0x3d0] sm:$0xff] }
 0x40f   : > { %v6346_v35 = vpack.c.bf16 %v3072_v31, %v3065_v29  ;;  %v3177_v14 = vld [vmem:[%s9795_s9 + $0x398] sm:$0xff]  ;;  %v3176_v31 = vld [vmem:[%s9795_s9 + $0x390] sm:$0xff] }
 0x411   : > { %6197 = vmatpush1.bf16.msra.mxu1 %v6196_v37  ;;  %v3071_v37 = vld [vmem:[%s9795_s9 + $0x48] sm:$0xff] }
 0x412   : > { %6199 = vmatprep.subr.bf16.mxu1 %v6198_v38  ;;  %v3079_v38 = vld [vmem:[%s9795_s9 + $0x88] sm:$0xff]  ;;  %v6348_v45 = vpack.c.bf16 %v3071_v37, %v3064_v36  ;;  %v3294_v37 = vld [vmem:[%s9795_s9 + $0x740] sm:$0xff] }
 0x413   : > { %v6350_v46 = vpack.c.bf16 %v3086_v42, %v3079_v38  ;;  %v3287_v36 = vld [vmem:[%s9795_s9 + $0x708] sm:$0xff]  ;;  %v3198_v42 = vld [vmem:[%s9795_s9 + $0x440] sm:$0xff] }
 0x414   : > { %v3191_v38 = vld [vmem:[%s9795_s9 + $0x408] sm:$0xff] }
 0x415   : > { %6201 = vmatpush1.bf16.msra.mxu1 %v6200_v53  ;;  %v3085_v53 = vld [vmem:[%s9795_s9 + $0xb8] sm:$0xff] }
 0x416   : > { %6203 = vmatprep.subr.bf16.mxu1 %v6202_v47  ;;  %v3093_v47 = vld [vmem:[%s9795_s9 + $0xf8] sm:$0xff]  ;;  %v6352_v60 = vpack.c.bf16 %v3085_v53, %v3078_v52  ;;  %v6382_v52 = vpack.c.bf16 %v3198_v42, %v3191_v38  ;;  %v3190_v53 = vld [vmem:[%s9795_s9 + $0x400] sm:$0xff]  ;;  %v3308_v38 = vld [vmem:[%s9795_s9 + $0x7b0] sm:$0xff] }
 0x417   : > { %v6354_v61 = vpack.c.bf16 %v3100_v57, %v3093_v47  ;;  %v3197_v47 = vld [vmem:[%s9795_s9 + $0x438] sm:$0xff]  ;;  %v3303_v42 = vld [vmem:[%s9795_s9 + $0x788] sm:$0xff] }
 0x418   : > { %v3205_v57 = vld [vmem:[%s9795_s9 + $0x478] sm:$0xff] }
 0x419   : > { %6205 = vmatpush1.bf16.msra.mxu1 %v6204_v1  ;;  %v3099_v1 = vld [vmem:[%s9795_s9 + $0x128] sm:$0xff] }
 0x41a   : > { %6207 = vmatprep.subr.bf16.mxu1 %v6206_v24  ;;  %v3107_v24 = vld [vmem:[%s9795_s9 + $0x168] sm:$0xff] }
 0x41b   : > { %v6358_v32 = vpack.c.bf16 %v3114_v30, %v3107_v24  ;;  %v3211_v24 = vld [vmem:[%s9795_s9 + $0x4a8] sm:$0xff] }
 0x41c   : > { %v3219_v30 = vld [vmem:[%s9795_s9 + $0x4e8] sm:$0xff] }
 0x41d   : > { %6209 = vmatpush1.bf16.msra.mxu1 %v6208_v48  ;;  %v3128_v48 = vld [vmem:[%s9795_s9 + $0x210] sm:$0xff] }
 0x41e   : > { %6211 = vmatprep.subr.bf16.mxu1 %v6210_v51  ;;  %v6360_v51 = vpack.c.bf16 %v3113_v41, %v3106_v40  ;;  %v6362_v58 = vpack.c.bf16 %v3128_v48, %v3121_v4  ;;  %v3218_v41 = vld [vmem:[%s9795_s9 + $0x4e0] sm:$0xff]  ;;  %v3225_v4 = vld [vmem:[%s9795_s9 + $0x518] sm:$0xff] }
 0x41f   : > { %v3233_v48 = vld [vmem:[%s9795_s9 + $0x558] sm:$0xff] }
 0x421   : > { %6213 = vmatpush1.bf16.msra.mxu1 %v6212_v39  ;;  %v3142_v39 = vld [vmem:[%s9795_s9 + $0x280] sm:$0xff] }
 0x422   : > { %6215 = vmatprep.subr.bf16.mxu1 %v6214_v43  ;;  %v6364_v43 = vpack.c.bf16 %v3127_v3, %v3120_v59  ;;  %v6366_v7 = vpack.c.bf16 %v3142_v39, %v3135_v10  ;;  %v3232_v3 = vld [vmem:[%s9795_s9 + $0x550] sm:$0xff]  ;;  %v3239_v10 = vld [vmem:[%s9795_s9 + $0x588] sm:$0xff] }
 0x423   : > { %v3247_v39 = vld [vmem:[%s9795_s9 + $0x5c8] sm:$0xff] }
 0x425   : > { %6217 = vmatpush1.bf16.msra.mxu1 %v6216_v44  ;;  %v3156_v44 = vld [vmem:[%s9795_s9 + $0x2f0] sm:$0xff] }
 0x426   : > { %6219 = vmatprep.subr.bf16.mxu1 %v6218_v26  ;;  %v6368_v26 = vpack.c.bf16 %v3141_v20, %v3134_v13  ;;  %v6370_v55 = vpack.c.bf16 %v3156_v44, %v3149_v21  ;;  %v3246_v20 = vld [vmem:[%s9795_s9 + $0x5c0] sm:$0xff]  ;;  %v3253_v21 = vld [vmem:[%s9795_s9 + $0x5f8] sm:$0xff] }
 0x427   : > { %v3261_v44 = vld [vmem:[%s9795_s9 + $0x638] sm:$0xff] }
 0x429   : > { %6221 = vmatpush1.bf16.msra.mxu1 %v6220_v62  ;;  %v3155_v62 = vld [vmem:[%s9795_s9 + $0x2e8] sm:$0xff] }
 0x42a   : > { %6223 = vmatprep.subr.bf16.mxu1 %v6222_v63  ;;  %v6292_v63 = vpack.c.bf16 %v3265_v50, %v3258_v49  ;;  %v6400_v49 = vpack.c.bf16 %v3253_v21, %v3246_v20 }
 0x42c   : > { %6293 = vmatpush1.bf16.msra.mxu0 %v6292_v63  ;;  %v3282_v63 = vld [vmem:[%s9795_s9 + $0x6e0] sm:$0xff] }
 0x42d   : > { %6225 = vmatpush1.bf16.msra.mxu1 %v6224_v18  ;;  %v6372_v18 = vpack.c.bf16 %v3155_v62, %v3148_v56  ;;  %v3267_v56 = vld [vmem:[%s9795_s9 + $0x668] sm:$0xff] }
 0x42e   : > { %6227 = vmatprep.subr.bf16.mxu1 %v6226_v23  ;;  %v6294_v23 = vpack.c.bf16 %v3280_v17, %v3273_v12  ;;  %v3275_v62 = vld [vmem:[%s9795_s9 + $0x6a8] sm:$0xff]  ;;  %v3274_v12 = vld [vmem:[%s9795_s9 + $0x6a0] sm:$0xff]  ;;  %v3281_v17 = vld [vmem:[%s9795_s9 + $0x6d8] sm:$0xff] }
 0x42f   : > { %v6406_v6 = vpack.c.bf16 %v3282_v63, %v3275_v62  ;;  %v3343_v62 = vld [vmem:[%s9795_s9 + $0x8c8] sm:$0xff]  ;;  %v3350_v63 = vld [vmem:[%s9795_s9 + $0x900] sm:$0xff] }
 0x430   : > { %6295 = vmatprep.subr.bf16.mxu0 %v6294_v23  ;;  %v3296_v23 = vld [vmem:[%s9795_s9 + $0x750] sm:$0xff] }
 0x431   : > { %6229 = vmatpush1.bf16.msra.mxu1 %v6228_v22  ;;  %v3169_v22 = vld [vmem:[%s9795_s9 + $0x358] sm:$0xff] }
 0x432   : > { %6231 = vmatprep.subr.bf16.mxu1 %v6230_v27  ;;  %v6296_v27 = vpack.c.bf16 %v3279_v9, %v3272_v8  ;;  %v6376_v29 = vpack.c.bf16 %v3169_v22, %v3162_v16  ;;  %v6408_v8 = vpack.c.bf16 %v3281_v17, %v3274_v12 }
 0x434   : > { %6297 = vmatpush1.bf16.msra.mxu0 %v6296_v27 }
 0x435   : > { %6233 = vmatpush1.bf16.msra.mxu1 %v6232_v34  ;;  %v6378_v34 = vpack.c.bf16 %v3184_v28, %v3177_v14  ;;  %v3286_v14 = vld [vmem:[%s9795_s9 + $0x700] sm:$0xff]  ;;  %v3293_v28 = vld [vmem:[%s9795_s9 + $0x738] sm:$0xff] }
 0x436   : > { %6347 = vmatprep.subr.bf16.mxu1 %v6346_v35  ;;  %v3183_v35 = vld [vmem:[%s9795_s9 + $0x3c8] sm:$0xff] }
 0x438   : > { %3052 = vmatmul.mubr.f32.vlgmr.msra.gmra.mrb[24].mxu1 %v2764_v2  ;;  %v6356_v2 = vpack.c.bf16 %v3099_v1, %v3092_v0  ;;  %v3204_v1 = vld [vmem:[%s9795_s9 + $0x470] sm:$0xff] }
 0x439   : > { %6349 = vmatpush1.bf16.msra.mxu1 %v6348_v45  ;;  %v6298_v45 = vpack.c.bf16 %v3294_v37, %v3287_v36  ;;  %v3301_v36 = vld [vmem:[%s9795_s9 + $0x778] sm:$0xff] }
 0x43a   : > { %6351 = vmatprep.subr.bf16.mxu1 %v6350_v46  ;;  %v6380_v46 = vpack.c.bf16 %v3183_v35, %v3176_v31  ;;  %v3295_v35 = vld [vmem:[%s9795_s9 + $0x748] sm:$0xff] }
 0x43b   : > { %6299 = vmatprep.subr.bf16.mxu0 %v6298_v45  ;;  %v3310_v45 = vld [vmem:[%s9795_s9 + $0x7c0] sm:$0xff] }
 0x43d   : > { %6353 = vmatpush1.bf16.msra.mxu1 %v6352_v60  ;;  %v3212_v60 = vld [vmem:[%s9795_s9 + $0x4b0] sm:$0xff] }
 0x43e   : > { %6355 = vmatprep.subr.bf16.mxu1 %v6354_v61  ;;  %v6384_v61 = vpack.c.bf16 %v3197_v47, %v3190_v53  ;;  %v6386_v0 = vpack.c.bf16 %v3212_v60, %v3205_v57  ;;  %v3300_v47 = vld [vmem:[%s9795_s9 + $0x770] sm:$0xff]  ;;  %v3307_v57 = vld [vmem:[%s9795_s9 + $0x7a8] sm:$0xff] }
 0x441   : > { %6357 = vmatpush1.bf16.msra.mxu1 %v6356_v2  ;;  %v3226_v2 = vld [vmem:[%s9795_s9 + $0x520] sm:$0xff] }
 0x442   : > { %6359 = vmatprep.subr.bf16.mxu1 %v6358_v32  ;;  %v6388_v32 = vpack.c.bf16 %v3211_v24, %v3204_v1  ;;  %v6390_v40 = vpack.c.bf16 %v3226_v2, %v3219_v30  ;;  %v3302_v1 = vld [vmem:[%s9795_s9 + $0x780] sm:$0xff]  ;;  %v3309_v24 = vld [vmem:[%s9795_s9 + $0x7b8] sm:$0xff]  ;;  %v3315_v30 = vld [vmem:[%s9795_s9 + $0x7e8] sm:$0xff] }
 0x443   : > { %v3322_v2 = vld [vmem:[%s9795_s9 + $0x820] sm:$0xff] }
 0x445   : > { %6361 = vmatpush1.bf16.msra.mxu1 %v6360_v51  ;;  %v3240_v51 = vld [vmem:[%s9795_s9 + $0x590] sm:$0xff] }
 0x446   : > { %6363 = vmatprep.subr.bf16.mxu1 %v6362_v58  ;;  %v6392_v58 = vpack.c.bf16 %v3225_v4, %v3218_v41  ;;  %v6394_v59 = vpack.c.bf16 %v3240_v51, %v3233_v48  ;;  %v6304_v41 = vpack.c.bf16 %v3307_v57, %v3300_v47  ;;  %v6416_v4 = vpack.c.bf16 %v3309_v24, %v3302_v1  ;;  %v3314_v48 = vld [vmem:[%s9795_s9 + $0x7e0] sm:$0xff]  ;;  %v3321_v51 = vld [vmem:[%s9795_s9 + $0x818] sm:$0xff]  ;;  %v3380_v57 = vld [vmem:[%s9795_s9 + $0x9f0] sm:$0xff] }
 0x447   : > { %v6308_v20 = vpack.c.bf16 %v3321_v51, %v3314_v48  ;;  %v3373_v47 = vld [vmem:[%s9795_s9 + $0x9b8] sm:$0xff]  ;;  %v3370_v1 = vld [vmem:[%s9795_s9 + $0x9a0] sm:$0xff]  ;;  %v3387_v48 = vld [vmem:[%s9795_s9 + $0xa28] sm:$0xff] }
 0x448   : > { %v3377_v24 = vld [vmem:[%s9795_s9 + $0x9d8] sm:$0xff]  ;;  %v3394_v51 = vld [vmem:[%s9795_s9 + $0xa60] sm:$0xff] }
 0x449   : > { %6365 = vmatpush1.bf16.msra.mxu1 %v6364_v43  ;;  %v3254_v43 = vld [vmem:[%s9795_s9 + $0x600] sm:$0xff] }
 0x44a   : > { %6367 = vmatprep.subr.bf16.mxu1 %v6366_v7  ;;  %v6396_v7 = vpack.c.bf16 %v3239_v10, %v3232_v3  ;;  %v6398_v13 = vpack.c.bf16 %v3254_v43, %v3247_v39  ;;  %v3316_v3 = vld [vmem:[%s9795_s9 + $0x7f0] sm:$0xff]  ;;  %v3323_v10 = vld [vmem:[%s9795_s9 + $0x828] sm:$0xff]  ;;  %v3329_v39 = vld [vmem:[%s9795_s9 + $0x858] sm:$0xff] }
 0x44b   : > { %v3336_v43 = vld [vmem:[%s9795_s9 + $0x890] sm:$0xff]  ;;  %v6420_v21 = vpack.c.bf16 %v3323_v10, %v3316_v3  ;;  %v3391_v10 = vld [vmem:[%s9795_s9 + $0xa48] sm:$0xff] }
 0x44c   : > { %v3384_v3 = vld [vmem:[%s9795_s9 + $0xa10] sm:$0xff] }
 0x44d   : > { %6369 = vmatpush1.bf16.msra.mxu1 %v6368_v26  ;;  %v3268_v26 = vld [vmem:[%s9795_s9 + $0x670] sm:$0xff] }
 0x44e   : > { %6371 = vmatprep.subr.bf16.mxu1 %v6370_v55  ;;  %v6402_v50 = vpack.c.bf16 %v3268_v26, %v3261_v44  ;;  %v3260_v55 = vld [vmem:[%s9795_s9 + $0x630] sm:$0xff]  ;;  %v3335_v26 = vld [vmem:[%s9795_s9 + $0x888] sm:$0xff] }
 0x44f   : > { %v6404_v5 = vpack.c.bf16 %v3267_v56, %v3260_v55  ;;  %v3328_v44 = vld [vmem:[%s9795_s9 + $0x850] sm:$0xff]  ;;  %v3330_v55 = vld [vmem:[%s9795_s9 + $0x860] sm:$0xff]  ;;  %v3337_v56 = vld [vmem:[%s9795_s9 + $0x898] sm:$0xff] }
 0x450   : > { %v6312_v12 = vpack.c.bf16 %v3335_v26, %v3328_v44  ;;  %v6424_v17 = vpack.c.bf16 %v3337_v56, %v3330_v55  ;;  %v3401_v44 = vld [vmem:[%s9795_s9 + $0xa98] sm:$0xff]  ;;  %v3408_v26 = vld [vmem:[%s9795_s9 + $0xad0] sm:$0xff]  ;;  %v3398_v55 = vld [vmem:[%s9795_s9 + $0xa80] sm:$0xff] }
 0x451   : > { %6373 = vmatpush1.bf16.msra.mxu1 %v6372_v18  ;;  %v3289_v18 = vld [vmem:[%s9795_s9 + $0x718] sm:$0xff] }
 0x452   : > { %6375 = vmatprep.subr.bf16.mxu1 %v6374_v15  ;;  %v6410_v9 = vpack.c.bf16 %v3296_v23, %v3289_v18  ;;  %v8724_v15 = vld [vmem:[%s9794_s8] sm:$0xf]  ;;  %v3349_v23 = vld [vmem:[%s9795_s9 + $0x8f8] sm:$0xff] }
 0x453   : > { %v2899_v16 = vrot.slane %v8724_v15, %v8284_v25  ;;  %v2903_v22 = vrot.slane %v8724_v15, %v8296_v54  ;;  %v3342_v18 = vld [vmem:[%s9795_s9 + $0x8c0] sm:$0xff]  ;;  %v3405_v56 = vld [vmem:[%s9795_s9 + $0xab8] sm:$0xff] }
 0x455   : > { %6377 = vmatpush1.bf16.msra.mxu1 %v6376_v29 }
 0x456   : > { %6379 = vmatprep.subr.bf16.mxu1 %v6378_v34  ;;  %v3288_v34 = vld [vmem:[%s9795_s9 + $0x710] sm:$0xff] }
 0x457   : > { %v6412_v53 = vpack.c.bf16 %v3295_v35, %v3288_v34  ;;  %v3356_v35 = vld [vmem:[%s9795_s9 + $0x930] sm:$0xff] }
 0x459   : > { %6381 = vmatpush1.bf16.msra.mxu1 %v6380_v46 }
 0x45a   : > { %6383 = vmatprep.subr.bf16.mxu1 %v6382_v52  ;;  %v6300_v52 = vpack.c.bf16 %v3293_v28, %v3286_v14  ;;  %v3364_v14 = vld [vmem:[%s9795_s9 + $0x970] sm:$0xff]  ;;  %v3359_v28 = vld [vmem:[%s9795_s9 + $0x948] sm:$0xff] }
 0x45d   : > { %6385 = vmatpush1.bf16.msra.mxu1 %v6384_v61  ;;  %v6302_v61 = vpack.c.bf16 %v3308_v38, %v3301_v36  ;;  %v3363_v36 = vld [vmem:[%s9795_s9 + $0x968] sm:$0xff] }
 0x45e   : > { %6387 = vmatprep.subr.bf16.mxu1 %v6386_v0  ;;  %v6414_v0 = vpack.c.bf16 %v3310_v45, %v3303_v42  ;;  %v3358_v42 = vld [vmem:[%s9795_s9 + $0x940] sm:$0xff]  ;;  %v3365_v45 = vld [vmem:[%s9795_s9 + $0x978] sm:$0xff] }
 0x461   : > { %6389 = vmatpush1.bf16.msra.mxu1 %v6388_v32  ;;  %v3317_v32 = vld [vmem:[%s9795_s9 + $0x7f8] sm:$0xff] }
 0x462   : > { %6391 = vmatprep.subr.bf16.mxu1 %v6390_v40  ;;  %v3324_v40 = vld [vmem:[%s9795_s9 + $0x830] sm:$0xff] }
 0x465   : > { %6393 = vmatpush1.bf16.msra.mxu1 %v6392_v58  ;;  %v6306_v58 = vpack.c.bf16 %v3322_v2, %v3315_v30  ;;  %v6434_v2 = vpack.c.bf16 %v3380_v57, %v3373_v47  ;;  %v3428_v47 = vld [vmem:[%s9795_s9 + $0xb70] sm:$0xff]  ;;  %v3435_v57 = vld [vmem:[%s9795_s9 + $0xba8] sm:$0xff] }
 0x466   : > { %6395 = vmatprep.subr.bf16.mxu1 %v6394_v59  ;;  %v6418_v59 = vpack.c.bf16 %v3324_v40, %v3317_v32  ;;  %v3372_v32 = vld [vmem:[%s9795_s9 + $0x9b0] sm:$0xff]  ;;  %v3379_v40 = vld [vmem:[%s9795_s9 + $0x9e8] sm:$0xff] }
 0x469   : > { %6397 = vmatpush1.bf16.msra.mxu1 %v6396_v7  ;;  %v3331_v7 = vld [vmem:[%s9795_s9 + $0x868] sm:$0xff] }
 0x46a   : > { %6399 = vmatprep.subr.bf16.mxu1 %v6398_v13  ;;  %v3338_v13 = vld [vmem:[%s9795_s9 + $0x8a0] sm:$0xff] }
 0x46d   : > { %6401 = vmatpush1.bf16.msra.mxu1 %v6400_v49  ;;  %v6310_v49 = vpack.c.bf16 %v3336_v43, %v3329_v39  ;;  %v6438_v43 = vpack.c.bf16 %v3394_v51, %v3387_v48  ;;  %v3442_v48 = vld [vmem:[%s9795_s9 + $0xbe0] sm:$0xff]  ;;  %v3449_v51 = vld [vmem:[%s9795_s9 + $0xc18] sm:$0xff] }
 0x46e   : > { %6403 = vmatprep.subr.bf16.mxu1 %v6402_v50  ;;  %v6422_v50 = vpack.c.bf16 %v3338_v13, %v3331_v7  ;;  %v3386_v7 = vld [vmem:[%s9795_s9 + $0xa20] sm:$0xff]  ;;  %v3393_v13 = vld [vmem:[%s9795_s9 + $0xa58] sm:$0xff] }
 0x471   : > { %6405 = vmatpush1.bf16.msra.mxu1 %v6404_v5  ;;  %v3345_v5 = vld [vmem:[%s9795_s9 + $0x8d8] sm:$0xff] }
 0x472   : > { %6407 = vmatprep.subr.bf16.mxu1 %v6406_v6  ;;  %v3352_v6 = vld [vmem:[%s9795_s9 + $0x910] sm:$0xff] }
 0x475   : > { %6409 = vmatpush1.bf16.msra.mxu1 %v6408_v8  ;;  %v6314_v8 = vpack.c.bf16 %v3350_v63, %v3343_v62  ;;  %v6442_v63 = vpack.c.bf16 %v3408_v26, %v3401_v44 }
 0x476   : > { %6411 = vmatprep.subr.bf16.mxu1 %v6410_v9  ;;  %v6426_v9 = vpack.c.bf16 %v3352_v6, %v3345_v5  ;;  %v3400_v5 = vld [vmem:[%s9795_s9 + $0xa90] sm:$0xff]  ;;  %v3407_v6 = vld [vmem:[%s9795_s9 + $0xac8] sm:$0xff] }
 0x4cb   : > { %v2982_v27 = vpop.f32.mrb[22].mxu1 }
 0x4cc   : > { %v2983_v29 = vadd.f32 %v2982_v27, %v2899_v16  ;;  %v2984_v31 = vpop.f32.mrb[23].mxu1  ;;  %v3344_v16 = vld [vmem:[%s9795_s9 + $0x8d0] sm:$0xff]  ;;  %v3357_v27 = vld [vmem:[%s9795_s9 + $0x938] sm:$0xff] }
 0x4cd   : > { %v2985_v37 = vadd.f32 %v2984_v31, %v2903_v22  ;;  %v3351_v22 = vld [vmem:[%s9795_s9 + $0x908] sm:$0xff]  ;;  %v6316_v31 = vpack.c.bf16 %v3349_v23, %v3342_v18  ;;  %v3422_v23 = vld [vmem:[%s9795_s9 + $0xb40] sm:$0xff] }
 0x4ce   : > { %v8762_v60 = vmax.f32 %v2983_v29, 0.0  ;;  %v3366_v29 = vld [vmem:[%s9795_s9 + $0x980] sm:$0xff]  ;;  %v6428_v34 = vpack.c.bf16 %v3351_v22, %v3344_v16  ;;  %v3415_v18 = vld [vmem:[%s9795_s9 + $0xb08] sm:$0xff]  ;;  %v3412_v16 = vld [vmem:[%s9795_s9 + $0xaf0] sm:$0xff] }
 0x4cf   : > { %v8754_v46 = vmax.f32 %v2985_v37, 0.0  ;;  %v6318_v37 = vpack.c.bf16 %v3364_v14, %v3357_v27  ;;  %v6430_v38 = vpack.c.bf16 %v3366_v29, %v3359_v28  ;;  %v3419_v22 = vld [vmem:[%s9795_s9 + $0xb28] sm:$0xff]  ;;  %v6446_v14 = vpack.c.bf16 %v3422_v23, %v3415_v18  ;;  %v3414_v28 = vld [vmem:[%s9795_s9 + $0xb00] sm:$0xff]  ;;  %v3421_v29 = vld [vmem:[%s9795_s9 + $0xb38] sm:$0xff] }
 0x4d0   : > { %v3201_v18 = vld [vmem:[%s9795_s9 + $0x458] sm:$0xff] }
 0x4d1   : > { %3558 = vmatprep.mubr.f32.mxu0 %v8754_v46  ;;  %3700 = vmatprep.mubr.f32.mxu1 %v8754_v46 }
 0x4d2   : > { %3559 = vmatmul.mubr.f32.vlgmr.msra.gmra.mrb[18].mxu0 %v8762_v60  ;;  %3701 = vmatmul.mubr.f32.vlgmr.msra.gmra.mrb[26].mxu1 %v8762_v60 }
 0x4d3   : > { %6301 = vmatpush1.bf16.msra.mxu0 %v6300_v52  ;;  %6413 = vmatpush1.bf16.msra.mxu1 %v6412_v53  ;;  %v3371_v52 = vld [vmem:[%s9795_s9 + $0x9a8] sm:$0xff]  ;;  %v3378_v53 = vld [vmem:[%s9795_s9 + $0x9e0] sm:$0xff] }
 0x4d4   : > { %6303 = vmatprep.subr.bf16.mxu0 %v6302_v61  ;;  %6415 = vmatprep.subr.bf16.mxu1 %v6414_v0  ;;  %v6320_v61 = vpack.c.bf16 %v3363_v36, %v3356_v35  ;;  %v6432_v0 = vpack.c.bf16 %v3365_v45, %v3358_v42  ;;  %v6322_v30 = vpack.c.bf16 %v3378_v53, %v3371_v52  ;;  %v3429_v35 = vld [vmem:[%s9795_s9 + $0xb78] sm:$0xff]  ;;  %v3436_v36 = vld [vmem:[%s9795_s9 + $0xbb0] sm:$0xff]  ;;  %v3426_v42 = vld [vmem:[%s9795_s9 + $0xb60] sm:$0xff] }
 0x4d5   : > { %v3433_v45 = vld [vmem:[%s9795_s9 + $0xb98] sm:$0xff]  ;;  %v6450_v53 = vpack.c.bf16 %v3436_v36, %v3429_v35  ;;  %v3102_v35 = vld [vmem:[%s9795_s9 + $0x140] sm:$0xff]  ;;  %v3208_v36 = vld [vmem:[%s9795_s9 + $0x490] sm:$0xff] }
 0x4d7   : > { %6305 = vmatpush1.bf16.msra.mxu0 %v6304_v41  ;;  %6417 = vmatpush1.bf16.msra.mxu1 %v6416_v4  ;;  %v3385_v41 = vld [vmem:[%s9795_s9 + $0xa18] sm:$0xff]  ;;  %v3392_v4 = vld [vmem:[%s9795_s9 + $0xa50] sm:$0xff] }
 0x4d8   : > { %6307 = vmatprep.subr.bf16.mxu0 %v6306_v58  ;;  %6419 = vmatprep.subr.bf16.mxu1 %v6418_v59  ;;  %v6324_v58 = vpack.c.bf16 %v3377_v24, %v3370_v1  ;;  %v6436_v59 = vpack.c.bf16 %v3379_v40, %v3372_v32  ;;  %v6326_v39 = vpack.c.bf16 %v3392_v4, %v3385_v41  ;;  %v3443_v1 = vld [vmem:[%s9795_s9 + $0xbe8] sm:$0xff]  ;;  %v3450_v24 = vld [vmem:[%s9795_s9 + $0xc20] sm:$0xff]  ;;  %v3440_v32 = vld [vmem:[%s9795_s9 + $0xbd0] sm:$0xff] }
 0x4d9   : > { %v3447_v40 = vld [vmem:[%s9795_s9 + $0xc08] sm:$0xff]  ;;  %v6454_v4 = vpack.c.bf16 %v3450_v24, %v3443_v1  ;;  %v3116_v1 = vld [vmem:[%s9795_s9 + $0x1b0] sm:$0xff]  ;;  %v3222_v24 = vld [vmem:[%s9795_s9 + $0x500] sm:$0xff] }
 0x4db   : > { %6309 = vmatpush1.bf16.msra.mxu0 %v6308_v20  ;;  %6421 = vmatpush1.bf16.msra.mxu1 %v6420_v21  ;;  %v3399_v20 = vld [vmem:[%s9795_s9 + $0xa88] sm:$0xff]  ;;  %v3406_v21 = vld [vmem:[%s9795_s9 + $0xac0] sm:$0xff] }
 0x4dc   : > { %6311 = vmatprep.subr.bf16.mxu0 %v6310_v49  ;;  %6423 = vmatprep.subr.bf16.mxu1 %v6422_v50  ;;  %v6328_v49 = vpack.c.bf16 %v3391_v10, %v3384_v3  ;;  %v6440_v50 = vpack.c.bf16 %v3393_v13, %v3386_v7  ;;  %v6330_v62 = vpack.c.bf16 %v3406_v21, %v3399_v20  ;;  %v3180_v3 = vld [vmem:[%s9795_s9 + $0x3b0] sm:$0xff]  ;;  %v3187_v10 = vld [vmem:[%s9795_s9 + $0x3e8] sm:$0xff]  ;;  %v2906_v20 = vsub.s32 2, %v8269_v33 }
 0x4dd   : > { %v6570_v13 = vpack.c.bf16 %v3187_v10, %v3180_v3  ;;  %v2910_v21 = vsub.s32 3, %v8269_v33  ;;  %v3130_v3 = vld [vmem:[%s9795_s9 + $0x220] sm:$0xff]  ;;  %v3236_v10 = vld [vmem:[%s9795_s9 + $0x570] sm:$0xff] }
 0x4de   : > { %v2907_v44 = vrot.slane %v8724_v15, %v2906_v20 }
 0x4df   : > { %6313 = vmatpush1.bf16.msra.mxu0 %v6312_v12  ;;  %6425 = vmatpush1.bf16.msra.mxu1 %v6424_v17  ;;  %v3413_v12 = vld [vmem:[%s9795_s9 + $0xaf8] sm:$0xff]  ;;  %v3420_v17 = vld [vmem:[%s9795_s9 + $0xb30] sm:$0xff]  ;;  %v2911_v26 = vrot.slane %v8724_v15, %v2910_v21 }
 0x4e0   : > { %6315 = vmatprep.subr.bf16.mxu0 %v6314_v8  ;;  %6427 = vmatprep.subr.bf16.mxu1 %v6426_v9  ;;  %v6332_v8 = vpack.c.bf16 %v3405_v56, %v3398_v55  ;;  %v6444_v9 = vpack.c.bf16 %v3407_v6, %v3400_v5  ;;  %v6334_v27 = vpack.c.bf16 %v3420_v17, %v3413_v12  ;;  %v3075_v5 = vld [vmem:[%s9795_s9 + $0x68] sm:$0xff]  ;;  %v3081_v6 = vld [vmem:[%s9795_s9 + $0x98] sm:$0xff]  ;;  %v3088_v12 = vld [vmem:[%s9795_s9 + $0xd0] sm:$0xff] }
 0x4e1   : > { %v3194_v17 = vld [vmem:[%s9795_s9 + $0x420] sm:$0xff] }
 0x4e3   : > { %6317 = vmatpush1.bf16.msra.mxu0 %v6316_v31  ;;  %6429 = vmatpush1.bf16.msra.mxu1 %v6428_v34  ;;  %v3427_v31 = vld [vmem:[%s9795_s9 + $0xb68] sm:$0xff]  ;;  %v3434_v34 = vld [vmem:[%s9795_s9 + $0xba0] sm:$0xff] }
 0x4e4   : > { %6319 = vmatprep.subr.bf16.mxu0 %v6318_v37  ;;  %6431 = vmatprep.subr.bf16.mxu1 %v6430_v38  ;;  %v6336_v37 = vpack.c.bf16 %v3419_v22, %v3412_v16  ;;  %v6448_v38 = vpack.c.bf16 %v3421_v29, %v3414_v28  ;;  %v6338_v52 = vpack.c.bf16 %v3434_v34, %v3427_v31  ;;  %v3080_v16 = vld [vmem:[%s9795_s9 + $0x90] sm:$0xff]  ;;  %v3087_v22 = vld [vmem:[%s9795_s9 + $0xc8] sm:$0xff]  ;;  %v3089_v28 = vld [vmem:[%s9795_s9 + $0xd8] sm:$0xff] }
 0x4e5   : > { %v3095_v29 = vld [vmem:[%s9795_s9 + $0x108] sm:$0xff]  ;;  %v6462_v31 = vpack.c.bf16 %v3088_v12, %v3081_v6  ;;  %v6574_v34 = vpack.c.bf16 %v3201_v18, %v3194_v17  ;;  %v3136_v12 = vld [vmem:[%s9795_s9 + $0x250] sm:$0xff] }
 0x4e6   : > { %v3143_v17 = vld [vmem:[%s9795_s9 + $0x288] sm:$0xff] }
 0x4e7   : > { %6321 = vmatpush1.bf16.msra.mxu0 %v6320_v61  ;;  %6433 = vmatpush1.bf16.msra.mxu1 %v6432_v0  ;;  %v3441_v61 = vld [vmem:[%s9795_s9 + $0xbd8] sm:$0xff]  ;;  %v3448_v0 = vld [vmem:[%s9795_s9 + $0xc10] sm:$0xff] }
 0x4e8   : > { %6323 = vmatprep.subr.bf16.mxu0 %v6322_v30  ;;  %6435 = vmatprep.subr.bf16.mxu1 %v6434_v2  ;;  %v6340_v30 = vpack.c.bf16 %v3433_v45, %v3426_v42  ;;  %v6452_v2 = vpack.c.bf16 %v3435_v57, %v3428_v47  ;;  %v6342_v41 = vpack.c.bf16 %v3448_v0, %v3441_v61  ;;  %v3094_v45 = vld [vmem:[%s9795_s9 + $0x100] sm:$0xff]  ;;  %v3096_v57 = vld [vmem:[%s9795_s9 + $0x110] sm:$0xff]  ;;  %v3103_v61 = vld [vmem:[%s9795_s9 + $0x148] sm:$0xff] }
 0x4e9   : > { %v3109_v0 = vld [vmem:[%s9795_s9 + $0x178] sm:$0xff] }
 0x4eb   : > { %6325 = vmatpush1.bf16.msra.mxu0 %v6324_v58  ;;  %6437 = vmatpush1.bf16.msra.mxu1 %v6436_v59  ;;  %v3067_v58 = vld [vmem:[%s9795_s9 + $0x28] sm:$0xff]  ;;  %v3074_v59 = vld [vmem:[%s9795_s9 + $0x60] sm:$0xff] }
 0x4ec   : > { %6327 = vmatprep.subr.bf16.mxu0 %v6326_v39  ;;  %6439 = vmatprep.subr.bf16.mxu1 %v6438_v43  ;;  %v6344_v39 = vpack.c.bf16 %v3447_v40, %v3440_v32  ;;  %v6456_v43 = vpack.c.bf16 %v3449_v51, %v3442_v48  ;;  %v6458_v7 = vpack.c.bf16 %v3074_v59, %v3067_v58  ;;  %v3108_v40 = vld [vmem:[%s9795_s9 + $0x170] sm:$0xff]  ;;  %v3110_v51 = vld [vmem:[%s9795_s9 + $0x180] sm:$0xff]  ;;  %v3117_v58 = vld [vmem:[%s9795_s9 + $0x1b8] sm:$0xff] }
 0x4ed   : > { %v6580_v32 = vpack.c.bf16 %v3103_v61, %v3096_v57  ;;  %v3123_v59 = vld [vmem:[%s9795_s9 + $0x1e8] sm:$0xff]  ;;  %v3285_v57 = vld [vmem:[%s9795_s9 + $0x6f8] sm:$0xff] }
 0x4ef   : > { %6329 = vmatpush1.bf16.msra.mxu0 %v6328_v49  ;;  %6441 = vmatpush1.bf16.msra.mxu1 %v6440_v50  ;;  %v3066_v50 = vld [vmem:[%s9795_s9 + $0x20] sm:$0xff] }
 0x4f0   : > { %6331 = vmatprep.subr.bf16.mxu0 %v6330_v62  ;;  %6443 = vmatprep.subr.bf16.mxu1 %v6442_v63  ;;  %v3073_v62 = vld [vmem:[%s9795_s9 + $0x58] sm:$0xff]  ;;  %v3068_v63 = vld [vmem:[%s9795_s9 + $0x30] sm:$0xff] }
 0x4f3   : > { %6333 = vmatpush1.bf16.msra.mxu0 %v6332_v8  ;;  %6445 = vmatpush1.bf16.msra.mxu1 %v6444_v9  ;;  %v6460_v8 = vpack.c.bf16 %v3073_v62, %v3066_v50  ;;  %v6572_v9 = vpack.c.bf16 %v3075_v5, %v3068_v63  ;;  %v3124_v50 = vld [vmem:[%s9795_s9 + $0x1f0] sm:$0xff]  ;;  %v3250_v63 = vld [vmem:[%s9795_s9 + $0x5e0] sm:$0xff]  ;;  %v3257_v5 = vld [vmem:[%s9795_s9 + $0x618] sm:$0xff] }
 0x4f4   : > { %6335 = vmatprep.subr.bf16.mxu0 %v6334_v27  ;;  %6447 = vmatprep.subr.bf16.mxu1 %v6446_v14  ;;  %v3082_v14 = vld [vmem:[%s9795_s9 + $0xa0] sm:$0xff]  ;;  %v3144_v62 = vld [vmem:[%s9795_s9 + $0x290] sm:$0xff] }
 0x4f5   : > { %v6576_v42 = vpack.c.bf16 %v3089_v28, %v3082_v14  ;;  %v3158_v14 = vld [vmem:[%s9795_s9 + $0x300] sm:$0xff]  ;;  %v3264_v28 = vld [vmem:[%s9795_s9 + $0x650] sm:$0xff] }
 0x4f7   : > { %6337 = vmatpush1.bf16.msra.mxu0 %v6336_v37  ;;  %6449 = vmatpush1.bf16.msra.mxu1 %v6448_v38  ;;  %v3215_v37 = vld [vmem:[%s9795_s9 + $0x4c8] sm:$0xff]  ;;  %v6464_v38 = vpack.c.bf16 %v3087_v22, %v3080_v16  ;;  %v3145_v16 = vld [vmem:[%s9795_s9 + $0x298] sm:$0xff] }
 0x4f8   : > { %6339 = vmatprep.subr.bf16.mxu0 %v6338_v52  ;;  %6451 = vmatprep.subr.bf16.mxu1 %v6450_v53  ;;  %v3101_v52 = vld [vmem:[%s9795_s9 + $0x138] sm:$0xff]  ;;  %v6466_v53 = vpack.c.bf16 %v3102_v35, %v3095_v29  ;;  %v6578_v47 = vpack.c.bf16 %v3215_v37, %v3208_v36  ;;  %v3151_v22 = vld [vmem:[%s9795_s9 + $0x2c8] sm:$0xff]  ;;  %v3150_v35 = vld [vmem:[%s9795_s9 + $0x2c0] sm:$0xff] }
 0x4f9   : > { %v3271_v29 = vld [vmem:[%s9795_s9 + $0x688] sm:$0xff]  ;;  %v3157_v36 = vld [vmem:[%s9795_s9 + $0x2f8] sm:$0xff]  ;;  %v6482_v37 = vpack.c.bf16 %v3158_v14, %v3151_v22 }
 0x4fa   : > { %v6484_v61 = vpack.c.bf16 %v3157_v36, %v3150_v35  ;;  %v3341_v35 = vld [vmem:[%s9795_s9 + $0x8b8] sm:$0xff]  ;;  %v3235_v36 = vld [vmem:[%s9795_s9 + $0x568] sm:$0xff] }
 0x4fb   : > { %6341 = vmatpush1.bf16.msra.mxu0 %v6340_v30  ;;  %6453 = vmatpush1.bf16.msra.mxu1 %v6452_v2  ;;  %v3229_v30 = vld [vmem:[%s9795_s9 + $0x538] sm:$0xff]  ;;  %v6468_v2 = vpack.c.bf16 %v3101_v52, %v3094_v45  ;;  %v3159_v45 = vld [vmem:[%s9795_s9 + $0x308] sm:$0xff] }
 0x4fc   : > { %6343 = vmatprep.subr.bf16.mxu0 %v6342_v41  ;;  %6455 = vmatprep.subr.bf16.mxu1 %v6454_v4  ;;  %v3115_v41 = vld [vmem:[%s9795_s9 + $0x1a8] sm:$0xff]  ;;  %v6470_v4 = vpack.c.bf16 %v3116_v1, %v3109_v0  ;;  %v6582_v48 = vpack.c.bf16 %v3229_v30, %v3222_v24  ;;  %v3165_v52 = vld [vmem:[%s9795_s9 + $0x338] sm:$0xff]  ;;  %v3164_v1 = vld [vmem:[%s9795_s9 + $0x330] sm:$0xff] }
 0x4ff   : > { %6345 = vmatpush1.bf16.msra.mxu0 %v6344_v39  ;;  %6457 = vmatpush1.bf16.msra.mxu1 %v6456_v43  ;;  %v3243_v39 = vld [vmem:[%s9795_s9 + $0x5a8] sm:$0xff]  ;;  %v6472_v43 = vpack.c.bf16 %v3115_v41, %v3108_v40  ;;  %v3173_v40 = vld [vmem:[%s9795_s9 + $0x378] sm:$0xff] }
 0x500   : > { %6459 = vmatprep.subr.bf16.mxu0 %v6458_v7  ;;  %6571 = vmatprep.subr.bf16.mxu1 %v6570_v13  ;;  %v6584_v7 = vpack.c.bf16 %v3117_v58, %v3110_v51  ;;  %v3122_v13 = vld [vmem:[%s9795_s9 + $0x1e0] sm:$0xff]  ;;  %v3179_v41 = vld [vmem:[%s9795_s9 + $0x3a8] sm:$0xff] }
 0x501   : > { %v3178_v58 = vld [vmem:[%s9795_s9 + $0x3a0] sm:$0xff] }
 0x50b   : > { %v3053_v49 = vpop.f32.mrb[24].mxu1 }
 0x50c   : > { %v3054_v55 = vadd.f32 %v3053_v49, %v2907_v44  ;;  %v3055_v56 = vpop.f32.mrb[25].mxu1  ;;  %v3129_v44 = vld [vmem:[%s9795_s9 + $0x218] sm:$0xff]  ;;  %v6586_v49 = vpack.c.bf16 %v3243_v39, %v3236_v10  ;;  %v3292_v10 = vld [vmem:[%s9795_s9 + $0x730] sm:$0xff]  ;;  %v3299_v39 = vld [vmem:[%s9795_s9 + $0x768] sm:$0xff] }
 0x50d   : > { %v3056_v15 = vadd.f32 %v3055_v56, %v2911_v26  ;;  %v6474_v26 = vpack.c.bf16 %v3130_v3, %v3123_v59  ;;  %v3137_v56 = vld [vmem:[%s9795_s9 + $0x258] sm:$0xff] }
 0x50e   : > { %v9066_v27 = vmax.f32 %v3054_v55, 0.0  ;;  %v3131_v55 = vld [vmem:[%s9795_s9 + $0x228] sm:$0xff]  ;;  %v6478_v18 = vpack.c.bf16 %v3144_v62, %v3137_v56  ;;  %v3185_v3 = vld [vmem:[%s9795_s9 + $0x3d8] sm:$0xff] }
 0x50f   : > { %v9058_v23 = vmax.f32 %v3056_v15, 0.0  ;;  %v6476_v15 = vpack.c.bf16 %v3129_v44, %v3122_v13  ;;  %v6588_v6 = vpack.c.bf16 %v3131_v55, %v3124_v50  ;;  %v6492_v13 = vpack.c.bf16 %v3185_v3, %v3178_v58  ;;  %v3199_v50 = vld [vmem:[%s9795_s9 + $0x448] sm:$0xff]  ;;  %v3306_v55 = vld [vmem:[%s9795_s9 + $0x7a0] sm:$0xff]  ;;  %v3313_v56 = vld [vmem:[%s9795_s9 + $0x7d8] sm:$0xff] }
 0x510   : > { %v6603_v44 = vpack.c.bf16 %v3299_v39, %v3292_v10  ;;  %v3207_v62 = vld [vmem:[%s9795_s9 + $0x488] sm:$0xff]  ;;  %v3269_v10 = vld [vmem:[%s9795_s9 + $0x678] sm:$0xff]  ;;  %v3376_v39 = vld [vmem:[%s9795_s9 + $0x9d0] sm:$0xff] }
 0x511   : > { %4441 = vmatprep.mubr.msk.f32.mxu0 %vm1986_vm1, %v9058_v23  ;;  %4442 = vmatprep.mubr.msk.f32.mxu1 %vm1986_vm1, %v9058_v23 }
 0x512   : > { %3630 = vmatmul.mubr.f32.vlgmr.msra.gmra.mrb[18].mxu0 %v9066_v27  ;;  %3772 = vmatmul.mubr.f32.vlgmr.msra.gmra.mrb[26].mxu1 %v9066_v27 }
 0x513   : > { %6461 = vmatpush1.bf16.msra.mxu0 %v6460_v8  ;;  %6573 = vmatpush3.bf16.msra.mxu1 %v6572_v9  ;;  %v6590_v8 = vpack.c.bf16 %v3257_v5, %v3250_v63  ;;  %v3138_v9 = vld [vmem:[%s9795_s9 + $0x260] sm:$0xff] }
 0x514   : > { %3842 = vmatprep.mubr.f32.mxu0 %v8754_v46  ;;  %3984 = vmatprep.mubr.f32.mxu1 %v8754_v46  ;;  %v3214_v63 = vld [vmem:[%s9795_s9 + $0x4c0] sm:$0xff] }
 0x515   : > { %6463 = vmatprep.subr.bf16.mxu0 %v6462_v31  ;;  %6575 = vmatprep.subr.bf16.mxu1 %v6574_v34  ;;  %v6480_v31 = vpack.c.bf16 %v3143_v17, %v3136_v12  ;;  %v6592_v34 = vpack.c.bf16 %v3145_v16, %v3138_v9  ;;  %v6498_v12 = vpack.c.bf16 %v3214_v63, %v3207_v62  ;;  %v3213_v17 = vld [vmem:[%s9795_s9 + $0x4b8] sm:$0xff]  ;;  %v3228_v16 = vld [vmem:[%s9795_s9 + $0x530] sm:$0xff]  ;;  %v3291_v63 = vld [vmem:[%s9795_s9 + $0x728] sm:$0xff] }
 0x516   : > { %v3221_v9 = vld [vmem:[%s9795_s9 + $0x4f8] sm:$0xff] }
 0x517   : > { %6465 = vmatpush1.bf16.msra.mxu0 %v6464_v38  ;;  %6577 = vmatpush3.bf16.msra.mxu1 %v6576_v42  ;;  %v6594_v38 = vpack.c.bf16 %v3271_v29, %v3264_v28  ;;  %v3152_v42 = vld [vmem:[%s9795_s9 + $0x2d0] sm:$0xff]  ;;  %v6502_v29 = vpack.c.bf16 %v3228_v16, %v3221_v9  ;;  %v3397_v62 = vld [vmem:[%s9795_s9 + $0xa78] sm:$0xff]  ;;  %v3411_v9 = vld [vmem:[%s9795_s9 + $0xae8] sm:$0xff] }
 0x518   : > { %6467 = vmatprep.subr.bf16.mxu0 %v6466_v53  ;;  %6579 = vmatprep.subr.bf16.mxu1 %v6578_v47  ;;  %v3172_v53 = vld [vmem:[%s9795_s9 + $0x370] sm:$0xff]  ;;  %v3278_v47 = vld [vmem:[%s9795_s9 + $0x6c0] sm:$0xff]  ;;  %v6596_v0 = vpack.c.bf16 %v3159_v45, %v3152_v42  ;;  %v3305_v16 = vld [vmem:[%s9795_s9 + $0x798] sm:$0xff] }
 0x519   : > { %v6486_v24 = vpack.c.bf16 %v3172_v53, %v3165_v52  ;;  %v6598_v30 = vpack.c.bf16 %v3285_v57, %v3278_v47  ;;  %v3220_v28 = vld [vmem:[%s9795_s9 + $0x4f0] sm:$0xff]  ;;  %v3234_v45 = vld [vmem:[%s9795_s9 + $0x560] sm:$0xff]  ;;  %v3241_v53 = vld [vmem:[%s9795_s9 + $0x598] sm:$0xff] }
 0x51a   : > { %v3348_v47 = vld [vmem:[%s9795_s9 + $0x8f0] sm:$0xff]  ;;  %v3355_v57 = vld [vmem:[%s9795_s9 + $0x928] sm:$0xff] }
 0x51b   : > { %6469 = vmatpush1.bf16.msra.mxu0 %v6468_v2  ;;  %6581 = vmatpush3.bf16.msra.mxu1 %v6580_v32  ;;  %v3171_v2 = vld [vmem:[%s9795_s9 + $0x368] sm:$0xff]  ;;  %v3166_v32 = vld [vmem:[%s9795_s9 + $0x340] sm:$0xff] }
 0x51c   : > { %6471 = vmatprep.subr.bf16.mxu0 %v6470_v4  ;;  %6583 = vmatprep.subr.bf16.mxu1 %v6582_v48  ;;  %v3186_v4 = vld [vmem:[%s9795_s9 + $0x3e0] sm:$0xff]  ;;  %v6488_v48 = vpack.c.bf16 %v3171_v2, %v3164_v1  ;;  %v6600_v51 = vpack.c.bf16 %v3173_v40, %v3166_v32  ;;  %v6508_v1 = vpack.c.bf16 %v3241_v53, %v3234_v45  ;;  %v3255_v32 = vld [vmem:[%s9795_s9 + $0x608] sm:$0xff] }
 0x51d   : > { %v6490_v59 = vpack.c.bf16 %v3186_v4, %v3179_v41  ;;  %v3362_v40 = vld [vmem:[%s9795_s9 + $0x960] sm:$0xff]  ;;  %v3369_v41 = vld [vmem:[%s9795_s9 + $0x998] sm:$0xff]  ;;  %v3263_v4 = vld [vmem:[%s9795_s9 + $0x648] sm:$0xff] }
 0x51e   : > { %v6618_v58 = vpack.c.bf16 %v3369_v41, %v3362_v40  ;;  %v3318_v53 = vld [vmem:[%s9795_s9 + $0x800] sm:$0xff]  ;;  %v3339_v40 = vld [vmem:[%s9795_s9 + $0x8a8] sm:$0xff] }
 0x51f   : > { %6473 = vmatpush1.bf16.msra.mxu0 %v6472_v43  ;;  %6585 = vmatpush3.bf16.msra.mxu1 %v6584_v7  ;;  %v3193_v43 = vld [vmem:[%s9795_s9 + $0x418] sm:$0xff]  ;;  %v3200_v7 = vld [vmem:[%s9795_s9 + $0x450] sm:$0xff]  ;;  %v3446_v41 = vld [vmem:[%s9795_s9 + $0xc00] sm:$0xff] }
 0x520   : > { %6475 = vmatprep.subr.bf16.mxu0 %v6474_v26  ;;  %6587 = vmatprep.subr.bf16.mxu1 %v6586_v49  ;;  %v3192_v26 = vld [vmem:[%s9795_s9 + $0x410] sm:$0xff]  ;;  %v6494_v49 = vpack.c.bf16 %v3200_v7, %v3193_v43  ;;  %v3383_v43 = vld [vmem:[%s9795_s9 + $0xa08] sm:$0xff]  ;;  %v3277_v7 = vld [vmem:[%s9795_s9 + $0x6b8] sm:$0xff] }
 0x521   : > { %v6496_v5 = vpack.c.bf16 %v3199_v50, %v3192_v26  ;;  %v6621_v26 = vpack.c.bf16 %v3383_v43, %v3376_v39  ;;  %v3346_v43 = vld [vmem:[%s9795_s9 + $0x8e0] sm:$0xff] }
 0x523   : > { %6477 = vmatpush1.bf16.msra.mxu0 %v6476_v15  ;;  %6589 = vmatpush3.bf16.msra.mxu1 %v6588_v6  ;;  %v6606_v15 = vpack.c.bf16 %v3313_v56, %v3306_v55  ;;  %v3206_v6 = vld [vmem:[%s9795_s9 + $0x480] sm:$0xff]  ;;  %v3283_v55 = vld [vmem:[%s9795_s9 + $0x6e8] sm:$0xff] }
 0x524   : > { %6479 = vmatprep.subr.bf16.mxu0 %v6478_v18  ;;  %6591 = vmatprep.subr.bf16.mxu1 %v6590_v8  ;;  %v3320_v18 = vld [vmem:[%s9795_s9 + $0x810] sm:$0xff]  ;;  %v3327_v8 = vld [vmem:[%s9795_s9 + $0x848] sm:$0xff]  ;;  %v6500_v22 = vpack.c.bf16 %v3213_v17, %v3206_v6  ;;  %v3390_v56 = vld [vmem:[%s9795_s9 + $0xa40] sm:$0xff] }
 0x525   : > { %v6609_v14 = vpack.c.bf16 %v3327_v8, %v3320_v18  ;;  %v6624_v6 = vpack.c.bf16 %v3397_v62, %v3390_v56  ;;  %v3290_v17 = vld [vmem:[%s9795_s9 + $0x720] sm:$0xff]  ;;  %v3297_v18 = vld [vmem:[%s9795_s9 + $0x758] sm:$0xff]  ;;  %v3404_v8 = vld [vmem:[%s9795_s9 + $0xab0] sm:$0xff] }
 0x526   : > { %v4113_v56 = vld [vmem:[%s9797_s11 + $0x98] sm:$0xff] }
 0x527   : > { %6481 = vmatpush1.bf16.msra.mxu0 %v6480_v31  ;;  %6593 = vmatpush3.bf16.msra.mxu1 %v6592_v34  ;;  %v3227_v31 = vld [vmem:[%s9795_s9 + $0x528] sm:$0xff]  ;;  %v3334_v34 = vld [vmem:[%s9795_s9 + $0x880] sm:$0xff] }
 0x528   : > { %6483 = vmatprep.subr.bf16.mxu0 %v6482_v37  ;;  %6595 = vmatprep.subr.bf16.mxu1 %v6594_v38  ;;  %v3242_v37 = vld [vmem:[%s9795_s9 + $0x5a0] sm:$0xff]  ;;  %v6504_v38 = vpack.c.bf16 %v3227_v31, %v3220_v28  ;;  %v6612_v42 = vpack.c.bf16 %v3341_v35, %v3334_v34  ;;  %v6627_v28 = vpack.c.bf16 %v3411_v9, %v3404_v8  ;;  %v3304_v31 = vld [vmem:[%s9795_s9 + $0x790] sm:$0xff]  ;;  %v3311_v34 = vld [vmem:[%s9795_s9 + $0x7c8] sm:$0xff] }
 0x529   : > { %v6506_v52 = vpack.c.bf16 %v3242_v37, %v3235_v36  ;;  %v3418_v35 = vld [vmem:[%s9795_s9 + $0xb20] sm:$0xff]  ;;  %v3425_v36 = vld [vmem:[%s9795_s9 + $0xb58] sm:$0xff]  ;;  %v3319_v37 = vld [vmem:[%s9795_s9 + $0x808] sm:$0xff] }
 0x52a   : > { %v6630_v45 = vpack.c.bf16 %v3425_v36, %v3418_v35  ;;  %v4096_v8 = vld [vmem:[%s9797_s11 + $0x10] sm:$0xff]  ;;  %v4097_v9 = vld [vmem:[%s9797_s11 + $0x18] sm:$0xff] }
 0x52b   : > { %6485 = vmatpush1.bf16.msra.mxu0 %v6484_v61  ;;  %6597 = vmatpush3.bf16.msra.mxu1 %v6596_v0  ;;  %v3249_v61 = vld [vmem:[%s9795_s9 + $0x5d8] sm:$0xff]  ;;  %v3256_v0 = vld [vmem:[%s9795_s9 + $0x610] sm:$0xff]  ;;  %v6644_v35 = vpack.c.bf16 %v4097_v9, %v4096_v8  ;;  %v3430_v9 = vld [vmem:[%s9795_s9 + $0xb80] sm:$0xff] }
 0x52c   : > { %6487 = vmatprep.subr.bf16.mxu0 %v6486_v24  ;;  %6599 = vmatprep.subr.bf16.mxu1 %v6598_v30  ;;  %v6615_v24 = vpack.c.bf16 %v3355_v57, %v3348_v47  ;;  %v3248_v30 = vld [vmem:[%s9795_s9 + $0x5d0] sm:$0xff]  ;;  %v6510_v2 = vpack.c.bf16 %v3256_v0, %v3249_v61  ;;  %v3325_v47 = vld [vmem:[%s9795_s9 + $0x838] sm:$0xff]  ;;  %v3439_v61 = vld [vmem:[%s9795_s9 + $0xbc8] sm:$0xff] }
 0x52d   : > { %v3432_v57 = vld [vmem:[%s9795_s9 + $0xb90] sm:$0xff]  ;;  %v3333_v0 = vld [vmem:[%s9795_s9 + $0x878] sm:$0xff] }
 0x52e   : > { %v3396_v36 = vld [vmem:[%s9795_s9 + $0xa70] sm:$0xff] }
 0x52f   : > { %6489 = vmatpush1.bf16.msra.mxu0 %v6488_v48  ;;  %6601 = vmatpush3.bf16.msra.mxu1 %v6600_v51  ;;  %v3270_v48 = vld [vmem:[%s9795_s9 + $0x680] sm:$0xff]  ;;  %v6512_v51 = vpack.c.bf16 %v3255_v32, %v3248_v30  ;;  %v6633_v30 = vpack.c.bf16 %v3439_v61, %v3432_v57  ;;  %v3332_v32 = vld [vmem:[%s9795_s9 + $0x870] sm:$0xff]  ;;  %v3395_v61 = vld [vmem:[%s9795_s9 + $0xa68] sm:$0xff] }
 0x530   : > { %6491 = vmatprep.subr.bf16.mxu0 %v6490_v59  ;;  %6602 = vmatprep.subr.bf16.mxu1 %v6793_v11  ;;  %v3262_v59 = vld [vmem:[%s9795_s9 + $0x640] sm:$0xff]  ;;  %v6514_v3 = vpack.c.bf16 %v3270_v48, %v3263_v4  ;;  %v3453_v4 = vld [vmem:[%s9795_s9 + $0xc38] sm:$0xff]  ;;  %v3347_v48 = vld [vmem:[%s9795_s9 + $0x8e8] sm:$0xff] }
 0x531   : > { %v3388_v57 = vld [vmem:[%s9795_s9 + $0xa30] sm:$0xff] }
 0x532   : > { %3985 = vmatmul.mubr.f32.vlgmr.msra.gmra.mrb[28].mxu1 %v8762_v60 }
 0x533   : > { %6493 = vmatpush1.bf16.msra.mxu0 %v6492_v13  ;;  %6604 = vmatpush1.bf16.msra.mxu1 %v6603_v44  ;;  %v3284_v13 = vld [vmem:[%s9795_s9 + $0x6f0] sm:$0xff]  ;;  %v6516_v44 = vpack.c.bf16 %v3269_v10, %v3262_v59  ;;  %v4111_v59 = vld [vmem:[%s9797_s11 + $0x88] sm:$0xff]  ;;  %v6636_v10 = vpack.c.bf16 %v3453_v4, %v3446_v41  ;;  %v6552_v4 = vpack.c.bf16 %v3395_v61, %v3388_v57  ;;  %v4109_v57 = vld [vmem:[%s9797_s11 + $0x78] sm:$0xff] }
 0x534   : > { %4444 = vmatprep.mubr.msk.f32.mxu1 %vm1986_vm1, %v9058_v23  ;;  %6495 = vmatprep.subr.bf16.mxu0 %v6494_v49  ;;  %v3276_v49 = vld [vmem:[%s9795_s9 + $0x6b0] sm:$0xff]  ;;  %v6518_v50 = vpack.c.bf16 %v3284_v13, %v3277_v7  ;;  %v3353_v7 = vld [vmem:[%s9795_s9 + $0x918] sm:$0xff]  ;;  %v4119_v41 = vld [vmem:[%s9797_s11 + $0xc8] sm:$0xff] }
 0x535   : > { %6605 = vmatprep.subr.bf16.mxu1 %v6793_v11  ;;  %v3361_v13 = vld [vmem:[%s9795_s9 + $0x958] sm:$0xff]  ;;  %v6540_v62 = vpack.c.bf16 %v3353_v7, %v3346_v43  ;;  %v4102_v43 = vld [vmem:[%s9797_s11 + $0x40] sm:$0xff]  ;;  %v4103_v7 = vld [vmem:[%s9797_s11 + $0x48] sm:$0xff] }
 0x537   : > { %6497 = vmatpush1.bf16.msra.mxu0 %v6496_v5  ;;  %6607 = vmatpush1.bf16.msra.mxu1 %v6606_v15  ;;  %v3298_v5 = vld [vmem:[%s9795_s9 + $0x760] sm:$0xff]  ;;  %v6520_v15 = vpack.c.bf16 %v3283_v55, %v3276_v49  ;;  %v4112_v55 = vld [vmem:[%s9797_s11 + $0x90] sm:$0xff] }
 0x538   : > { %6499 = vmatprep.subr.bf16.mxu0 %v6498_v12  ;;  %6608 = vmatprep.subr.bf16.mxu1 %v6793_v11  ;;  %v6522_v12 = vpack.c.bf16 %v3298_v5, %v3291_v63  ;;  %v4094_v49 = vld [vmem:[%s9797_s11] sm:$0xff]  ;;  %v3360_v5 = vld [vmem:[%s9795_s9 + $0x950] sm:$0xff] }
 0x53b   : > { %6501 = vmatpush1.bf16.msra.mxu0 %v6500_v22  ;;  %6610 = vmatpush1.bf16.msra.mxu1 %v6609_v14  ;;  %v3312_v22 = vld [vmem:[%s9795_s9 + $0x7d0] sm:$0xff]  ;;  %v6524_v14 = vpack.c.bf16 %v3297_v18, %v3290_v17  ;;  %v3382_v17 = vld [vmem:[%s9795_s9 + $0xa00] sm:$0xff]  ;;  %v6642_v18 = vpack.c.bf16 %v4113_v56, %v4112_v55  ;;  %v3423_v55 = vld [vmem:[%s9795_s9 + $0xb48] sm:$0xff] }
 0x53c   : > { %6503 = vmatprep.subr.bf16.mxu0 %v6502_v29  ;;  %6611 = vmatprep.subr.bf16.mxu1 %v6793_v11  ;;  %v6526_v29 = vpack.c.bf16 %v3312_v22, %v3305_v16  ;;  %v4114_v16 = vld [vmem:[%s9797_s11 + $0xa0] sm:$0xff]  ;;  %v4115_v22 = vld [vmem:[%s9797_s11 + $0xa8] sm:$0xff] }
 0x53d   : > { %v3431_v56 = vld [vmem:[%s9795_s9 + $0xb88] sm:$0xff] }
 0x53f   : > { %6505 = vmatpush1.bf16.msra.mxu0 %v6504_v38  ;;  %6613 = vmatpush1.bf16.msra.mxu1 %v6612_v42  ;;  %v3326_v38 = vld [vmem:[%s9795_s9 + $0x840] sm:$0xff]  ;;  %v6528_v42 = vpack.c.bf16 %v3311_v34, %v3304_v31  ;;  %v3381_v31 = vld [vmem:[%s9795_s9 + $0x9f8] sm:$0xff] }
 0x540   : > { %6507 = vmatprep.subr.bf16.mxu0 %v6506_v52  ;;  %6614 = vmatprep.subr.bf16.mxu1 %v6793_v11  ;;  %v6530_v52 = vpack.c.bf16 %v3326_v38, %v3319_v37  ;;  %v3389_v34 = vld [vmem:[%s9795_s9 + $0xa38] sm:$0xff]  ;;  %v6646_v37 = vpack.c.bf16 %v4115_v22, %v4114_v16  ;;  %v4098_v38 = vld [vmem:[%s9797_s11 + $0x20] sm:$0xff] }
 0x541   : > { %v3437_v16 = vld [vmem:[%s9795_s9 + $0xbb8] sm:$0xff] }
 0x542   : > { %v3445_v22 = vld [vmem:[%s9795_s9 + $0xbf8] sm:$0xff] }
 0x543   : > { %6509 = vmatpush1.bf16.msra.mxu0 %v6508_v1  ;;  %6616 = vmatpush1.bf16.msra.mxu1 %v6615_v24  ;;  %v3340_v1 = vld [vmem:[%s9795_s9 + $0x8b0] sm:$0xff]  ;;  %v6532_v24 = vpack.c.bf16 %v3325_v47, %v3318_v53  ;;  %v6550_v47 = vpack.c.bf16 %v3396_v36, %v3389_v34  ;;  %v4107_v34 = vld [vmem:[%s9797_s11 + $0x68] sm:$0xff]  ;;  %v4125_v36 = vld [vmem:[%s9797_s11 + $0xf8] sm:$0xff] }
 0x544   : > { %6511 = vmatprep.subr.bf16.mxu0 %v6510_v2  ;;  %6617 = vmatprep.subr.bf16.mxu1 %v6793_v11  ;;  %v6534_v2 = vpack.c.bf16 %v3340_v1, %v3333_v0  ;;  %v3403_v0 = vld [vmem:[%s9795_s9 + $0xaa8] sm:$0xff] }
 0x547   : > { %6513 = vmatpush1.bf16.msra.mxu0 %v6512_v51  ;;  %6619 = vmatpush1.bf16.msra.mxu1 %v6618_v58  ;;  %v3354_v51 = vld [vmem:[%s9795_s9 + $0x920] sm:$0xff] }
 0x548   : > { %6515 = vmatprep.subr.bf16.mxu0 %v6514_v3  ;;  %6620 = vmatprep.subr.bf16.mxu1 %v6793_v11  ;;  %v4110_v58 = vld [vmem:[%s9797_s11 + $0x80] sm:$0xff]  ;;  %v6536_v3 = vpack.c.bf16 %v3339_v40, %v3332_v32  ;;  %v6538_v39 = vpack.c.bf16 %v3354_v51, %v3347_v48  ;;  %v4101_v32 = vld [vmem:[%s9797_s11 + $0x38] sm:$0xff] }
 0x549   : > { %v4118_v40 = vld [vmem:[%s9797_s11 + $0xc0] sm:$0xff] }
 0x54a   : > { %v3402_v51 = vld [vmem:[%s9795_s9 + $0xaa0] sm:$0xff] }
 0x54b   : > { %6517 = vmatpush1.bf16.msra.mxu0 %v6516_v44  ;;  %6622 = vmatpush1.bf16.msra.mxu1 %v6621_v26  ;;  %v3368_v44 = vld [vmem:[%s9795_s9 + $0x990] sm:$0xff]  ;;  %v6638_v26 = vpack.c.bf16 %v4111_v59, %v4110_v58  ;;  %v3409_v58 = vld [vmem:[%s9795_s9 + $0xad8] sm:$0xff] }
 0x54c   : > { %6519 = vmatprep.subr.bf16.mxu0 %v6518_v50  ;;  %6623 = vmatprep.subr.bf16.mxu1 %v6793_v11  ;;  %v4095_v50 = vld [vmem:[%s9797_s11 + $0x8] sm:$0xff]  ;;  %v6542_v63 = vpack.c.bf16 %v3368_v44, %v3361_v13  ;;  %v3417_v59 = vld [vmem:[%s9795_s9 + $0xb18] sm:$0xff]  ;;  %v4120_v13 = vld [vmem:[%s9797_s11 + $0xd0] sm:$0xff] }
 0x54d   : > { %v4121_v44 = vld [vmem:[%s9797_s11 + $0xd8] sm:$0xff] }
 0x54f   : > { %6521 = vmatpush1.bf16.msra.mxu0 %v6520_v15  ;;  %6625 = vmatpush1.bf16.msra.mxu1 %v6624_v6  ;;  %v3367_v15 = vld [vmem:[%s9795_s9 + $0x988] sm:$0xff] }
 0x550   : > { %6523 = vmatprep.subr.bf16.mxu0 %v6522_v12  ;;  %6626 = vmatprep.subr.bf16.mxu1 %v6793_v11  ;;  %v3375_v6 = vld [vmem:[%s9795_s9 + $0x9c8] sm:$0xff]  ;;  %v6640_v12 = vpack.c.bf16 %v4095_v50, %v4094_v49  ;;  %v3416_v50 = vld [vmem:[%s9795_s9 + $0xb10] sm:$0xff] }
 0x552   : > { %3843 = vmatmul.mubr.f32.vlgmr.msra.gmra.mrb[20].mxu0 %v8762_v60 }
 0x553   : > { %6525 = vmatpush1.bf16.msra.mxu0 %v6524_v14  ;;  %4443 = vmatprep.mubr.msk.f32.mxu0 %vm1986_vm1, %v9058_v23  ;;  %v6544_v14 = vpack.c.bf16 %v3367_v15, %v3360_v5  ;;  %v6658_v5 = vpack.c.bf16 %v4121_v44, %v4120_v13  ;;  %v4104_v15 = vld [vmem:[%s9797_s11 + $0x50] sm:$0xff]  ;;  %v4138_v44 = vld [vmem:[%s9797_s11 + $0x160] sm:$0xff] }
 0x554   : > { %6628 = vmatpush1.bf16.msra.mxu1 %v6627_v28  ;;  %6527 = vmatprep.subr.bf16.mxu0 %v6526_v29  ;;  %v6546_v28 = vpack.c.bf16 %v3382_v17, %v3375_v6  ;;  %v3374_v29 = vld [vmem:[%s9795_s9 + $0x9c0] sm:$0xff]  ;;  %v4105_v6 = vld [vmem:[%s9797_s11 + $0x58] sm:$0xff]  ;;  %v4123_v17 = vld [vmem:[%s9797_s11 + $0xe8] sm:$0xff] }
 0x555   : > { %6629 = vmatprep.subr.bf16.mxu1 %v6793_v11  ;;  %v6548_v53 = vpack.c.bf16 %v3381_v31, %v3374_v29  ;;  %v4106_v31 = vld [vmem:[%s9797_s11 + $0x60] sm:$0xff] }
 0x557   : > { %6529 = vmatpush1.bf16.msra.mxu0 %v6528_v42  ;;  %v4099_v42 = vld [vmem:[%s9797_s11 + $0x28] sm:$0xff] }
 0x558   : > { %6631 = vmatpush1.bf16.msra.mxu1 %v6630_v45  ;;  %6531 = vmatprep.subr.bf16.mxu0 %v6530_v52  ;;  %v4116_v45 = vld [vmem:[%s9797_s11 + $0xb0] sm:$0xff]  ;;  %v4117_v52 = vld [vmem:[%s9797_s11 + $0xb8] sm:$0xff]  ;;  %v6648_v1 = vpack.c.bf16 %v4099_v42, %v4098_v38 }
 0x559   : > { %6632 = vmatprep.subr.bf16.mxu1 %v6793_v11  ;;  %v3444_v42 = vld [vmem:[%s9795_s9 + $0xbf0] sm:$0xff] }
 0x55b   : > { %6533 = vmatpush1.bf16.msra.mxu0 %v6532_v24  ;;  %v3410_v24 = vld [vmem:[%s9795_s9 + $0xae0] sm:$0xff] }
 0x55c   : > { %6634 = vmatpush1.bf16.msra.mxu1 %v6633_v30  ;;  %6535 = vmatprep.subr.bf16.mxu0 %v6534_v2  ;;  %v6650_v30 = vpack.c.bf16 %v4117_v52, %v4116_v45  ;;  %v4100_v2 = vld [vmem:[%s9797_s11 + $0x30] sm:$0xff]  ;;  %v6554_v48 = vpack.c.bf16 %v3410_v24, %v3403_v0  ;;  %v3451_v45 = vld [vmem:[%s9795_s9 + $0xc28] sm:$0xff]  ;;  %v6664_v52 = vpack.c.bf16 %v4107_v34, %v4106_v31  ;;  %v4126_v0 = vld [vmem:[%s9797_s11 + $0x100] sm:$0xff] }
 0x55d   : > { %6635 = vmatprep.subr.bf16.mxu1 %v6793_v11  ;;  %v6568_v61 = vpack.c.bf16 %v3451_v45, %v3444_v42 }
 0x55f   : > { %6537 = vmatpush1.bf16.msra.mxu0 %v6536_v3  ;;  %v6652_v3 = vpack.c.bf16 %v4101_v32, %v4100_v2  ;;  %v4128_v2 = vld [vmem:[%s9797_s11 + $0x110] sm:$0xff]  ;;  %v4129_v32 = vld [vmem:[%s9797_s11 + $0x118] sm:$0xff] }
 0x560   : > { %6637 = vmatpush1.bf16.msra.mxu1 %v6636_v10  ;;  %6539 = vmatprep.subr.bf16.mxu0 %v6538_v39  ;;  %v3424_v10 = vld [vmem:[%s9795_s9 + $0xb50] sm:$0xff]  ;;  %v6654_v39 = vpack.c.bf16 %v4119_v41, %v4118_v40  ;;  %v6674_v40 = vpack.c.bf16 %v4129_v32, %v4128_v2  ;;  %v4130_v41 = vld [vmem:[%s9797_s11 + $0x120] sm:$0xff] }
 0x561   : > { %6639 = vmatprep.subr.bf16.mxu1 %v6638_v26  ;;  %v6556_v26 = vpack.c.bf16 %v3409_v58, %v3402_v51  ;;  %v6558_v49 = vpack.c.bf16 %v3424_v10, %v3417_v59  ;;  %v4132_v51 = vld [vmem:[%s9797_s11 + $0x130] sm:$0xff]  ;;  %v4133_v58 = vld [vmem:[%s9797_s11 + $0x138] sm:$0xff]  ;;  %v4135_v10 = vld [vmem:[%s9797_s11 + $0x148] sm:$0xff] }
 0x562   : > { %v6680_v59 = vpack.c.bf16 %v4133_v58, %v4132_v51  ;;  %v3474_v51 = vsub.s32 4, %v8269_v33  ;;  %v3478_v58 = vsub.s32 5, %v8269_v33 }
 0x563   : > { %4055 = vmatmul.mubr.f32.vlgmr.msra.gmra.mrb[30].mxu1 %v9066_v27  ;;  %6541 = vmatpush1.bf16.msra.mxu0 %v6540_v62  ;;  %v6656_v62 = vpack.c.bf16 %v4103_v7, %v4102_v43  ;;  %v4136_v43 = vld [vmem:[%s9797_s11 + $0x150] sm:$0xff]  ;;  %v4137_v7 = vld [vmem:[%s9797_s11 + $0x158] sm:$0xff] }
 0x564   : > { %6543 = vmatprep.subr.bf16.mxu0 %v6542_v63  ;;  %6641 = vmatpush3.bf16.msra.mxu1 %v6640_v12  ;;  %v3438_v63 = vld [vmem:[%s9795_s9 + $0xbc0] sm:$0xff]  ;;  %v6686_v13 = vpack.c.bf16 %v4137_v7, %v4136_v43 }
 0x565   : > { %6643 = vmatprep.subr.bf16.mxu1 %v6642_v18  ;;  %v4122_v12 = vld [vmem:[%s9797_s11 + $0xe0] sm:$0xff]  ;;  %v6560_v18 = vpack.c.bf16 %v3423_v55, %v3416_v50  ;;  %v6562_v8 = vpack.c.bf16 %v3438_v63, %v3431_v56  ;;  %v4140_v50 = vld [vmem:[%s9797_s11 + $0x170] sm:$0xff]  ;;  %v4141_v55 = vld [vmem:[%s9797_s11 + $0x178] sm:$0xff] }
 0x566   : > { %v6662_v29 = vpack.c.bf16 %v4123_v17, %v4122_v12  ;;  %v6692_v56 = vpack.c.bf16 %v4141_v55, %v4140_v50  ;;  %v4143_v63 = vld [vmem:[%s9797_s11 + $0x188] sm:$0xff]  ;;  %v4146_v17 = vld [vmem:[%s9797_s11 + $0x1a0] sm:$0xff] }
 0x567   : > { %6545 = vmatpush1.bf16.msra.mxu0 %v6544_v14  ;;  %v6660_v14 = vpack.c.bf16 %v4105_v6, %v4104_v15  ;;  %v4144_v15 = vld [vmem:[%s9797_s11 + $0x190] sm:$0xff]  ;;  %v4145_v6 = vld [vmem:[%s9797_s11 + $0x198] sm:$0xff] }
 0x568   : > { %6547 = vmatprep.subr.bf16.mxu0 %v6546_v28  ;;  %6645 = vmatpush3.bf16.msra.mxu1 %v6644_v35  ;;  %v3452_v28 = vld [vmem:[%s9795_s9 + $0xc30] sm:$0xff]  ;;  %v6698_v12 = vpack.c.bf16 %v4145_v6, %v4144_v15 }
 0x569   : > { %6647 = vmatprep.subr.bf16.mxu1 %v6646_v37  ;;  %v4124_v35 = vld [vmem:[%s9797_s11 + $0xf0] sm:$0xff]  ;;  %v6564_v37 = vpack.c.bf16 %v3437_v16, %v3430_v9  ;;  %v6566_v38 = vpack.c.bf16 %v3452_v28, %v3445_v22  ;;  %v4149_v16 = vld [vmem:[%s9797_s11 + $0x1b8] sm:$0xff] }
 0x56a   : > { %v4148_v9 = vld [vmem:[%s9797_s11 + $0x1b0] sm:$0xff] }
 0x56b   : > { %6549 = vmatpush1.bf16.msra.mxu0 %v6548_v53  ;;  %v6666_v53 = vpack.c.bf16 %v4125_v36, %v4124_v35  ;;  %v6704_v22 = vpack.c.bf16 %v4149_v16, %v4148_v9 }
 0x56c   : > { %6551 = vmatprep.subr.bf16.mxu0 %v6550_v47  ;;  %6649 = vmatpush3.bf16.msra.mxu1 %v6648_v1  ;;  %v4108_v47 = vld [vmem:[%s9797_s11 + $0x70] sm:$0xff]  ;;  %v4127_v1 = vld [vmem:[%s9797_s11 + $0x108] sm:$0xff] }
 0x56d   : > { %6651 = vmatprep.subr.bf16.mxu1 %v6650_v30  ;;  %v6668_v24 = vpack.c.bf16 %v4109_v57, %v4108_v47  ;;  %v6671_v30 = vpack.c.bf16 %v4127_v1, %v4126_v0 }
 0x56f   : > { %6553 = vmatpush1.bf16.msra.mxu0 %v6552_v4  ;;  %v4131_v4 = vld [vmem:[%s9797_s11 + $0x128] sm:$0xff] }
 0x570   : > { %6555 = vmatprep.subr.bf16.mxu0 %v6554_v48  ;;  %6653 = vmatpush3.bf16.msra.mxu1 %v6652_v3  ;;  %v6677_v48 = vpack.c.bf16 %v4131_v4, %v4130_v41  ;;  %v4134_v3 = vld [vmem:[%s9797_s11 + $0x140] sm:$0xff] }
 0x571   : > { %6655 = vmatprep.subr.bf16.mxu1 %v6654_v39  ;;  %v6683_v39 = vpack.c.bf16 %v4135_v10, %v4134_v3 }
 0x573   : > { %6557 = vmatpush1.bf16.msra.mxu0 %v6556_v26  ;;  %v4139_v26 = vld [vmem:[%s9797_s11 + $0x168] sm:$0xff] }
 0x574   : > { %6559 = vmatprep.subr.bf16.mxu0 %v6558_v49  ;;  %6657 = vmatpush3.bf16.msra.mxu1 %v6656_v62  ;;  %v6689_v49 = vpack.c.bf16 %v4139_v26, %v4138_v44  ;;  %v4142_v62 = vld [vmem:[%s9797_s11 + $0x180] sm:$0xff] }
 0x575   : > { %6659 = vmatprep.subr.bf16.mxu1 %v6658_v5  ;;  %v6695_v5 = vpack.c.bf16 %v4143_v63, %v4142_v62 }
 0x577   : > { %6561 = vmatpush1.bf16.msra.mxu0 %v6560_v18  ;;  %v4147_v18 = vld [vmem:[%s9797_s11 + $0x1a8] sm:$0xff] }
 0x578   : > { %6563 = vmatprep.subr.bf16.mxu0 %v6562_v8  ;;  %6661 = vmatpush3.bf16.msra.mxu1 %v6660_v14  ;;  %v6701_v8 = vpack.c.bf16 %v4147_v18, %v4146_v17  ;;  %v3454_v14 = vld [vmem:[%s9796_s10] sm:$0xff] }
 0x579   : > { %6663 = vmatprep.subr.bf16.mxu1 %v6662_v29  ;;  %v3459_v28 = vrot.slane %v3454_v14, %v8284_v25  ;;  %v3467_v29 = vrot.slane %v3454_v14, %v2906_v20  ;;  %v3463_v31 = vrot.slane %v3454_v14, %v8296_v54  ;;  %v3471_v34 = vrot.slane %v3454_v14, %v2910_v21 }
 0x57a   : > { %v3479_v3 = vrot.slane %v3454_v14, %v3478_v58 }
 0x57b   : > { %6565 = vmatpush1.bf16.msra.mxu0 %v6564_v37 }
 0x57c   : > { %6567 = vmatprep.subr.bf16.mxu0 %v6566_v38  ;;  %6665 = vmatpush3.bf16.msra.mxu1 %v6664_v52 }
 0x57d   : > { %6667 = vmatprep.subr.bf16.mxu1 %v6666_v53 }
 0x57f   : > { %6569 = vmatpush1.bf16.msra.mxu0 %v6568_v61 }
 0x580   : > { %6670 = vmatprep.subr.bf16.mxu0 %v6793_v11  ;;  %6669 = vmatpush3.bf16.msra.mxu1 %v6668_v24 }
 0x582   : > { %3914 = vmatmul.mubr.f32.vlgmr.msra.gmra.mrb[20].mxu0 %v9066_v27 }
 0x583   : > { %6672 = vmatpush1.bf16.msra.mxu0 %v6671_v30  ;;  %v3482_v30 = vsub.s32 6, %v8269_v33  ;;  %v4445_v33 = vld [vmem:[%s9798_s12] ss:$0 sm:$0xff] }
 0x584   : > { %6673 = vmatprep.subr.bf16.mxu0 %v6793_v11 }
 0x585   : > { %v3483_v2 = vrot.slane %v3454_v14, %v3482_v30 }
 0x587   : > { %6675 = vmatpush1.bf16.msra.mxu0 %v6674_v40 }
 0x588   : > { %6676 = vmatprep.subr.bf16.mxu0 %v6793_v11 }
 0x58b   : > { %6678 = vmatpush1.bf16.msra.mxu0 %v6677_v48 }
 0x58c   : > { %6679 = vmatprep.subr.bf16.mxu0 %v6793_v11 }
 0x58f   : > { %6681 = vmatpush1.bf16.msra.mxu0 %v6680_v59  ;;  %v3475_v59 = vrot.slane %v3454_v14, %v3474_v51 }
 0x590   : > { %6682 = vmatprep.subr.bf16.mxu0 %v6793_v11 }
 0x593   : > { %6684 = vmatpush1.bf16.msra.mxu0 %v6683_v39 }
 0x594   : > { %6685 = vmatprep.subr.bf16.mxu0 %v6793_v11 }
 0x597   : > { %6687 = vmatpush1.bf16.msra.mxu0 %v6686_v13 }
 0x598   : > { %6688 = vmatprep.subr.bf16.mxu0 %v6793_v11 }
 0x59b   : > { %6690 = vmatpush1.bf16.msra.mxu0 %v6689_v49 }
 0x59c   : > { %6691 = vmatprep.subr.bf16.mxu0 %v6793_v11 }
 0x59f   : > { %6693 = vmatpush1.bf16.msra.mxu0 %v6692_v56 }
 0x5a0   : > { %6694 = vmatprep.subr.bf16.mxu0 %v6793_v11 }
 0x5a3   : > { %6696 = vmatpush1.bf16.msra.mxu0 %v6695_v5 }
 0x5a4   : > { %6697 = vmatprep.subr.bf16.mxu0 %v6793_v11 }
 0x5a7   : > { %6699 = vmatpush1.bf16.msra.mxu0 %v6698_v12 }
 0x5a8   : > { %6700 = vmatprep.subr.bf16.mxu0 %v6793_v11 }
 0x5ab   : > { %6702 = vmatpush1.bf16.msra.mxu0 %v6701_v8 }
 0x5ac   : > { %6703 = vmatprep.subr.bf16.mxu0 %v6793_v11 }
 0x5af   : > { %6705 = vmatpush1.bf16.msra.mxu0 %v6704_v22 }
 0x5e5   : > { %v3631_v35 = vpop.f32.mrb[18].mxu0  ;;  %v3773_v36 = vpop.f32.mrb[26].mxu1 }
 0x5e6   : > { %v6707_v37 = vadd.f32 %v3631_v35, %v3459_v28  ;;  %v6709_v38 = vadd.f32 %v3773_v36, %v3467_v29  ;;  %v3633_v11 = vpop.f32.mrb[19].mxu0  ;;  %v3775_v42 = vpop.f32.mrb[27].mxu1  ;;  %v4314_v35 = vand.u32 127, %v2752_v19 }
 0x5e7   : > { %v6708_v45 = vadd.f32 %v3633_v11, %v3463_v31  ;;  %v6710_v52 = vadd.f32 %v3775_v42, %v3471_v34 }
 0x5e8   : > { %v4060_v53 = vmax.f32 %v6707_v37, 0.0  ;;  %v4062_v47 = vmax.f32 %v6709_v38, 0.0  ;;  %vm4315_vm2 = vcmp.lt.s32.totalorder %v4314_v35, 6  ;;  %vm4326_vm3 = vcmp.lt.s32.totalorder %v4314_v35, 8 }
 0x5e9   : > { %v4061_v57 = vmax.f32 %v6708_v45, 0.0  ;;  %v4063_v25 = vmax.f32 %v6710_v52, 0.0 }
 0x5ea   : > { %v4067_v54 = vadd.f32 %v4060_v53, %v8762_v60  ;;  %v4069_v21 = vadd.f32 %v4062_v47, %v9066_v27 }
 0x5eb   : > { %v4068_v61 = vadd.f32 %v4061_v57, %v8754_v46  ;;  %v4070_v20 = vadd.f32 %v4063_v25, %v9058_v23  ;;  %4075 = vrot.lane.b32.xlu1 %v4063_v25, %s6796_s22 }
 0x5ed   : > { %4227 = vmatprep.mubr.f32.mxu1 %v4068_v61  ;;  %4446 = vmatprep.mubr.msk.f32.mxu0 %vm1986_vm1, %v4070_v20 }
 0x5ee   : > { %4228 = vmatmul.mubr.f32.vlgmr.msra.gmra.mrb[32].mxu1 %v4067_v54  ;;  %4303 = vmatmul.mubr.f32.vlgmr.msra.gmra.mrb[22].mxu0 %v4069_v21 }
 0x605   : > { %v5194_v0 = vpop.f32.mrb[28].mxu1 }
 0x606   : > { %v5195_v1 = vpop.f32.mrb[29].mxu1 }
 0x607   : > { %v5196_v24 = vadd.f32 %v5195_v1, %v5194_v0 }
 0x609   : > { %v3987_v32 = vadd.f32 %v5196_v24, %v3483_v2 }
 0x636   : > { %v4056_v40 = vpop.f32.mrb[30].mxu1 }
 0x637   : > { %v4057_v41 = vadd.f32 %v4056_v40, %v3987_v32  ;;  %v4058_v4 = vpop.f32.mrb[31].mxu1 }
 0x639   : > { %v4066_v48 = vmax.f32 %v4057_v41, 0.0 }
 0x63b   : > { %4081 = vrot.lane.b32.xlu1 %v4066_v48, %s6796_s22 }
 0x655   : > { %v3915_v10 = vpop.f32.mrb[20].mxu0 }
 0x656   : > { %v6711_v39 = vadd.f32 %v3915_v10, %v3475_v59  ;;  %v3917_v43 = vpop.f32.mrb[21].mxu0 }
 0x657   : > { %v6712_v13 = vadd.f32 %v3917_v43, %v3479_v3 }
 0x658   : > { %v4064_v7 = vmax.f32 %v6711_v39, 0.0 }
 0x659   : > { %v4065_v44 = vmax.f32 %v6712_v13, 0.0 }
 0x65a   : > { %4077 = vrot.lane.b32.xlu0 %v4064_v7, %s6796_s22 }
 0x65d   : > { %v4076_v26 = vpop.permute.xlu1 %4075 }
 0x65e   : > { %4079 = vrot.lane.b32.xlu0 %v4065_v44, %s6796_s22 }
 0x6ad   : > { %v4082_v49 = vpop.permute.xlu1 %4081 }
 0x6ae   : > { %v4093_v50 = vadd.f32 %v4082_v49, %v9058_v23 }
 0x6b0   : > { %4447 = vmatprep.mubr.msk.f32.mxu0 %vm1986_vm1, %v4093_v50 }
 0x6c1   : > { %v5229_v55 = vpop.f32.mrb[32].mxu1  ;;  %v4304_v56 = vpop.f32.mrb[22].mxu0 }
 0x6c2   : > { %v5230_v62 = vpop.f32.mrb[33].mxu1  ;;  %v4306_v63 = vpop.f32.mrb[23].mxu0 }
 0x6c3   : > { %v5231_v5 = vadd.f32 %v5230_v62, %v5229_v55 }
 0x6c5   : > { %v4230_v15 = vadd.f32 %v5231_v5, %v4445_v33 }
 0x6c7   : > { %v4305_v6 = vadd.f32 %v4304_v56, %v4230_v15 }
 0x6c9   : > { %v4327_v52 = vsel %vm4326_vm3, %v4305_v6, 0.0 }
 0x6cc   : > { %v4078_v12 = vpop.permute.xlu0 %4077 }
 0x6cd   : > { %v4083_v17 = vsel %vm1986_vm1, %v4076_v26, %v4078_v12 }
 0x6ce   : > { %v4090_v22 = vadd.f32 %v4083_v17, %v8762_v60 }
 0x6d0   : > { %v4080_v18 = vpop.permute.xlu0 %4079 }
 0x6d1   : > { %v4084_v8 = vsel %vm1986_vm1, %v4078_v12, %v4080_v18  ;;  %v4085_v23 = vsel %vm1986_vm1, %v4080_v18, %v4082_v49 }
 0x6d2   : > { %v4091_v9 = vadd.f32 %v4084_v8, %v8754_v46  ;;  %v4092_v16 = vadd.f32 %v4085_v23, %v9066_v27 }
 0x6d4   : > { %4232 = vmatprep.mubr.f32.mxu1 %v4091_v9  ;;  %4308 = vmatmul.mubr.f32.gmra.mrb[24].mxu0 %v4092_v16 }
 0x6d5   : > { %4233 = vmatmul.mubr.f32.gmra.mrb[34].mxu1 %v4090_v22 }
 0x7a7   : > { %v4309_v14 = vpop.f32.mrb[24].mxu0 }
 0x7a8   : > { %v5232_v28 = vpop.f32.mrb[34].mxu1  ;;  %v4311_v29 = vpop.f32.mrb[25].mxu0 }
 0x7a9   : > { %v5233_v31 = vpop.f32.mrb[35].mxu1 }
 0x7aa   : > { %v5234_v34 = vadd.f32 %v5233_v31, %v5232_v28 }
 0x7ac   : > { %v4235_v36 = vadd.f32 %v5234_v34, %v4445_v33 }
 0x7ae   : > { %v4310_v37 = vadd.f32 %v4309_v14, %v4235_v36 }
 0x7b0   : > { %v4316_v46 = vsel %vm4315_vm2, %v4310_v37, -1e+30 }
 0x7b1   : > { %4317 = vmax.xlane.f32.xlu0 %v4316_v46 }
 0x83e   : > { %v4318_v27 = vpop.xlane.xlu0 %4317 }
 0x83f   : > { %v4319_v60 = vsub.f32 %v4316_v46, %v4318_v27 }
 0x841   : > { %v4320_v38 = vmul.f32 1.442695, %v4319_v60 }
 0x843   : > { %6765 = vpow2.f32 %v4320_v38 }
 0x84d   : > { %v6766_v11 = vpop.eup %6765 }
 0x84e   : > { %4322 = vadd.xlane.f32.xlu1 %v6766_v11 }
 0x8db   : > { %v4323_v42 = vpop.xlane.xlu1 %4322 }
 0x8dc   : > { %6767 = vrcp.f32 %v4323_v42 }
 0x8e6   : > { %v6768_v19 = vpop.eup %6767 }
 0x8e7   : > { %v4325_v45 = vmul.f32 %v6768_v19, %v6766_v11 }
 0x8e9   : > { %v4328_v53 = vsel %vm4315_vm2, %v4325_v45, %v4327_v52 }
 0x8ea   : > { %4329 = vst [vmem:[%s528_s14] sm:$0xff] %v4328_v53 }
 0x8eb PF: > { %p20_p9 = scmp.ge.s32.totalorder %s6884_s29, 4   ;;  %s9800_s25 = smov %s6787_s26 }
 0x8ec   : > { %s9801_s26 = smov %s6893_s15  ;;  %s9802_s27 = smov %s6884_s29 }
 0x8ed   :  { %22 = sbr.rel (!%p20_p9) target bundleno = 2 (0x2), region = 138 }

</bundles_post_ra>
